<compile_context>
chip_gen: v6e
topology: v6e:2x2x1
jax: 0.10.0
libtpu: 0.0.40
codegen_flags: <defaults>
</compile_context>

<pallas_src>
import functools

import jax
import jax.numpy as jnp
from jax import lax
from jax.experimental import pallas as pl
from jax.experimental.pallas import tpu as pltpu

# Keep wrapper matmul, in-kernel matmul and the pure-JAX reference numerically
# consistent (true f32 accumulation for the f32 path).
jax.config.update("jax_default_matmul_precision", "highest")


# -----------------------------------------------------------------------------
# Pallas kernel: one grid step == one chunk of `t_chunk` LSTM time steps.
# -----------------------------------------------------------------------------
def _lstm_chunk_kernel(gx_ref, whh_ref, out_ref, h_sc, c_sc, *,
                       hidden, t_chunk, reverse, matmul_dtype, slab_out):
    """gx_ref : (Tc, Bb, 4H)  precomputed x@W_ih^T + bias (permuted/pre-scaled)
       whh_ref: (H, 4H)       recurrent weights (permuted/pre-scaled)
       out_ref: (Bb, Tc*H) slab (H < 128) or (Tc, Bb, H) direct block
       h_sc/c_sc: (Bb, H) f32 carries across chunks (reset at chunk 0)."""
    H = hidden

    @pl.when(pl.program_id(1) == 0)
    def _():
        h_sc[...] = jnp.zeros_like(h_sc)
        c_sc[...] = jnp.zeros_like(c_sc)

    h = h_sc[...]
    c = c_sc[...]
    whh = whh_ref[...]                      # resident across the whole chunk

    rows = range(t_chunk - 1, -1, -1) if reverse else range(t_chunk)
    for row in rows:                        # static unroll; carries in vregs
        gates = gx_ref[row].astype(jnp.float32) + jnp.dot(
            h.astype(matmul_dtype), whh, preferred_element_type=jnp.float32)
        # Gate layout (wrapper-permuted): [i | f | o | g]; the i/f/o columns of
        # W/b were pre-scaled by 0.5, so sigmoid(z) == 0.5*tanh(gates)+0.5 on
        # [0:3H] and tanh(z_g) == tanh(gates) on [3H:4H]:
        # ONE full-width EUP tanh per step.
        th = jnp.tanh(gates)
        sg = 0.5 * th[:, :3 * H] + 0.5
        i_g = sg[:, 0 * H:1 * H]
        f_g = sg[:, 1 * H:2 * H]
        o_g = sg[:, 2 * H:3 * H]
        g_g = th[:, 3 * H:]
        c = f_g * c + i_g * g_g
        h = o_g * jnp.tanh(c)
        # Per-step store straight into the output block (spare vst slot, off
        # the serial critical path) — no hs list, no concat, no vreg blowup.
        if slab_out:
            out_ref[:, row * H:(row + 1) * H] = h.astype(out_ref.dtype)
        else:
            out_ref[row] = h.astype(out_ref.dtype)

    h_sc[...] = h
    c_sc[...] = c


def _pick_batch_block(B):
    """Prefer >=2 batch blocks (megacore, v7x has 2 TCs) when the batch allows,
    keep each block a multiple of 8 sublanes and <= MXU height (256 rows)."""
    if B % 16 == 0 and (B // 2) <= 256:
        return B // 2
    if B > 256 and B % 8 == 0:
        bb = 256
        while B % bb:
            bb -= 8
        return max(bb, 8)
    return B


# -----------------------------------------------------------------------------
# Wrapper
# -----------------------------------------------------------------------------
@functools.partial(
    jax.jit,
    static_argnames=("reverse", "t_chunk", "batch_block", "matmul_dtype"))
def reversible_lstm(x, w_ih, w_hh, b_ih, b_hh, *, reverse=False,
                    t_chunk=16, batch_block=None, matmul_dtype=jnp.float32):
    """x: [T, B, input_size] (seq-first); returns [T, B, hidden_size]."""
    T, B, I = x.shape
    H4 = w_ih.shape[0]
    H = H4 // 4
    md = jnp.dtype(matmul_dtype)

    # ---- Gate permutation + sigmoid pre-scale (one-time, wrapper-side) -----
    # torch gate order (i, f, g, o) -> (i, f, o, g): sigmoid gates contiguous
    # at [0:3H], tanh gate at [3H:4H]; pre-scale sigmoid rows by 0.5 so the
    # kernel only needs a single tanh (sigmoid(x) = 0.5*tanh(x/2) + 0.5).
    def permute_scale(w):
        i, f, g, o = jnp.split(w.astype(jnp.float32), 4, axis=0)
        return jnp.concatenate([0.5 * i, 0.5 * f, 0.5 * o, g], axis=0)

    wih_t = permute_scale(w_ih).T.astype(md)        # (I, 4H)
    whh_t = permute_scale(w_hh).T.astype(md)        # (H, 4H)
    bias = permute_scale(b_ih + b_hh)               # (4H,) f32

    # ---- Hoist the time-parallel input projection out of the recurrence ----
    gx = jnp.dot(x.reshape(T * B, I).astype(md), wih_t,
                 preferred_element_type=jnp.float32)
    gx = (gx + bias[None, :]).reshape(T, B, H4).astype(md)  # bf16 gx: half DMA

    # ---- Tiling -------------------------------------------------------------
    Bb = _pick_batch_block(B) if batch_block is None else batch_block
    assert B % Bb == 0 and (Bb == B or Bb % 8 == 0), "bad batch_block"
    nb = B // Bb

    Tc = max(1, min(t_chunk, T))
    # Re-derive Tc against a conservative VMEM budget (v7x: 64 MiB physical):
    # double-buffered gx block + double-buffered output block must fit.
    def chunk_bytes(tc):
        return 2 * tc * Bb * H4 * md.itemsize + 2 * Bb * tc * H * 4
    while Tc > 1 and chunk_bytes(Tc) > (40 << 20):
        Tc //= 2

    T_pad = pl.cdiv(T, Tc) * Tc
    if T_pad != T:
        # Zero gx rows are a fixed point of the recurrence from zero carries,
        # so tail padding is safe for both forward and reverse processing.
        gx = jnp.concatenate(
            [gx, jnp.zeros((T_pad - T, B, H4), gx.dtype)], axis=0)
    nc = T_pad // Tc

    def rev_c(c):
        # Fold the pre/post flip into the chunk index map (block index).
        return (nc - 1 - c) if reverse else c

    # ---- Output layout ------------------------------------------------------
    slab_out = (H % 128) != 0
    if slab_out:
        # H < 128: lane-dense (Bb, Tc*H) slab per chunk, un-shuffled wrapper-side.
        out_shape = jax.ShapeDtypeStruct((nc, B, Tc * H), jnp.float32)
        out_spec = pl.BlockSpec((None, Bb, Tc * H),
                                lambda b, c: (rev_c(c), b, 0))
    else:
        # H multiple of 128: write (Tc, Bb, H) blocks straight into (T, B, H).
        out_shape = jax.ShapeDtypeStruct((T_pad, B, H), jnp.float32)
        out_spec = pl.BlockSpec((Tc, Bb, H), lambda b, c: (rev_c(c), b, 0))

    # Constant recurrent weights: single-buffer if supported (halves weight VMEM).
    whh_kwargs = dict(pipeline_mode=pl.Buffered(1)) if hasattr(pl, "Buffered") else {}
    whh_spec = pl.BlockSpec((H, H4), lambda b, c: (0, 0), **whh_kwargs)

    vmem_need = chunk_bytes(Tc) + H * H4 * md.itemsize + 2 * Bb * H * 4
    vmem_limit = int(min(max(2 * vmem_need + (8 << 20), 32 << 20), 64 << 20))

    kern = functools.partial(_lstm_chunk_kernel, hidden=H, t_chunk=Tc,
                             reverse=reverse, matmul_dtype=md,
                             slab_out=slab_out)

    out = pl.pallas_call(
        kern,
        out_shape=out_shape,
        grid_spec=pltpu.PrefetchScalarGridSpec(
            num_scalar_prefetch=0,
            grid=(nb, nc),                                 # (batch, time-chunk)
            in_specs=[
                pl.BlockSpec((Tc, Bb, H4), lambda b, c: (rev_c(c), b, 0)),
                whh_spec,
            ],
            out_specs=out_spec,
            scratch_shapes=[
                pltpu.VMEM((Bb, H), jnp.float32),          # h carry
                pltpu.VMEM((Bb, H), jnp.float32),          # c carry
            ],
        ),
        compiler_params=pltpu.CompilerParams(
            dimension_semantics=("parallel", "arbitrary"),
            vmem_limit_bytes=vmem_limit,
        ),
    )(gx, whh_t)

    if slab_out:
        out = (out.reshape(nc, B, Tc, H).transpose(0, 2, 1, 3)
                  .reshape(T_pad, B, H))
    return out[:T]


# -----------------------------------------------------------------------------
# Pure-JAX reference (mirrors torch.nn.LSTM forward, zero init state)
# -----------------------------------------------------------------------------
def reversible_lstm_ref(x, w_ih, w_hh, b_ih, b_hh, *, reverse=False):
    T, B, I = x.shape
    H = w_hh.shape[1]
    xx = x[::-1] if reverse else x
    b = b_ih + b_hh

    def step(carry, x_t):
        h, c = carry
        gates = x_t @ w_ih.T + h @ w_hh.T + b
        i_g, f_g, g_g, o_g = jnp.split(gates, 4, axis=-1)
        i_g = jax.nn.sigmoid(i_g)
        f_g = jax.nn.sigmoid(f_g)
        g_g = jnp.tanh(g_g)
        o_g = jax.nn.sigmoid(o_g)
        c_n = f_g * c + i_g * g_g
        h_n = o_g * jnp.tanh(c_n)
        return (h_n, c_n), h_n

    h0 = jnp.zeros((B, H), jnp.float32)
    c0 = jnp.zeros((B, H), jnp.float32)
    _, out = lax.scan(step, (h0, c0), xx.astype(jnp.float32))
    return out[::-1] if reverse else out


# -----------------------------------------------------------------------------
# Main
# -----------------------------------------------------------------------------
if __name__ == "__main__":
    ok = True
    key = jax.random.PRNGKey(0)

    # (T, B, input, hidden): H=32 exercises the lane-dense (Bb, Tc*H) slab
    # output path, H=128 exercises the direct (Tc, Bb, H) output path.
    for (T, B, I, H) in ((16, 8, 32, 32), (8, 8, 16, 128)):
        key, k_x, k_wih, k_whh, k_bih, k_bhh = jax.random.split(key, 6)
        bound = 1.0 / (H ** 0.5)
        x = jax.random.normal(k_x, (T, B, I), jnp.float32)
        w_ih = jax.random.uniform(k_wih, (4 * H, I), jnp.float32, -bound, bound)
        w_hh = jax.random.uniform(k_whh, (4 * H, H), jnp.float32, -bound, bound)
        b_ih = jax.random.uniform(k_bih, (4 * H,), jnp.float32, -bound, bound)
        b_hh = jax.random.uniform(k_bhh, (4 * H,), jnp.float32, -bound, bound)

        for reverse in (False, True):
            ref = reversible_lstm_ref(x, w_ih, w_hh, b_ih, b_hh, reverse=reverse)

            # f32 MXU operand path — tight check.
            out = jax.block_until_ready(
                reversible_lstm(x, w_ih, w_hh, b_ih, b_hh, reverse=reverse,
                                matmul_dtype=jnp.float32))
            ok = ok and bool(jnp.allclose(out, ref, atol=1e-3, rtol=1e-3))

            # bf16 MXU operands + bf16 gx (v6e/v7x fast path) — loose check.
            out_bf = jax.block_until_ready(
                reversible_lstm(x, w_ih, w_hh, b_ih, b_hh, reverse=reverse,
                                matmul_dtype=jnp.bfloat16))
            ok = ok and bool(jnp.allclose(out_bf, ref, atol=1e-1, rtol=1e-1))

    print("KERNEL_OK" if ok else "KERNEL_MISMATCH")
</pallas_src>

<mosaic_0001>
module attributes {stable_mosaic.version = 11 : i64} {
  func.func @_lstm_chunk_kernel(%arg0: i32, %arg1: i32, %arg2: memref<16x8x128xf32, #tpu.memory_space<vmem>>, %arg3: memref<32x128xf32, #tpu.memory_space<vmem>>, %arg4: memref<1x8x512xf32, #tpu.memory_space<vmem>>, %arg5: memref<8x32xf32, #tpu.memory_space<vmem>>, %arg6: memref<8x32xf32, #tpu.memory_space<vmem>>) attributes {dimension_semantics = [#tpu.dimension_semantics<parallel>, #tpu.dimension_semantics<arbitrary>], iteration_bounds = array<i64: 1, 1>, scalar_prefetch = 0 : i64, scratch_operands = 2 : i64, tpu.core_type = #tpu.core_type<tc>, window_params = [{transform_indices = @transform_0, window_bounds = array<i64: 16, 8, 128>}, {pipeline_mode = #tpu.pipeline_mode<synchronous>, transform_indices = @transform_1, window_bounds = array<i64: 32, 128>}, {transform_indices = @transform_2, window_bounds = array<i64: 1, 8, 512>}]} {
    %c0_i32 = arith.constant 0 : i32
    %0 = arith.cmpi eq, %arg1, %c0_i32 : i32
    %1 = arith.extui %0 : i1 to i32
    %c0_i32_0 = arith.constant 0 : i32
    %2 = arith.cmpi ne, %1, %c0_i32_0 : i32
    scf.if %2 {
      %cst_123 = arith.constant 0.000000e+00 : f32
      %360 = vector.broadcast %cst_123 : f32 to vector<8x32xf32>
      %c0_124 = arith.constant 0 : index
      %c0_125 = arith.constant 0 : index
      %361 = vector.load %arg5[%c0_124, %c0_125] : memref<8x32xf32, #tpu.memory_space<vmem>>, vector<8x32xf32>
      tpu.vector_store %arg5[%c0_124, %c0_125], %360 {strides = array<i32>} : memref<8x32xf32, #tpu.memory_space<vmem>>, vector<8x32xf32>,
      %cst_126 = arith.constant 0.000000e+00 : f32
      %362 = vector.broadcast %cst_126 : f32 to vector<8x32xf32>
      %c0_127 = arith.constant 0 : index
      %c0_128 = arith.constant 0 : index
      %363 = vector.load %arg6[%c0_127, %c0_128] : memref<8x32xf32, #tpu.memory_space<vmem>>, vector<8x32xf32>
      tpu.vector_store %arg6[%c0_127, %c0_128], %362 {strides = array<i32>} : memref<8x32xf32, #tpu.memory_space<vmem>>, vector<8x32xf32>,
    } else {
    }
    %c0 = arith.constant 0 : index
    %c0_1 = arith.constant 0 : index
    %3 = vector.load %arg5[%c0, %c0_1] : memref<8x32xf32, #tpu.memory_space<vmem>>, vector<8x32xf32>
    %c0_2 = arith.constant 0 : index
    %c0_3 = arith.constant 0 : index
    %4 = vector.load %arg6[%c0_2, %c0_3] : memref<8x32xf32, #tpu.memory_space<vmem>>, vector<8x32xf32>
    %c0_4 = arith.constant 0 : index
    %c0_5 = arith.constant 0 : index
    %5 = vector.load %arg3[%c0_4, %c0_5] : memref<32x128xf32, #tpu.memory_space<vmem>>, vector<32x128xf32>
    %c0_6 = arith.constant 0 : index
    %c0_7 = arith.constant 0 : index
    %c0_8 = arith.constant 0 : index
    %6 = vector.load %arg2[%c0_6, %c0_7, %c0_8] : memref<16x8x128xf32, #tpu.memory_space<vmem>>, vector<1x8x128xf32>
    %7 = vector.shape_cast %6 : vector<1x8x128xf32> to vector<8x128xf32>
    %cst = arith.constant dense<0.000000e+00> : vector<8x128xf32>
    %8 = tpu.matmul %3, %5, %cst {dimension_numbers = #tpu.dot_dimension_numbers<[1], [0], [0], [1], [0, 0, 1, 1], [], []>, precision = #tpu.contract_precision<fp32>} : vector<8x32xf32>, vector<32x128xf32>, vector<8x128xf32> -> vector<8x128xf32>
    %9 = arith.addf %7, %8 : vector<8x128xf32>
    %10 = math.tanh %9 : vector<8x128xf32>
    %11 = vector.extract_strided_slice %10 {offsets = [0, 0], sizes = [8, 96], strides = [1, 1]} : vector<8x128xf32> to vector<8x96xf32>
    %cst_9 = arith.constant 5.000000e-01 : f32
    %12 = vector.broadcast %cst_9 : f32 to vector<8x96xf32>
    %13 = arith.mulf %12, %11 : vector<8x96xf32>
    %cst_10 = arith.constant 5.000000e-01 : f32
    %14 = vector.broadcast %cst_10 : f32 to vector<8x96xf32>
    %15 = arith.addf %13, %14 : vector<8x96xf32>
    %16 = vector.extract_strided_slice %15 {offsets = [0, 0], sizes = [8, 32], strides = [1, 1]} : vector<8x96xf32> to vector<8x32xf32>
    %17 = vector.extract_strided_slice %15 {offsets = [0, 32], sizes = [8, 32], strides = [1, 1]} : vector<8x96xf32> to vector<8x32xf32>
    %18 = vector.extract_strided_slice %15 {offsets = [0, 64], sizes = [8, 32], strides = [1, 1]} : vector<8x96xf32> to vector<8x32xf32>
    %19 = vector.extract_strided_slice %10 {offsets = [0, 96], sizes = [8, 32], strides = [1, 1]} : vector<8x128xf32> to vector<8x32xf32>
    %20 = arith.mulf %17, %4 : vector<8x32xf32>
    %21 = arith.mulf %16, %19 : vector<8x32xf32>
    %22 = arith.addf %20, %21 : vector<8x32xf32>
    %23 = math.tanh %22 : vector<8x32xf32>
    %24 = arith.mulf %18, %23 : vector<8x32xf32>
    %c0_11 = arith.constant 0 : index
    %c0_12 = arith.constant 0 : index
    %c0_13 = arith.constant 0 : index
    %25 = vector.load %arg4[%c0_11, %c0_12, %c0_13] : memref<1x8x512xf32, #tpu.memory_space<vmem>>, vector<1x8x32xf32>
    %26 = vector.shape_cast %25 : vector<1x8x32xf32> to vector<8x32xf32>
    %27 = vector.shape_cast %24 : vector<8x32xf32> to vector<1x8x32xf32>
    tpu.vector_store %arg4[%c0_11, %c0_12, %c0_13], %27 {strides = array<i32>} : memref<1x8x512xf32, #tpu.memory_space<vmem>>, vector<1x8x32xf32>,
    %c1 = arith.constant 1 : index
    %c0_14 = arith.constant 0 : index
    %c0_15 = arith.constant 0 : index
    %28 = vector.load %arg2[%c1, %c0_14, %c0_15] : memref<16x8x128xf32, #tpu.memory_space<vmem>>, vector<1x8x128xf32>
    %29 = vector.shape_cast %28 : vector<1x8x128xf32> to vector<8x128xf32>
    %cst_16 = arith.constant dense<0.000000e+00> : vector<8x128xf32>
    %30 = tpu.matmul %24, %5, %cst_16 {dimension_numbers = #tpu.dot_dimension_numbers<[1], [0], [0], [1], [0, 0, 1, 1], [], []>, precision = #tpu.contract_precision<fp32>} : vector<8x32xf32>, vector<32x128xf32>, vector<8x128xf32> -> vector<8x128xf32>
    %31 = arith.addf %29, %30 : vector<8x128xf32>
    %32 = math.tanh %31 : vector<8x128xf32>
    %33 = vector.extract_strided_slice %32 {offsets = [0, 0], sizes = [8, 96], strides = [1, 1]} : vector<8x128xf32> to vector<8x96xf32>
    %cst_17 = arith.constant 5.000000e-01 : f32
    %34 = vector.broadcast %cst_17 : f32 to vector<8x96xf32>
    %35 = arith.mulf %34, %33 : vector<8x96xf32>
    %cst_18 = arith.constant 5.000000e-01 : f32
    %36 = vector.broadcast %cst_18 : f32 to vector<8x96xf32>
    %37 = arith.addf %35, %36 : vector<8x96xf32>
    %38 = vector.extract_strided_slice %37 {offsets = [0, 0], sizes = [8, 32], strides = [1, 1]} : vector<8x96xf32> to vector<8x32xf32>
    %39 = vector.extract_strided_slice %37 {offsets = [0, 32], sizes = [8, 32], strides = [1, 1]} : vector<8x96xf32> to vector<8x32xf32>
    %40 = vector.extract_strided_slice %37 {offsets = [0, 64], sizes = [8, 32], strides = [1, 1]} : vector<8x96xf32> to vector<8x32xf32>
    %41 = vector.extract_strided_slice %32 {offsets = [0, 96], sizes = [8, 32], strides = [1, 1]} : vector<8x128xf32> to vector<8x32xf32>
    %42 = arith.mulf %39, %22 : vector<8x32xf32>
    %43 = arith.mulf %38, %41 : vector<8x32xf32>
    %44 = arith.addf %42, %43 : vector<8x32xf32>
    %45 = math.tanh %44 : vector<8x32xf32>
    %46 = arith.mulf %40, %45 : vector<8x32xf32>
    %c0_19 = arith.constant 0 : index
    %c0_20 = arith.constant 0 : index
    %c32 = arith.constant 32 : index
    %47 = vector.load %arg4[%c0_19, %c0_20, %c32] : memref<1x8x512xf32, #tpu.memory_space<vmem>>, vector<1x8x32xf32>
    %48 = vector.shape_cast %47 : vector<1x8x32xf32> to vector<8x32xf32>
    %49 = vector.shape_cast %46 : vector<8x32xf32> to vector<1x8x32xf32>
    tpu.vector_store %arg4[%c0_19, %c0_20, %c32], %49 {strides = array<i32>} : memref<1x8x512xf32, #tpu.memory_space<vmem>>, vector<1x8x32xf32>,
    %c2 = arith.constant 2 : index
    %c0_21 = arith.constant 0 : index
    %c0_22 = arith.constant 0 : index
    %50 = vector.load %arg2[%c2, %c0_21, %c0_22] : memref<16x8x128xf32, #tpu.memory_space<vmem>>, vector<1x8x128xf32>
    %51 = vector.shape_cast %50 : vector<1x8x128xf32> to vector<8x128xf32>
    %cst_23 = arith.constant dense<0.000000e+00> : vector<8x128xf32>
    %52 = tpu.matmul %46, %5, %cst_23 {dimension_numbers = #tpu.dot_dimension_numbers<[1], [0], [0], [1], [0, 0, 1, 1], [], []>, precision = #tpu.contract_precision<fp32>} : vector<8x32xf32>, vector<32x128xf32>, vector<8x128xf32> -> vector<8x128xf32>
    %53 = arith.addf %51, %52 : vector<8x128xf32>
    %54 = math.tanh %53 : vector<8x128xf32>
    %55 = vector.extract_strided_slice %54 {offsets = [0, 0], sizes = [8, 96], strides = [1, 1]} : vector<8x128xf32> to vector<8x96xf32>
    %cst_24 = arith.constant 5.000000e-01 : f32
    %56 = vector.broadcast %cst_24 : f32 to vector<8x96xf32>
    %57 = arith.mulf %56, %55 : vector<8x96xf32>
    %cst_25 = arith.constant 5.000000e-01 : f32
    %58 = vector.broadcast %cst_25 : f32 to vector<8x96xf32>
    %59 = arith.addf %57, %58 : vector<8x96xf32>
    %60 = vector.extract_strided_slice %59 {offsets = [0, 0], sizes = [8, 32], strides = [1, 1]} : vector<8x96xf32> to vector<8x32xf32>
    %61 = vector.extract_strided_slice %59 {offsets = [0, 32], sizes = [8, 32], strides = [1, 1]} : vector<8x96xf32> to vector<8x32xf32>
    %62 = vector.extract_strided_slice %59 {offsets = [0, 64], sizes = [8, 32], strides = [1, 1]} : vector<8x96xf32> to vector<8x32xf32>
    %63 = vector.extract_strided_slice %54 {offsets = [0, 96], sizes = [8, 32], strides = [1, 1]} : vector<8x128xf32> to vector<8x32xf32>
    %64 = arith.mulf %61, %44 : vector<8x32xf32>
    %65 = arith.mulf %60, %63 : vector<8x32xf32>
    %66 = arith.addf %64, %65 : vector<8x32xf32>
    %67 = math.tanh %66 : vector<8x32xf32>
    %68 = arith.mulf %62, %67 : vector<8x32xf32>
    %c0_26 = arith.constant 0 : index
    %c0_27 = arith.constant 0 : index
    %c64 = arith.constant 64 : index
    %69 = vector.load %arg4[%c0_26, %c0_27, %c64] : memref<1x8x512xf32, #tpu.memory_space<vmem>>, vector<1x8x32xf32>
    %70 = vector.shape_cast %69 : vector<1x8x32xf32> to vector<8x32xf32>
    %71 = vector.shape_cast %68 : vector<8x32xf32> to vector<1x8x32xf32>
    tpu.vector_store %arg4[%c0_26, %c0_27, %c64], %71 {strides = array<i32>} : memref<1x8x512xf32, #tpu.memory_space<vmem>>, vector<1x8x32xf32>,
    %c3 = arith.constant 3 : index
    %c0_28 = arith.constant 0 : index
    %c0_29 = arith.constant 0 : index
    %72 = vector.load %arg2[%c3, %c0_28, %c0_29] : memref<16x8x128xf32, #tpu.memory_space<vmem>>, vector<1x8x128xf32>
    %73 = vector.shape_cast %72 : vector<1x8x128xf32> to vector<8x128xf32>
    %cst_30 = arith.constant dense<0.000000e+00> : vector<8x128xf32>
    %74 = tpu.matmul %68, %5, %cst_30 {dimension_numbers = #tpu.dot_dimension_numbers<[1], [0], [0], [1], [0, 0, 1, 1], [], []>, precision = #tpu.contract_precision<fp32>} : vector<8x32xf32>, vector<32x128xf32>, vector<8x128xf32> -> vector<8x128xf32>
    %75 = arith.addf %73, %74 : vector<8x128xf32>
    %76 = math.tanh %75 : vector<8x128xf32>
    %77 = vector.extract_strided_slice %76 {offsets = [0, 0], sizes = [8, 96], strides = [1, 1]} : vector<8x128xf32> to vector<8x96xf32>
    %cst_31 = arith.constant 5.000000e-01 : f32
    %78 = vector.broadcast %cst_31 : f32 to vector<8x96xf32>
    %79 = arith.mulf %78, %77 : vector<8x96xf32>
    %cst_32 = arith.constant 5.000000e-01 : f32
    %80 = vector.broadcast %cst_32 : f32 to vector<8x96xf32>
    %81 = arith.addf %79, %80 : vector<8x96xf32>
    %82 = vector.extract_strided_slice %81 {offsets = [0, 0], sizes = [8, 32], strides = [1, 1]} : vector<8x96xf32> to vector<8x32xf32>
    %83 = vector.extract_strided_slice %81 {offsets = [0, 32], sizes = [8, 32], strides = [1, 1]} : vector<8x96xf32> to vector<8x32xf32>
    %84 = vector.extract_strided_slice %81 {offsets = [0, 64], sizes = [8, 32], strides = [1, 1]} : vector<8x96xf32> to vector<8x32xf32>
    %85 = vector.extract_strided_slice %76 {offsets = [0, 96], sizes = [8, 32], strides = [1, 1]} : vector<8x128xf32> to vector<8x32xf32>
    %86 = arith.mulf %83, %66 : vector<8x32xf32>
    %87 = arith.mulf %82, %85 : vector<8x32xf32>
    %88 = arith.addf %86, %87 : vector<8x32xf32>
    %89 = math.tanh %88 : vector<8x32xf32>
    %90 = arith.mulf %84, %89 : vector<8x32xf32>
    %c0_33 = arith.constant 0 : index
    %c0_34 = arith.constant 0 : index
    %c96 = arith.constant 96 : index
    %91 = vector.load %arg4[%c0_33, %c0_34, %c96] : memref<1x8x512xf32, #tpu.memory_space<vmem>>, vector<1x8x32xf32>
    %92 = vector.shape_cast %91 : vector<1x8x32xf32> to vector<8x32xf32>
    %93 = vector.shape_cast %90 : vector<8x32xf32> to vector<1x8x32xf32>
    tpu.vector_store %arg4[%c0_33, %c0_34, %c96], %93 {strides = array<i32>} : memref<1x8x512xf32, #tpu.memory_space<vmem>>, vector<1x8x32xf32>,
    %c4 = arith.constant 4 : index
    %c0_35 = arith.constant 0 : index
    %c0_36 = arith.constant 0 : index
    %94 = vector.load %arg2[%c4, %c0_35, %c0_36] : memref<16x8x128xf32, #tpu.memory_space<vmem>>, vector<1x8x128xf32>
    %95 = vector.shape_cast %94 : vector<1x8x128xf32> to vector<8x128xf32>
    %cst_37 = arith.constant dense<0.000000e+00> : vector<8x128xf32>
    %96 = tpu.matmul %90, %5, %cst_37 {dimension_numbers = #tpu.dot_dimension_numbers<[1], [0], [0], [1], [0, 0, 1, 1], [], []>, precision = #tpu.contract_precision<fp32>} : vector<8x32xf32>, vector<32x128xf32>, vector<8x128xf32> -> vector<8x128xf32>
    %97 = arith.addf %95, %96 : vector<8x128xf32>
    %98 = math.tanh %97 : vector<8x128xf32>
    %99 = vector.extract_strided_slice %98 {offsets = [0, 0], sizes = [8, 96], strides = [1, 1]} : vector<8x128xf32> to vector<8x96xf32>
    %cst_38 = arith.constant 5.000000e-01 : f32
    %100 = vector.broadcast %cst_38 : f32 to vector<8x96xf32>
    %101 = arith.mulf %100, %99 : vector<8x96xf32>
    %cst_39 = arith.constant 5.000000e-01 : f32
    %102 = vector.broadcast %cst_39 : f32 to vector<8x96xf32>
    %103 = arith.addf %101, %102 : vector<8x96xf32>
    %104 = vector.extract_strided_slice %103 {offsets = [0, 0], sizes = [8, 32], strides = [1, 1]} : vector<8x96xf32> to vector<8x32xf32>
    %105 = vector.extract_strided_slice %103 {offsets = [0, 32], sizes = [8, 32], strides = [1, 1]} : vector<8x96xf32> to vector<8x32xf32>
    %106 = vector.extract_strided_slice %103 {offsets = [0, 64], sizes = [8, 32], strides = [1, 1]} : vector<8x96xf32> to vector<8x32xf32>
    %107 = vector.extract_strided_slice %98 {offsets = [0, 96], sizes = [8, 32], strides = [1, 1]} : vector<8x128xf32> to vector<8x32xf32>
    %108 = arith.mulf %105, %88 : vector<8x32xf32>
    %109 = arith.mulf %104, %107 : vector<8x32xf32>
    %110 = arith.addf %108, %109 : vector<8x32xf32>
    %111 = math.tanh %110 : vector<8x32xf32>
    %112 = arith.mulf %106, %111 : vector<8x32xf32>
    %c0_40 = arith.constant 0 : index
    %c0_41 = arith.constant 0 : index
    %c128 = arith.constant 128 : index
    %113 = vector.load %arg4[%c0_40, %c0_41, %c128] : memref<1x8x512xf32, #tpu.memory_space<vmem>>, vector<1x8x32xf32>
    %114 = vector.shape_cast %113 : vector<1x8x32xf32> to vector<8x32xf32>
    %115 = vector.shape_cast %112 : vector<8x32xf32> to vector<1x8x32xf32>
    tpu.vector_store %arg4[%c0_40, %c0_41, %c128], %115 {strides = array<i32>} : memref<1x8x512xf32, #tpu.memory_space<vmem>>, vector<1x8x32xf32>,
    %c5 = arith.constant 5 : index
    %c0_42 = arith.constant 0 : index
    %c0_43 = arith.constant 0 : index
    %116 = vector.load %arg2[%c5, %c0_42, %c0_43] : memref<16x8x128xf32, #tpu.memory_space<vmem>>, vector<1x8x128xf32>
    %117 = vector.shape_cast %116 : vector<1x8x128xf32> to vector<8x128xf32>
    %cst_44 = arith.constant dense<0.000000e+00> : vector<8x128xf32>
    %118 = tpu.matmul %112, %5, %cst_44 {dimension_numbers = #tpu.dot_dimension_numbers<[1], [0], [0], [1], [0, 0, 1, 1], [], []>, precision = #tpu.contract_precision<fp32>} : vector<8x32xf32>, vector<32x128xf32>, vector<8x128xf32> -> vector<8x128xf32>
    %119 = arith.addf %117, %118 : vector<8x128xf32>
    %120 = math.tanh %119 : vector<8x128xf32>
    %121 = vector.extract_strided_slice %120 {offsets = [0, 0], sizes = [8, 96], strides = [1, 1]} : vector<8x128xf32> to vector<8x96xf32>
    %cst_45 = arith.constant 5.000000e-01 : f32
    %122 = vector.broadcast %cst_45 : f32 to vector<8x96xf32>
    %123 = arith.mulf %122, %121 : vector<8x96xf32>
    %cst_46 = arith.constant 5.000000e-01 : f32
    %124 = vector.broadcast %cst_46 : f32 to vector<8x96xf32>
    %125 = arith.addf %123, %124 : vector<8x96xf32>
    %126 = vector.extract_strided_slice %125 {offsets = [0, 0], sizes = [8, 32], strides = [1, 1]} : vector<8x96xf32> to vector<8x32xf32>
    %127 = vector.extract_strided_slice %125 {offsets = [0, 32], sizes = [8, 32], strides = [1, 1]} : vector<8x96xf32> to vector<8x32xf32>
    %128 = vector.extract_strided_slice %125 {offsets = [0, 64], sizes = [8, 32], strides = [1, 1]} : vector<8x96xf32> to vector<8x32xf32>
    %129 = vector.extract_strided_slice %120 {offsets = [0, 96], sizes = [8, 32], strides = [1, 1]} : vector<8x128xf32> to vector<8x32xf32>
    %130 = arith.mulf %127, %110 : vector<8x32xf32>
    %131 = arith.mulf %126, %129 : vector<8x32xf32>
    %132 = arith.addf %130, %131 : vector<8x32xf32>
    %133 = math.tanh %132 : vector<8x32xf32>
    %134 = arith.mulf %128, %133 : vector<8x32xf32>
    %c0_47 = arith.constant 0 : index
    %c0_48 = arith.constant 0 : index
    %c160 = arith.constant 160 : index
    %135 = vector.load %arg4[%c0_47, %c0_48, %c160] : memref<1x8x512xf32, #tpu.memory_space<vmem>>, vector<1x8x32xf32>
    %136 = vector.shape_cast %135 : vector<1x8x32xf32> to vector<8x32xf32>
    %137 = vector.shape_cast %134 : vector<8x32xf32> to vector<1x8x32xf32>
    tpu.vector_store %arg4[%c0_47, %c0_48, %c160], %137 {strides = array<i32>} : memref<1x8x512xf32, #tpu.memory_space<vmem>>, vector<1x8x32xf32>,
    %c6 = arith.constant 6 : index
    %c0_49 = arith.constant 0 : index
    %c0_50 = arith.constant 0 : index
    %138 = vector.load %arg2[%c6, %c0_49, %c0_50] : memref<16x8x128xf32, #tpu.memory_space<vmem>>, vector<1x8x128xf32>
    %139 = vector.shape_cast %138 : vector<1x8x128xf32> to vector<8x128xf32>
    %cst_51 = arith.constant dense<0.000000e+00> : vector<8x128xf32>
    %140 = tpu.matmul %134, %5, %cst_51 {dimension_numbers = #tpu.dot_dimension_numbers<[1], [0], [0], [1], [0, 0, 1, 1], [], []>, precision = #tpu.contract_precision<fp32>} : vector<8x32xf32>, vector<32x128xf32>, vector<8x128xf32> -> vector<8x128xf32>
    %141 = arith.addf %139, %140 : vector<8x128xf32>
    %142 = math.tanh %141 : vector<8x128xf32>
    %143 = vector.extract_strided_slice %142 {offsets = [0, 0], sizes = [8, 96], strides = [1, 1]} : vector<8x128xf32> to vector<8x96xf32>
    %cst_52 = arith.constant 5.000000e-01 : f32
    %144 = vector.broadcast %cst_52 : f32 to vector<8x96xf32>
    %145 = arith.mulf %144, %143 : vector<8x96xf32>
    %cst_53 = arith.constant 5.000000e-01 : f32
    %146 = vector.broadcast %cst_53 : f32 to vector<8x96xf32>
    %147 = arith.addf %145, %146 : vector<8x96xf32>
    %148 = vector.extract_strided_slice %147 {offsets = [0, 0], sizes = [8, 32], strides = [1, 1]} : vector<8x96xf32> to vector<8x32xf32>
    %149 = vector.extract_strided_slice %147 {offsets = [0, 32], sizes = [8, 32], strides = [1, 1]} : vector<8x96xf32> to vector<8x32xf32>
    %150 = vector.extract_strided_slice %147 {offsets = [0, 64], sizes = [8, 32], strides = [1, 1]} : vector<8x96xf32> to vector<8x32xf32>
    %151 = vector.extract_strided_slice %142 {offsets = [0, 96], sizes = [8, 32], strides = [1, 1]} : vector<8x128xf32> to vector<8x32xf32>
    %152 = arith.mulf %149, %132 : vector<8x32xf32>
    %153 = arith.mulf %148, %151 : vector<8x32xf32>
    %154 = arith.addf %152, %153 : vector<8x32xf32>
    %155 = math.tanh %154 : vector<8x32xf32>
    %156 = arith.mulf %150, %155 : vector<8x32xf32>
    %c0_54 = arith.constant 0 : index
    %c0_55 = arith.constant 0 : index
    %c192 = arith.constant 192 : index
    %157 = vector.load %arg4[%c0_54, %c0_55, %c192] : memref<1x8x512xf32, #tpu.memory_space<vmem>>, vector<1x8x32xf32>
    %158 = vector.shape_cast %157 : vector<1x8x32xf32> to vector<8x32xf32>
    %159 = vector.shape_cast %156 : vector<8x32xf32> to vector<1x8x32xf32>
    tpu.vector_store %arg4[%c0_54, %c0_55, %c192], %159 {strides = array<i32>} : memref<1x8x512xf32, #tpu.memory_space<vmem>>, vector<1x8x32xf32>,
    %c7 = arith.constant 7 : index
    %c0_56 = arith.constant 0 : index
    %c0_57 = arith.constant 0 : index
    %160 = vector.load %arg2[%c7, %c0_56, %c0_57] : memref<16x8x128xf32, #tpu.memory_space<vmem>>, vector<1x8x128xf32>
    %161 = vector.shape_cast %160 : vector<1x8x128xf32> to vector<8x128xf32>
    %cst_58 = arith.constant dense<0.000000e+00> : vector<8x128xf32>
    %162 = tpu.matmul %156, %5, %cst_58 {dimension_numbers = #tpu.dot_dimension_numbers<[1], [0], [0], [1], [0, 0, 1, 1], [], []>, precision = #tpu.contract_precision<fp32>} : vector<8x32xf32>, vector<32x128xf32>, vector<8x128xf32> -> vector<8x128xf32>
    %163 = arith.addf %161, %162 : vector<8x128xf32>
    %164 = math.tanh %163 : vector<8x128xf32>
    %165 = vector.extract_strided_slice %164 {offsets = [0, 0], sizes = [8, 96], strides = [1, 1]} : vector<8x128xf32> to vector<8x96xf32>
    %cst_59 = arith.constant 5.000000e-01 : f32
    %166 = vector.broadcast %cst_59 : f32 to vector<8x96xf32>
    %167 = arith.mulf %166, %165 : vector<8x96xf32>
    %cst_60 = arith.constant 5.000000e-01 : f32
    %168 = vector.broadcast %cst_60 : f32 to vector<8x96xf32>
    %169 = arith.addf %167, %168 : vector<8x96xf32>
    %170 = vector.extract_strided_slice %169 {offsets = [0, 0], sizes = [8, 32], strides = [1, 1]} : vector<8x96xf32> to vector<8x32xf32>
    %171 = vector.extract_strided_slice %169 {offsets = [0, 32], sizes = [8, 32], strides = [1, 1]} : vector<8x96xf32> to vector<8x32xf32>
    %172 = vector.extract_strided_slice %169 {offsets = [0, 64], sizes = [8, 32], strides = [1, 1]} : vector<8x96xf32> to vector<8x32xf32>
    %173 = vector.extract_strided_slice %164 {offsets = [0, 96], sizes = [8, 32], strides = [1, 1]} : vector<8x128xf32> to vector<8x32xf32>
    %174 = arith.mulf %171, %154 : vector<8x32xf32>
    %175 = arith.mulf %170, %173 : vector<8x32xf32>
    %176 = arith.addf %174, %175 : vector<8x32xf32>
    %177 = math.tanh %176 : vector<8x32xf32>
    %178 = arith.mulf %172, %177 : vector<8x32xf32>
    %c0_61 = arith.constant 0 : index
    %c0_62 = arith.constant 0 : index
    %c224 = arith.constant 224 : index
    %179 = vector.load %arg4[%c0_61, %c0_62, %c224] : memref<1x8x512xf32, #tpu.memory_space<vmem>>, vector<1x8x32xf32>
    %180 = vector.shape_cast %179 : vector<1x8x32xf32> to vector<8x32xf32>
    %181 = vector.shape_cast %178 : vector<8x32xf32> to vector<1x8x32xf32>
    tpu.vector_store %arg4[%c0_61, %c0_62, %c224], %181 {strides = array<i32>} : memref<1x8x512xf32, #tpu.memory_space<vmem>>, vector<1x8x32xf32>,
    %c8 = arith.constant 8 : index
    %c0_63 = arith.constant 0 : index
    %c0_64 = arith.constant 0 : index
    %182 = vector.load %arg2[%c8, %c0_63, %c0_64] : memref<16x8x128xf32, #tpu.memory_space<vmem>>, vector<1x8x128xf32>
    %183 = vector.shape_cast %182 : vector<1x8x128xf32> to vector<8x128xf32>
    %cst_65 = arith.constant dense<0.000000e+00> : vector<8x128xf32>
    %184 = tpu.matmul %178, %5, %cst_65 {dimension_numbers = #tpu.dot_dimension_numbers<[1], [0], [0], [1], [0, 0, 1, 1], [], []>, precision = #tpu.contract_precision<fp32>} : vector<8x32xf32>, vector<32x128xf32>, vector<8x128xf32> -> vector<8x128xf32>
    %185 = arith.addf %183, %184 : vector<8x128xf32>
    %186 = math.tanh %185 : vector<8x128xf32>
    %187 = vector.extract_strided_slice %186 {offsets = [0, 0], sizes = [8, 96], strides = [1, 1]} : vector<8x128xf32> to vector<8x96xf32>
    %cst_66 = arith.constant 5.000000e-01 : f32
    %188 = vector.broadcast %cst_66 : f32 to vector<8x96xf32>
    %189 = arith.mulf %188, %187 : vector<8x96xf32>
    %cst_67 = arith.constant 5.000000e-01 : f32
    %190 = vector.broadcast %cst_67 : f32 to vector<8x96xf32>
    %191 = arith.addf %189, %190 : vector<8x96xf32>
    %192 = vector.extract_strided_slice %191 {offsets = [0, 0], sizes = [8, 32], strides = [1, 1]} : vector<8x96xf32> to vector<8x32xf32>
    %193 = vector.extract_strided_slice %191 {offsets = [0, 32], sizes = [8, 32], strides = [1, 1]} : vector<8x96xf32> to vector<8x32xf32>
    %194 = vector.extract_strided_slice %191 {offsets = [0, 64], sizes = [8, 32], strides = [1, 1]} : vector<8x96xf32> to vector<8x32xf32>
    %195 = vector.extract_strided_slice %186 {offsets = [0, 96], sizes = [8, 32], strides = [1, 1]} : vector<8x128xf32> to vector<8x32xf32>
    %196 = arith.mulf %193, %176 : vector<8x32xf32>
    %197 = arith.mulf %192, %195 : vector<8x32xf32>
    %198 = arith.addf %196, %197 : vector<8x32xf32>
    %199 = math.tanh %198 : vector<8x32xf32>
    %200 = arith.mulf %194, %199 : vector<8x32xf32>
    %c0_68 = arith.constant 0 : index
    %c0_69 = arith.constant 0 : index
    %c256 = arith.constant 256 : index
    %201 = vector.load %arg4[%c0_68, %c0_69, %c256] : memref<1x8x512xf32, #tpu.memory_space<vmem>>, vector<1x8x32xf32>
    %202 = vector.shape_cast %201 : vector<1x8x32xf32> to vector<8x32xf32>
    %203 = vector.shape_cast %200 : vector<8x32xf32> to vector<1x8x32xf32>
    tpu.vector_store %arg4[%c0_68, %c0_69, %c256], %203 {strides = array<i32>} : memref<1x8x512xf32, #tpu.memory_space<vmem>>, vector<1x8x32xf32>,
    %c9 = arith.constant 9 : index
    %c0_70 = arith.constant 0 : index
    %c0_71 = arith.constant 0 : index
    %204 = vector.load %arg2[%c9, %c0_70, %c0_71] : memref<16x8x128xf32, #tpu.memory_space<vmem>>, vector<1x8x128xf32>
    %205 = vector.shape_cast %204 : vector<1x8x128xf32> to vector<8x128xf32>
    %cst_72 = arith.constant dense<0.000000e+00> : vector<8x128xf32>
    %206 = tpu.matmul %200, %5, %cst_72 {dimension_numbers = #tpu.dot_dimension_numbers<[1], [0], [0], [1], [0, 0, 1, 1], [], []>, precision = #tpu.contract_precision<fp32>} : vector<8x32xf32>, vector<32x128xf32>, vector<8x128xf32> -> vector<8x128xf32>
    %207 = arith.addf %205, %206 : vector<8x128xf32>
    %208 = math.tanh %207 : vector<8x128xf32>
    %209 = vector.extract_strided_slice %208 {offsets = [0, 0], sizes = [8, 96], strides = [1, 1]} : vector<8x128xf32> to vector<8x96xf32>
    %cst_73 = arith.constant 5.000000e-01 : f32
    %210 = vector.broadcast %cst_73 : f32 to vector<8x96xf32>
    %211 = arith.mulf %210, %209 : vector<8x96xf32>
    %cst_74 = arith.constant 5.000000e-01 : f32
    %212 = vector.broadcast %cst_74 : f32 to vector<8x96xf32>
    %213 = arith.addf %211, %212 : vector<8x96xf32>
    %214 = vector.extract_strided_slice %213 {offsets = [0, 0], sizes = [8, 32], strides = [1, 1]} : vector<8x96xf32> to vector<8x32xf32>
    %215 = vector.extract_strided_slice %213 {offsets = [0, 32], sizes = [8, 32], strides = [1, 1]} : vector<8x96xf32> to vector<8x32xf32>
    %216 = vector.extract_strided_slice %213 {offsets = [0, 64], sizes = [8, 32], strides = [1, 1]} : vector<8x96xf32> to vector<8x32xf32>
    %217 = vector.extract_strided_slice %208 {offsets = [0, 96], sizes = [8, 32], strides = [1, 1]} : vector<8x128xf32> to vector<8x32xf32>
    %218 = arith.mulf %215, %198 : vector<8x32xf32>
    %219 = arith.mulf %214, %217 : vector<8x32xf32>
    %220 = arith.addf %218, %219 : vector<8x32xf32>
    %221 = math.tanh %220 : vector<8x32xf32>
    %222 = arith.mulf %216, %221 : vector<8x32xf32>
    %c0_75 = arith.constant 0 : index
    %c0_76 = arith.constant 0 : index
    %c288 = arith.constant 288 : index
    %223 = vector.load %arg4[%c0_75, %c0_76, %c288] : memref<1x8x512xf32, #tpu.memory_space<vmem>>, vector<1x8x32xf32>
    %224 = vector.shape_cast %223 : vector<1x8x32xf32> to vector<8x32xf32>
    %225 = vector.shape_cast %222 : vector<8x32xf32> to vector<1x8x32xf32>
    tpu.vector_store %arg4[%c0_75, %c0_76, %c288], %225 {strides = array<i32>} : memref<1x8x512xf32, #tpu.memory_space<vmem>>, vector<1x8x32xf32>,
    %c10 = arith.constant 10 : index
    %c0_77 = arith.constant 0 : index
    %c0_78 = arith.constant 0 : index
    %226 = vector.load %arg2[%c10, %c0_77, %c0_78] : memref<16x8x128xf32, #tpu.memory_space<vmem>>, vector<1x8x128xf32>
    %227 = vector.shape_cast %226 : vector<1x8x128xf32> to vector<8x128xf32>
    %cst_79 = arith.constant dense<0.000000e+00> : vector<8x128xf32>
    %228 = tpu.matmul %222, %5, %cst_79 {dimension_numbers = #tpu.dot_dimension_numbers<[1], [0], [0], [1], [0, 0, 1, 1], [], []>, precision = #tpu.contract_precision<fp32>} : vector<8x32xf32>, vector<32x128xf32>, vector<8x128xf32> -> vector<8x128xf32>
    %229 = arith.addf %227, %228 : vector<8x128xf32>
    %230 = math.tanh %229 : vector<8x128xf32>
    %231 = vector.extract_strided_slice %230 {offsets = [0, 0], sizes = [8, 96], strides = [1, 1]} : vector<8x128xf32> to vector<8x96xf32>
    %cst_80 = arith.constant 5.000000e-01 : f32
    %232 = vector.broadcast %cst_80 : f32 to vector<8x96xf32>
    %233 = arith.mulf %232, %231 : vector<8x96xf32>
    %cst_81 = arith.constant 5.000000e-01 : f32
    %234 = vector.broadcast %cst_81 : f32 to vector<8x96xf32>
    %235 = arith.addf %233, %234 : vector<8x96xf32>
    %236 = vector.extract_strided_slice %235 {offsets = [0, 0], sizes = [8, 32], strides = [1, 1]} : vector<8x96xf32> to vector<8x32xf32>
    %237 = vector.extract_strided_slice %235 {offsets = [0, 32], sizes = [8, 32], strides = [1, 1]} : vector<8x96xf32> to vector<8x32xf32>
    %238 = vector.extract_strided_slice %235 {offsets = [0, 64], sizes = [8, 32], strides = [1, 1]} : vector<8x96xf32> to vector<8x32xf32>
    %239 = vector.extract_strided_slice %230 {offsets = [0, 96], sizes = [8, 32], strides = [1, 1]} : vector<8x128xf32> to vector<8x32xf32>
    %240 = arith.mulf %237, %220 : vector<8x32xf32>
    %241 = arith.mulf %236, %239 : vector<8x32xf32>
    %242 = arith.addf %240, %241 : vector<8x32xf32>
    %243 = math.tanh %242 : vector<8x32xf32>
    %244 = arith.mulf %238, %243 : vector<8x32xf32>
    %c0_82 = arith.constant 0 : index
    %c0_83 = arith.constant 0 : index
    %c320 = arith.constant 320 : index
    %245 = vector.load %arg4[%c0_82, %c0_83, %c320] : memref<1x8x512xf32, #tpu.memory_space<vmem>>, vector<1x8x32xf32>
    %246 = vector.shape_cast %245 : vector<1x8x32xf32> to vector<8x32xf32>
    %247 = vector.shape_cast %244 : vector<8x32xf32> to vector<1x8x32xf32>
    tpu.vector_store %arg4[%c0_82, %c0_83, %c320], %247 {strides = array<i32>} : memref<1x8x512xf32, #tpu.memory_space<vmem>>, vector<1x8x32xf32>,
    %c11 = arith.constant 11 : index
    %c0_84 = arith.constant 0 : index
    %c0_85 = arith.constant 0 : index
    %248 = vector.load %arg2[%c11, %c0_84, %c0_85] : memref<16x8x128xf32, #tpu.memory_space<vmem>>, vector<1x8x128xf32>
    %249 = vector.shape_cast %248 : vector<1x8x128xf32> to vector<8x128xf32>
    %cst_86 = arith.constant dense<0.000000e+00> : vector<8x128xf32>
    %250 = tpu.matmul %244, %5, %cst_86 {dimension_numbers = #tpu.dot_dimension_numbers<[1], [0], [0], [1], [0, 0, 1, 1], [], []>, precision = #tpu.contract_precision<fp32>} : vector<8x32xf32>, vector<32x128xf32>, vector<8x128xf32> -> vector<8x128xf32>
    %251 = arith.addf %249, %250 : vector<8x128xf32>
    %252 = math.tanh %251 : vector<8x128xf32>
    %253 = vector.extract_strided_slice %252 {offsets = [0, 0], sizes = [8, 96], strides = [1, 1]} : vector<8x128xf32> to vector<8x96xf32>
    %cst_87 = arith.constant 5.000000e-01 : f32
    %254 = vector.broadcast %cst_87 : f32 to vector<8x96xf32>
    %255 = arith.mulf %254, %253 : vector<8x96xf32>
    %cst_88 = arith.constant 5.000000e-01 : f32
    %256 = vector.broadcast %cst_88 : f32 to vector<8x96xf32>
    %257 = arith.addf %255, %256 : vector<8x96xf32>
    %258 = vector.extract_strided_slice %257 {offsets = [0, 0], sizes = [8, 32], strides = [1, 1]} : vector<8x96xf32> to vector<8x32xf32>
    %259 = vector.extract_strided_slice %257 {offsets = [0, 32], sizes = [8, 32], strides = [1, 1]} : vector<8x96xf32> to vector<8x32xf32>
    %260 = vector.extract_strided_slice %257 {offsets = [0, 64], sizes = [8, 32], strides = [1, 1]} : vector<8x96xf32> to vector<8x32xf32>
    %261 = vector.extract_strided_slice %252 {offsets = [0, 96], sizes = [8, 32], strides = [1, 1]} : vector<8x128xf32> to vector<8x32xf32>
    %262 = arith.mulf %259, %242 : vector<8x32xf32>
    %263 = arith.mulf %258, %261 : vector<8x32xf32>
    %264 = arith.addf %262, %263 : vector<8x32xf32>
    %265 = math.tanh %264 : vector<8x32xf32>
    %266 = arith.mulf %260, %265 : vector<8x32xf32>
    %c0_89 = arith.constant 0 : index
    %c0_90 = arith.constant 0 : index
    %c352 = arith.constant 352 : index
    %267 = vector.load %arg4[%c0_89, %c0_90, %c352] : memref<1x8x512xf32, #tpu.memory_space<vmem>>, vector<1x8x32xf32>
    %268 = vector.shape_cast %267 : vector<1x8x32xf32> to vector<8x32xf32>
    %269 = vector.shape_cast %266 : vector<8x32xf32> to vector<1x8x32xf32>
    tpu.vector_store %arg4[%c0_89, %c0_90, %c352], %269 {strides = array<i32>} : memref<1x8x512xf32, #tpu.memory_space<vmem>>, vector<1x8x32xf32>,
    %c12 = arith.constant 12 : index
    %c0_91 = arith.constant 0 : index
    %c0_92 = arith.constant 0 : index
    %270 = vector.load %arg2[%c12, %c0_91, %c0_92] : memref<16x8x128xf32, #tpu.memory_space<vmem>>, vector<1x8x128xf32>
    %271 = vector.shape_cast %270 : vector<1x8x128xf32> to vector<8x128xf32>
    %cst_93 = arith.constant dense<0.000000e+00> : vector<8x128xf32>
    %272 = tpu.matmul %266, %5, %cst_93 {dimension_numbers = #tpu.dot_dimension_numbers<[1], [0], [0], [1], [0, 0, 1, 1], [], []>, precision = #tpu.contract_precision<fp32>} : vector<8x32xf32>, vector<32x128xf32>, vector<8x128xf32> -> vector<8x128xf32>
    %273 = arith.addf %271, %272 : vector<8x128xf32>
    %274 = math.tanh %273 : vector<8x128xf32>
    %275 = vector.extract_strided_slice %274 {offsets = [0, 0], sizes = [8, 96], strides = [1, 1]} : vector<8x128xf32> to vector<8x96xf32>
    %cst_94 = arith.constant 5.000000e-01 : f32
    %276 = vector.broadcast %cst_94 : f32 to vector<8x96xf32>
    %277 = arith.mulf %276, %275 : vector<8x96xf32>
    %cst_95 = arith.constant 5.000000e-01 : f32
    %278 = vector.broadcast %cst_95 : f32 to vector<8x96xf32>
    %279 = arith.addf %277, %278 : vector<8x96xf32>
    %280 = vector.extract_strided_slice %279 {offsets = [0, 0], sizes = [8, 32], strides = [1, 1]} : vector<8x96xf32> to vector<8x32xf32>
    %281 = vector.extract_strided_slice %279 {offsets = [0, 32], sizes = [8, 32], strides = [1, 1]} : vector<8x96xf32> to vector<8x32xf32>
    %282 = vector.extract_strided_slice %279 {offsets = [0, 64], sizes = [8, 32], strides = [1, 1]} : vector<8x96xf32> to vector<8x32xf32>
    %283 = vector.extract_strided_slice %274 {offsets = [0, 96], sizes = [8, 32], strides = [1, 1]} : vector<8x128xf32> to vector<8x32xf32>
    %284 = arith.mulf %281, %264 : vector<8x32xf32>
    %285 = arith.mulf %280, %283 : vector<8x32xf32>
    %286 = arith.addf %284, %285 : vector<8x32xf32>
    %287 = math.tanh %286 : vector<8x32xf32>
    %288 = arith.mulf %282, %287 : vector<8x32xf32>
    %c0_96 = arith.constant 0 : index
    %c0_97 = arith.constant 0 : index
    %c384 = arith.constant 384 : index
    %289 = vector.load %arg4[%c0_96, %c0_97, %c384] : memref<1x8x512xf32, #tpu.memory_space<vmem>>, vector<1x8x32xf32>
    %290 = vector.shape_cast %289 : vector<1x8x32xf32> to vector<8x32xf32>
    %291 = vector.shape_cast %288 : vector<8x32xf32> to vector<1x8x32xf32>
    tpu.vector_store %arg4[%c0_96, %c0_97, %c384], %291 {strides = array<i32>} : memref<1x8x512xf32, #tpu.memory_space<vmem>>, vector<1x8x32xf32>,
    %c13 = arith.constant 13 : index
    %c0_98 = arith.constant 0 : index
    %c0_99 = arith.constant 0 : index
    %292 = vector.load %arg2[%c13, %c0_98, %c0_99] : memref<16x8x128xf32, #tpu.memory_space<vmem>>, vector<1x8x128xf32>
    %293 = vector.shape_cast %292 : vector<1x8x128xf32> to vector<8x128xf32>
    %cst_100 = arith.constant dense<0.000000e+00> : vector<8x128xf32>
    %294 = tpu.matmul %288, %5, %cst_100 {dimension_numbers = #tpu.dot_dimension_numbers<[1], [0], [0], [1], [0, 0, 1, 1], [], []>, precision = #tpu.contract_precision<fp32>} : vector<8x32xf32>, vector<32x128xf32>, vector<8x128xf32> -> vector<8x128xf32>
    %295 = arith.addf %293, %294 : vector<8x128xf32>
    %296 = math.tanh %295 : vector<8x128xf32>
    %297 = vector.extract_strided_slice %296 {offsets = [0, 0], sizes = [8, 96], strides = [1, 1]} : vector<8x128xf32> to vector<8x96xf32>
    %cst_101 = arith.constant 5.000000e-01 : f32
    %298 = vector.broadcast %cst_101 : f32 to vector<8x96xf32>
    %299 = arith.mulf %298, %297 : vector<8x96xf32>
    %cst_102 = arith.constant 5.000000e-01 : f32
    %300 = vector.broadcast %cst_102 : f32 to vector<8x96xf32>
    %301 = arith.addf %299, %300 : vector<8x96xf32>
    %302 = vector.extract_strided_slice %301 {offsets = [0, 0], sizes = [8, 32], strides = [1, 1]} : vector<8x96xf32> to vector<8x32xf32>
    %303 = vector.extract_strided_slice %301 {offsets = [0, 32], sizes = [8, 32], strides = [1, 1]} : vector<8x96xf32> to vector<8x32xf32>
    %304 = vector.extract_strided_slice %301 {offsets = [0, 64], sizes = [8, 32], strides = [1, 1]} : vector<8x96xf32> to vector<8x32xf32>
    %305 = vector.extract_strided_slice %296 {offsets = [0, 96], sizes = [8, 32], strides = [1, 1]} : vector<8x128xf32> to vector<8x32xf32>
    %306 = arith.mulf %303, %286 : vector<8x32xf32>
    %307 = arith.mulf %302, %305 : vector<8x32xf32>
    %308 = arith.addf %306, %307 : vector<8x32xf32>
    %309 = math.tanh %308 : vector<8x32xf32>
    %310 = arith.mulf %304, %309 : vector<8x32xf32>
    %c0_103 = arith.constant 0 : index
    %c0_104 = arith.constant 0 : index
    %c416 = arith.constant 416 : index
    %311 = vector.load %arg4[%c0_103, %c0_104, %c416] : memref<1x8x512xf32, #tpu.memory_space<vmem>>, vector<1x8x32xf32>
    %312 = vector.shape_cast %311 : vector<1x8x32xf32> to vector<8x32xf32>
    %313 = vector.shape_cast %310 : vector<8x32xf32> to vector<1x8x32xf32>
    tpu.vector_store %arg4[%c0_103, %c0_104, %c416], %313 {strides = array<i32>} : memref<1x8x512xf32, #tpu.memory_space<vmem>>, vector<1x8x32xf32>,
    %c14 = arith.constant 14 : index
    %c0_105 = arith.constant 0 : index
    %c0_106 = arith.constant 0 : index
    %314 = vector.load %arg2[%c14, %c0_105, %c0_106] : memref<16x8x128xf32, #tpu.memory_space<vmem>>, vector<1x8x128xf32>
    %315 = vector.shape_cast %314 : vector<1x8x128xf32> to vector<8x128xf32>
    %cst_107 = arith.constant dense<0.000000e+00> : vector<8x128xf32>
    %316 = tpu.matmul %310, %5, %cst_107 {dimension_numbers = #tpu.dot_dimension_numbers<[1], [0], [0], [1], [0, 0, 1, 1], [], []>, precision = #tpu.contract_precision<fp32>} : vector<8x32xf32>, vector<32x128xf32>, vector<8x128xf32> -> vector<8x128xf32>
    %317 = arith.addf %315, %316 : vector<8x128xf32>
    %318 = math.tanh %317 : vector<8x128xf32>
    %319 = vector.extract_strided_slice %318 {offsets = [0, 0], sizes = [8, 96], strides = [1, 1]} : vector<8x128xf32> to vector<8x96xf32>
    %cst_108 = arith.constant 5.000000e-01 : f32
    %320 = vector.broadcast %cst_108 : f32 to vector<8x96xf32>
    %321 = arith.mulf %320, %319 : vector<8x96xf32>
    %cst_109 = arith.constant 5.000000e-01 : f32
    %322 = vector.broadcast %cst_109 : f32 to vector<8x96xf32>
    %323 = arith.addf %321, %322 : vector<8x96xf32>
    %324 = vector.extract_strided_slice %323 {offsets = [0, 0], sizes = [8, 32], strides = [1, 1]} : vector<8x96xf32> to vector<8x32xf32>
    %325 = vector.extract_strided_slice %323 {offsets = [0, 32], sizes = [8, 32], strides = [1, 1]} : vector<8x96xf32> to vector<8x32xf32>
    %326 = vector.extract_strided_slice %323 {offsets = [0, 64], sizes = [8, 32], strides = [1, 1]} : vector<8x96xf32> to vector<8x32xf32>
    %327 = vector.extract_strided_slice %318 {offsets = [0, 96], sizes = [8, 32], strides = [1, 1]} : vector<8x128xf32> to vector<8x32xf32>
    %328 = arith.mulf %325, %308 : vector<8x32xf32>
    %329 = arith.mulf %324, %327 : vector<8x32xf32>
    %330 = arith.addf %328, %329 : vector<8x32xf32>
    %331 = math.tanh %330 : vector<8x32xf32>
    %332 = arith.mulf %326, %331 : vector<8x32xf32>
    %c0_110 = arith.constant 0 : index
    %c0_111 = arith.constant 0 : index
    %c448 = arith.constant 448 : index
    %333 = vector.load %arg4[%c0_110, %c0_111, %c448] : memref<1x8x512xf32, #tpu.memory_space<vmem>>, vector<1x8x32xf32>
    %334 = vector.shape_cast %333 : vector<1x8x32xf32> to vector<8x32xf32>
    %335 = vector.shape_cast %332 : vector<8x32xf32> to vector<1x8x32xf32>
    tpu.vector_store %arg4[%c0_110, %c0_111, %c448], %335 {strides = array<i32>} : memref<1x8x512xf32, #tpu.memory_space<vmem>>, vector<1x8x32xf32>,
    %c15 = arith.constant 15 : index
    %c0_112 = arith.constant 0 : index
    %c0_113 = arith.constant 0 : index
    %336 = vector.load %arg2[%c15, %c0_112, %c0_113] : memref<16x8x128xf32, #tpu.memory_space<vmem>>, vector<1x8x128xf32>
    %337 = vector.shape_cast %336 : vector<1x8x128xf32> to vector<8x128xf32>
    %cst_114 = arith.constant dense<0.000000e+00> : vector<8x128xf32>
    %338 = tpu.matmul %332, %5, %cst_114 {dimension_numbers = #tpu.dot_dimension_numbers<[1], [0], [0], [1], [0, 0, 1, 1], [], []>, precision = #tpu.contract_precision<fp32>} : vector<8x32xf32>, vector<32x128xf32>, vector<8x128xf32> -> vector<8x128xf32>
    %339 = arith.addf %337, %338 : vector<8x128xf32>
    %340 = math.tanh %339 : vector<8x128xf32>
    %341 = vector.extract_strided_slice %340 {offsets = [0, 0], sizes = [8, 96], strides = [1, 1]} : vector<8x128xf32> to vector<8x96xf32>
    %cst_115 = arith.constant 5.000000e-01 : f32
    %342 = vector.broadcast %cst_115 : f32 to vector<8x96xf32>
    %343 = arith.mulf %342, %341 : vector<8x96xf32>
    %cst_116 = arith.constant 5.000000e-01 : f32
    %344 = vector.broadcast %cst_116 : f32 to vector<8x96xf32>
    %345 = arith.addf %343, %344 : vector<8x96xf32>
    %346 = vector.extract_strided_slice %345 {offsets = [0, 0], sizes = [8, 32], strides = [1, 1]} : vector<8x96xf32> to vector<8x32xf32>
    %347 = vector.extract_strided_slice %345 {offsets = [0, 32], sizes = [8, 32], strides = [1, 1]} : vector<8x96xf32> to vector<8x32xf32>
    %348 = vector.extract_strided_slice %345 {offsets = [0, 64], sizes = [8, 32], strides = [1, 1]} : vector<8x96xf32> to vector<8x32xf32>
    %349 = vector.extract_strided_slice %340 {offsets = [0, 96], sizes = [8, 32], strides = [1, 1]} : vector<8x128xf32> to vector<8x32xf32>
    %350 = arith.mulf %347, %330 : vector<8x32xf32>
    %351 = arith.mulf %346, %349 : vector<8x32xf32>
    %352 = arith.addf %350, %351 : vector<8x32xf32>
    %353 = math.tanh %352 : vector<8x32xf32>
    %354 = arith.mulf %348, %353 : vector<8x32xf32>
    %c0_117 = arith.constant 0 : index
    %c0_118 = arith.constant 0 : index
    %c480 = arith.constant 480 : index
    %355 = vector.load %arg4[%c0_117, %c0_118, %c480] : memref<1x8x512xf32, #tpu.memory_space<vmem>>, vector<1x8x32xf32>
    %356 = vector.shape_cast %355 : vector<1x8x32xf32> to vector<8x32xf32>
    %357 = vector.shape_cast %354 : vector<8x32xf32> to vector<1x8x32xf32>
    tpu.vector_store %arg4[%c0_117, %c0_118, %c480], %357 {strides = array<i32>} : memref<1x8x512xf32, #tpu.memory_space<vmem>>, vector<1x8x32xf32>,
    %c0_119 = arith.constant 0 : index
    %c0_120 = arith.constant 0 : index
    %358 = vector.load %arg5[%c0_119, %c0_120] : memref<8x32xf32, #tpu.memory_space<vmem>>, vector<8x32xf32>
    tpu.vector_store %arg5[%c0_119, %c0_120], %354 {strides = array<i32>} : memref<8x32xf32, #tpu.memory_space<vmem>>, vector<8x32xf32>,
    %c0_121 = arith.constant 0 : index
    %c0_122 = arith.constant 0 : index
    %359 = vector.load %arg6[%c0_121, %c0_122] : memref<8x32xf32, #tpu.memory_space<vmem>>, vector<8x32xf32>
    tpu.vector_store %arg6[%c0_121, %c0_122], %352 {strides = array<i32>} : memref<8x32xf32, #tpu.memory_space<vmem>>, vector<8x32xf32>,
    return
  }
  func.func @transform_0(%arg0: i32, %arg1: i32) -> (i32, i32, i32) {
    %c0_i32 = arith.constant 0 : i32
    %c0_i32_0 = arith.constant 0 : i32
    return %arg1, %arg0, %c0_i32 : i32, i32, i32
  }
  func.func @transform_1(%arg0: i32, %arg1: i32) -> (i32, i32) {
    %c0_i32 = arith.constant 0 : i32
    %c0_i32_0 = arith.constant 0 : i32
    %c0_i32_1 = arith.constant 0 : i32
    return %c0_i32, %c0_i32_0 : i32, i32
  }
  func.func @transform_2(%arg0: i32, %arg1: i32) -> (i32, i32, i32) {
    %c0_i32 = arith.constant 0 : i32
    %c0_i32_0 = arith.constant 0 : i32
    return %arg1, %arg0, %c0_i32 : i32, i32, i32
  }
}

</mosaic_0001>

<bundles_post_ra>
// kernel: reversible_lstm.1
= control target key start
LH: loop header
LB: loop body
LE: loop exit
PB: predicated region body
PF: predicated region fallthrough
CT: control target
= control target key end

     0   :  { %vm15_vm0 = vcmask 261120   ;;  %v9915_v0 = vmov 0.0   ;;  %vm9916_vm1 = vmmov 0   ;;  %s9917_s18 = smov 32   ;;  %s9918_s19 = smov 64   ;;  %vm1058_vm2 = vcmask 523520   ;;  %s11267_s1 = inlined_call_operand.vmem [shape: f32[32,128], index: 1, kind: input, shape index: {}]   ;;  %s11268_s0 = inlined_call_operand.vmem [shape: f32[16,8,128], index: 0, kind: input, shape index: {}]   ;;  %s11269_s2 = inlined_call_operand.vmem [shape: f32[1,8,512], index: 2, kind: output, shape index: {}]  }
   0x1   :  { %8790 = vmatprep.subr.mxu0 %v9915_v0  ;;  %8801 = vmatprep.subr.mxu1 %v9915_v0  ;;  %v23_v1 = vld [vmem:[%s11267_s1 + $0x18] sm:$0xff]  ;;  %v22_v2 = vld [vmem:[%s11267_s1 + $0x10] sm:$0xff]  ;;  %v21_v3 = vld [vmem:[%s11267_s1 + $0x8] sm:$0xff]  ;;  %16 = vst.msk [vmem:[#allocation2] sm:$0xff] %vm15_vm0, %v9915_v0  ;;  %s9919_s3 = smov 96   ;;  %vm1572_vm3 = vcmask 785920  }
   0x2   :  { %17 = vst.msk [vmem:[#allocation3] sm:$0xff] %vm15_vm0, %v9915_v0  ;;  %v9950_v4 = vand.u32 4294901760, %v23_v1  ;;  %v9952_v5 = vand.u32 4294901760, %v22_v2  ;;  %v9954_v6 = vand.u32 4294901760, %v21_v3  ;;  %v20_v7 = vld [vmem:[%s11267_s1] sm:$0xff]  ;;  %8798 = vmatprep.mubr.msk.f32.mxu0 %vm9916_vm1, %v9915_v0  ;;  %8809 = vmatprep.mubr.msk.f32.mxu1 %vm9916_vm1, %v9915_v0  ;;  %vm2091_vm4 = vcmask 1048320  }
   0x3   :  { %v9963_v8 = vand.u32 4294901760, %v20_v7  ;;  %v24_v46 = vld [vmem:[%s11268_s0] sm:$0xff] }
   0x4   :  { %8791 = vmatpush3.msra.mxu0 %v9950_v4  ;;  %v9967_v9 = vsub.f32 %v23_v1, %v9950_v4  ;;  %v9970_v10 = vsub.f32 %v22_v2, %v9952_v5  ;;  %v9973_v11 = vsub.f32 %v21_v3, %v9954_v6 }
   0x5   :  { %8792 = vmatprep.subr.mxu0 %v9915_v0  ;;  %v9977_v12 = vsub.f32 %v20_v7, %v9963_v8 }
   0x6   :  { %v9980_v13 = vand.u32 4294901760, %v9967_v9  ;;  %8793 = vmatpush3.msra.mxu0 %v9952_v5  ;;  %v9984_v14 = vand.u32 4294901760, %v9970_v10  ;;  %v9987_v15 = vand.u32 4294901760, %v9973_v11 }
   0x7   :  { %8794 = vmatprep.subr.mxu0 %v9915_v0  ;;  %v9991_v16 = vand.u32 4294901760, %v9977_v12 }
   0x8   :  { %v136_v17 = vsub.f32 %v9967_v9, %v9980_v13  ;;  %v143_v18 = vsub.f32 %v9970_v10, %v9984_v14  ;;  %8795 = vmatpush3.msra.mxu0 %v9954_v6  ;;  %v150_v19 = vsub.f32 %v9973_v11, %v9987_v15  ;;  %v18_v20 = vld [vmem:[#allocation2] sm:$0xff] }
   0x9   :  { %8796 = vmatprep.subr.mxu0 %v9915_v0  ;;  %v27_v21 = vsel %vm15_vm0, %v18_v20, 0  ;;  %v157_v24 = vsub.f32 %v9977_v12, %v9991_v16  ;;  %v19_v52 = vld [vmem:[#allocation3] sm:$0xff] }
   0xa   :  { %v10002_v22 = vand.u32 4294901760, %v136_v17  ;;  %v10004_v23 = vand.u32 4294901760, %v143_v18  ;;  %8797 = vmatpush3.msra.mxu0 %v9963_v8  ;;  %v98_v25 = vand.u32 4294901760, %v27_v21  ;;  %v10011_v26 = vand.u32 4294901760, %v150_v19 }
   0xb   :  { %8812 = vmatprep.subr.mxu0 %v9915_v0  ;;  %v10015_v28 = vand.u32 4294901760, %v157_v24 }
   0xc   :  { %8802 = vmatpush3.msra.mxu1 %v10002_v22  ;;  %v99_v27 = vsub.f32 %v27_v21, %v98_v25 }
   0xd   :  { %8803 = vmatprep.subr.mxu1 %v9915_v0 }
   0xe   :  { %8804 = vmatpush3.msra.mxu1 %v10004_v23  ;;  %v100_v29 = vand.u32 4294901760, %v99_v27 }
   0xf   :  { %8805 = vmatprep.subr.mxu1 %v9915_v0 }
  0x10   :  { %8806 = vmatpush3.msra.mxu1 %v10011_v26  ;;  %v101_v30 = vsub.f32 %v99_v27, %v100_v29 }
  0x11   :  { %8807 = vmatprep.subr.mxu1 %v9915_v0 }
  0x12   :  { %8808 = vmatpush3.msra.mxu1 %v10015_v28  ;;  %v102_v31 = vand.u32 4294901760, %v101_v30 }
  0x13   :  { %8823 = vmatprep.subr.mxu1 %v9915_v0  ;;  %8810 = vmatmul.mubr.f32.vlgmr.msra.gmra.mxu1 %v98_v25 }
  0x14   :  { %8799 = vmatmul.mubr.f32.vlgmr.msra.gmra.mxu0 %v102_v31  ;;  %8824 = vmatpush3.msra.mxu1 %v9950_v4 }
  0x15   :  { %8813 = vmatpush3.msra.mxu0 %v9967_v9  ;;  %8825 = vmatprep.subr.mxu1 %v9915_v0 }
  0x16   :  { %8814 = vmatprep.subr.mxu0 %v9915_v0  ;;  %8826 = vmatpush3.msra.mxu1 %v9952_v5 }
  0x17   :  { %8815 = vmatpush3.msra.mxu0 %v9970_v10  ;;  %8827 = vmatprep.subr.mxu1 %v9915_v0 }
  0x18   :  { %8816 = vmatprep.subr.mxu0 %v9915_v0  ;;  %8828 = vmatpush3.msra.mxu1 %v9954_v6 }
  0x19   :  { %8817 = vmatpush3.msra.mxu0 %v9973_v11  ;;  %8829 = vmatprep.subr.mxu1 %v9915_v0 }
  0x1a   :  { %8818 = vmatprep.subr.mxu0 %v9915_v0  ;;  %8820 = vmatprep.mubr.msk.f32.mxu0 %vm9916_vm1, %v9915_v0 }
  0x1b   :  { %8819 = vmatpush3.msra.mxu0 %v9977_v12  ;;  %8830 = vmatpush3.msra.mxu1 %v9963_v8 }
  0x1c   :  { %8821 = vmatmul.mubr.f32.vlgmr.msra.gmra.mxu0 %v99_v27  ;;  %8831 = vmatprep.mubr.msk.f32.mxu1 %vm9916_vm1, %v9915_v0 }
  0x1d   :  { %8834 = vmatprep.subr.mxu0 %v9915_v0  ;;  %8845 = vmatprep.subr.mxu1 %v9915_v0 }
  0x1e   :  { %8832 = vmatmul.mubr.f32.vlgmr.msra.gmra.mxu1 %v100_v29  ;;  %8835 = vmatpush3.msra.mxu0 %v9980_v13 }
  0x1f   :  { %8846 = vmatpush3.msra.mxu1 %v9950_v4  ;;  %8836 = vmatprep.subr.mxu0 %v9915_v0 }
  0x20   :  { %8847 = vmatprep.subr.mxu1 %v9915_v0  ;;  %8837 = vmatpush3.msra.mxu0 %v9984_v14 }
  0x21   :  { %8848 = vmatpush3.msra.mxu1 %v9952_v5  ;;  %8838 = vmatprep.subr.mxu0 %v9915_v0 }
  0x22   :  { %8849 = vmatprep.subr.mxu1 %v9915_v0  ;;  %8839 = vmatpush3.msra.mxu0 %v9987_v15 }
  0x23   :  { %8850 = vmatpush3.msra.mxu1 %v9954_v6  ;;  %8840 = vmatprep.subr.mxu0 %v9915_v0 }
  0x24   :  { %8851 = vmatprep.subr.mxu1 %v9915_v0  ;;  %8841 = vmatpush3.msra.mxu0 %v9991_v16 }
  0x25   :  { %8842 = vmatprep.mubr.msk.f32.mxu0 %vm9916_vm1, %v9915_v0  ;;  %8852 = vmatpush3.msra.mxu1 %v9963_v8 }
  0x26   :  { %8853 = vmatprep.mubr.msk.f32.mxu1 %vm9916_vm1, %v9915_v0  ;;  %8843 = vmatmul.mubr.f32.vlgmr.msra.gmra.mxu0 %v98_v25 }
  0x27   :  { %8854 = vmatmul.mubr.f32.vlgmr.msra.gmra.mxu1 %v98_v25  ;;  %8867 = vmatprep.subr.mxu1 %v9915_v0 }
  0x28   :  { %8868 = vmatpush3.msra.mxu1 %v10002_v22  ;;  %8856 = vmatprep.subr.mxu0 %v9915_v0 }
  0x29   :  { %8869 = vmatprep.subr.mxu1 %v9915_v0  ;;  %8875 = vmatprep.mubr.msk.f32.mxu1 %vm9916_vm1, %v9915_v0 }
  0x2a   :  { %8870 = vmatpush3.msra.mxu1 %v10004_v23  ;;  %8857 = vmatpush3.msra.mxu0 %v9950_v4 }
  0x2b   :  { %8871 = vmatprep.subr.mxu1 %v9915_v0  ;;  %8858 = vmatprep.subr.mxu0 %v9915_v0 }
  0x2c   :  { %8872 = vmatpush3.msra.mxu1 %v10011_v26  ;;  %8859 = vmatpush3.msra.mxu0 %v9952_v5 }
  0x2d   :  { %8873 = vmatprep.subr.mxu1 %v9915_v0  ;;  %8860 = vmatprep.subr.mxu0 %v9915_v0 }
  0x2e   :  { %8874 = vmatpush3.msra.mxu1 %v10015_v28  ;;  %8861 = vmatpush3.msra.mxu0 %v9954_v6 }
  0x2f   :  { %8889 = vmatprep.subr.mxu1 %v9915_v0  ;;  %8862 = vmatprep.subr.mxu0 %v9915_v0 }
  0x30   :  { %8863 = vmatpush3.msra.mxu0 %v9963_v8  ;;  %8864 = vmatprep.mubr.msk.f32.mxu0 %vm9916_vm1, %v9915_v0 }
  0x31   :  { %8878 = vmatprep.subr.mxu0 %v9915_v0 }
  0xd3   :  { %v195_v32 = vpop.f32.mrf.mxu1 }
  0xd4   :  { %v104_v33 = vpop.f32.mrf.mxu0 }
  0xd5   :  { %v8811_v34 = vpop.f32.mrf.mxu1  ;;  %v196_v39 = vadd.f32 %v195_v32, %v104_v33 }
  0xd6   :  { %v8800_v35 = vpop.f32.mrf.mxu0 }
  0xdc   :  { %v275_v36 = vpop.f32.mrf.mxu0 }
  0xdd   :  { %v276_v41 = vadd.f32 %v275_v36, %v196_v39  ;;  %v8295_v39 = vld [vmem:[%s11268_s0 + $0x8] sm:$0xff] }
  0xde   :  { %v352_v37 = vpop.f32.mrf.mxu1  ;;  %v8822_v38 = vpop.f32.mrf.mxu0 }
  0xdf   :  { %v353_v42 = vadd.f32 %v352_v37, %v276_v41 }
  0xe0   :  { %v8833_v40 = vpop.f32.mrf.mxu1 }
  0xe6   :  { %v435_v43 = vpop.f32.mrf.mxu0 }
  0xe7   :  { %v436_v44 = vadd.f32 %v435_v43, %v353_v42  ;;  %v510_v45 = vpop.f32.mrf.mxu1 }
  0xe8   :  { %v8844_v47 = vpop.f32.mrf.mxu0 }
  0xe9   :  { %v511_v48 = vadd.f32 %v510_v45, %v436_v44  ;;  %v8855_v49 = vpop.f32.mrf.mxu1 }
  0xeb   :  { %v514_v50 = vadd.f32 %v511_v48, %v24_v46 }
  0xed   :  { %9851 = vtanh.f32 %v514_v50 }
  0xfa   :  { %v9852_v51 = vpop.eup %9851 }
  0xfb   :  { %524 = vrot.lane.b32.xlu0 %v9852_v51, %s9917_s18  ;;  %v516_v53 = vmul.f32 0.5, %v9852_v51 }
  0xfd   :  { %v517_v54 = vadd.f32 0.5, %v516_v53 }
  0xff   :  { %519 = vrot.lane.b32.xlu0 %v19_v52, %s9917_s18 }
 0x16d   :  { %v525_v55 = vpop.permute.xlu0 %524 }
 0x16e   :  { %v527_v56 = vmul.f32 %v525_v55, %v517_v54 }
 0x170   :  { %529 = vrot.lane.b32.xlu1 %v527_v56, %s9917_s18 }
 0x171   :  { %v520_v57 = vpop.permute.xlu0 %519 }
 0x172   :  { %v522_v58 = vmul.f32 %v520_v57, %v517_v54 }
 0x1e2   :  { %v530_v59 = vpop.permute.xlu1 %529 }
 0x1e3   :  { %v10088_v60 = vadd.f32 %v530_v59, %v522_v58 }
 0x1e5   :  { %9853 = vtanh.f32 %v10088_v60 }
 0x1f2   :  { %v9854_v61 = vpop.eup %9853 }
 0x1f3   :  { %535 = vrot.lane.b32.xlu1 %v9854_v61, %s9917_s18 }
 0x265   :  { %v536_v62 = vpop.permute.xlu1 %535 }
 0x266   :  { %v538_v63 = vmul.f32 %v536_v62, %v517_v54 }
 0x268   :  { %540 = vrot.lane.b32.xlu0 %v538_v63, %s9918_s19 }
 0x2da   :  { %v541_v1 = vpop.permute.xlu0 %540 }
 0x2db   :  { %543 = vst.msk [vmem:[%s11269_s2] sm:$0xff] %vm15_vm0, %v541_v1  ;;  %v546_v2 = vsel %vm15_vm0, %v541_v1, 0 }
 0x2dc   :  { %v617_v3 = vand.u32 4294901760, %v546_v2 }
 0x2de   :  { %v618_v7 = vsub.f32 %v546_v2, %v617_v3  ;;  %8876 = vmatmul.mubr.f32.vlgmr.msra.gmra.mxu1 %v617_v3 }
 0x2df   :  { %8890 = vmatpush3.msra.mxu1 %v9950_v4  ;;  %8897 = vmatprep.mubr.msk.f32.mxu1 %vm9916_vm1, %v9915_v0 }
 0x2e0   :  { %v619_v17 = vand.u32 4294901760, %v618_v7  ;;  %8891 = vmatprep.subr.mxu1 %v9915_v0 }
 0x2e1   :  { %8892 = vmatpush3.msra.mxu1 %v9952_v5 }
 0x2e2   :  { %v620_v18 = vsub.f32 %v618_v7, %v619_v17  ;;  %8893 = vmatprep.subr.mxu1 %v9915_v0 }
 0x2e3   :  { %8894 = vmatpush3.msra.mxu1 %v9954_v6 }
 0x2e4   :  { %8895 = vmatprep.subr.mxu1 %v9915_v0  ;;  %v621_v19 = vand.u32 4294901760, %v620_v18 }
 0x2e5   :  { %8896 = vmatpush3.msra.mxu1 %v9963_v8 }
 0x2e6   :  { %8898 = vmatmul.mubr.f32.vlgmr.msra.gmra.mxu1 %v619_v17  ;;  %8911 = vmatprep.subr.mxu1 %v9915_v0 }
 0x2e7   :  { %8865 = vmatmul.mubr.f32.vlgmr.msra.gmra.mxu0 %v621_v19  ;;  %8912 = vmatpush3.msra.mxu1 %v9950_v4 }
 0x2e8   :  { %8879 = vmatpush3.msra.mxu0 %v9967_v9  ;;  %8913 = vmatprep.subr.mxu1 %v9915_v0 }
 0x2e9   :  { %8880 = vmatprep.subr.mxu0 %v9915_v0  ;;  %8914 = vmatpush3.msra.mxu1 %v9952_v5 }
 0x2ea   :  { %8881 = vmatpush3.msra.mxu0 %v9970_v10  ;;  %8915 = vmatprep.subr.mxu1 %v9915_v0 }
 0x2eb   :  { %8882 = vmatprep.subr.mxu0 %v9915_v0  ;;  %8916 = vmatpush3.msra.mxu1 %v9954_v6 }
 0x2ec   :  { %8883 = vmatpush3.msra.mxu0 %v9973_v11  ;;  %8917 = vmatprep.subr.mxu1 %v9915_v0 }
 0x2ed   :  { %8884 = vmatprep.subr.mxu0 %v9915_v0  ;;  %8886 = vmatprep.mubr.msk.f32.mxu0 %vm9916_vm1, %v9915_v0 }
 0x2ee   :  { %8885 = vmatpush3.msra.mxu0 %v9977_v12  ;;  %8918 = vmatpush3.msra.mxu1 %v9963_v8 }
 0x2ef   :  { %8919 = vmatprep.mubr.msk.f32.mxu1 %vm9916_vm1, %v9915_v0  ;;  %8887 = vmatmul.mubr.f32.vlgmr.msra.gmra.mxu0 %v618_v7 }
 0x2f0   :  { %8900 = vmatprep.subr.mxu0 %v9915_v0  ;;  %8920 = vmatmul.mubr.f32.vlgmr.msra.gmra.mxu1 %v617_v3 }
 0x2f1   :  { %8901 = vmatpush3.msra.mxu0 %v9980_v13  ;;  %8908 = vmatprep.mubr.msk.f32.mxu0 %vm9916_vm1, %v9915_v0 }
 0x2f2   :  { %8902 = vmatprep.subr.mxu0 %v9915_v0  ;;  %8933 = vmatprep.subr.mxu1 %v9915_v0 }
 0x2f3   :  { %8903 = vmatpush3.msra.mxu0 %v9984_v14  ;;  %8934 = vmatpush3.msra.mxu1 %v10002_v22 }
 0x2f4   :  { %8904 = vmatprep.subr.mxu0 %v9915_v0  ;;  %8935 = vmatprep.subr.mxu1 %v9915_v0 }
 0x2f5   :  { %8905 = vmatpush3.msra.mxu0 %v9987_v15  ;;  %8936 = vmatpush3.msra.mxu1 %v10004_v23 }
 0x2f6   :  { %8906 = vmatprep.subr.mxu0 %v9915_v0  ;;  %8937 = vmatprep.subr.mxu1 %v9915_v0 }
 0x2f7   :  { %8907 = vmatpush3.msra.mxu0 %v9991_v16  ;;  %8938 = vmatpush3.msra.mxu1 %v10011_v26 }
 0x2f8   :  { %8909 = vmatmul.mubr.f32.vlgmr.msra.gmra.mxu0 %v617_v3  ;;  %8939 = vmatprep.subr.mxu1 %v9915_v0 }
 0x2f9   :  { %8940 = vmatpush3.msra.mxu1 %v10015_v28  ;;  %8922 = vmatprep.subr.mxu0 %v9915_v0 }
 0x2fa   :  { %8941 = vmatprep.mubr.msk.f32.mxu1 %vm9916_vm1, %v9915_v0  ;;  %8955 = vmatprep.subr.mxu1 %v9915_v0 }
 0x2fb   :  { %8923 = vmatpush3.msra.mxu0 %v9950_v4  ;;  %8930 = vmatprep.mubr.msk.f32.mxu0 %vm9916_vm1, %v9915_v0 }
 0x2fc   :  { %8924 = vmatprep.subr.mxu0 %v9915_v0 }
 0x2fd   :  { %8925 = vmatpush3.msra.mxu0 %v9952_v5 }
 0x2fe   :  { %8926 = vmatprep.subr.mxu0 %v9915_v0 }
 0x2ff   :  { %8927 = vmatpush3.msra.mxu0 %v9954_v6 }
 0x300   :  { %8928 = vmatprep.subr.mxu0 %v9915_v0 }
 0x301   :  { %8929 = vmatpush3.msra.mxu0 %v9963_v8 }
 0x302   :  { %8944 = vmatprep.subr.mxu0 %v9915_v0 }
 0x39e   :  { %v714_v20 = vpop.f32.mrf.mxu1 }
 0x3a0   :  { %v8877_v21 = vpop.f32.mrf.mxu1 }
 0x3a6   :  { %v871_v24 = vpop.f32.mrf.mxu1 }
 0x3a7   :  { %v623_v25 = vpop.f32.mrf.mxu0 }
 0x3a8   :  { %v8899_v27 = vpop.f32.mrf.mxu1  ;;  %v715_v32 = vadd.f32 %v714_v20, %v623_v25 }
 0x3a9   :  { %v8866_v29 = vpop.f32.mrf.mxu0 }
 0x3aa   :  { %v8296_v29 = vld [vmem:[%s11268_s0 + $0x10] sm:$0xff] }
 0x3af   :  { %v794_v30 = vpop.f32.mrf.mxu0 }
 0x3b0   :  { %v1029_v31 = vpop.f32.mrf.mxu1  ;;  %v795_v35 = vadd.f32 %v794_v30, %v715_v32 }
 0x3b1   :  { %v8888_v33 = vpop.f32.mrf.mxu0 }
 0x3b2   :  { %v8921_v34 = vpop.f32.mrf.mxu1  ;;  %v872_v36 = vadd.f32 %v871_v24, %v795_v35 }
 0x3b8   :  { %v954_v37 = vpop.f32.mrf.mxu0 }
 0x3b9   :  { %v955_v38 = vadd.f32 %v954_v37, %v872_v36 }
 0x3ba   :  { %v8910_v40 = vpop.f32.mrf.mxu0 }
 0x3bb   :  { %v1030_v41 = vadd.f32 %v1029_v31, %v955_v38 }
 0x3bd   :  { %v1033_v42 = vadd.f32 %v8295_v39, %v1030_v41 }
 0x3bf   :  { %9855 = vtanh.f32 %v1033_v42 }
 0x3cc   :  { %v9856_v43 = vpop.eup %9855 }
 0x3cd   :  { %1039 = vrot.lane.b32.xlu1 %v9856_v43, %s9917_s18  ;;  %v1035_v44 = vmul.f32 0.5, %v9856_v43 }
 0x3cf   :  { %v1036_v45 = vadd.f32 0.5, %v1035_v44 }
 0x3d1   :  { %v1037_v48 = vmul.f32 %v1036_v45, %v10088_v60 }
 0x43f   :  { %v1040_v46 = vpop.permute.xlu1 %1039 }
 0x440   :  { %v1042_v47 = vmul.f32 %v1040_v46, %v1036_v45 }
 0x442   :  { %1044 = vrot.lane.b32.xlu0 %v1042_v47, %s9917_s18 }
 0x4b4   :  { %v1045_v49 = vpop.permute.xlu0 %1044 }
 0x4b5   :  { %v10164_v50 = vadd.f32 %v1045_v49, %v1037_v48 }
 0x4b7   :  { %9857 = vtanh.f32 %v10164_v50 }
 0x4c4   :  { %v9858_v51 = vpop.eup %9857 }
 0x4c5   :  { %1050 = vrot.lane.b32.xlu1 %v9858_v51, %s9917_s18 }
 0x537   :  { %v1051_v52 = vpop.permute.xlu1 %1050 }
 0x538   :  { %v10168_v53 = vmul.f32 %v1051_v52, %v1036_v45 }
 0x53a   :  { %1062 = vrot.lane.b32.xlu0 %v10168_v53, %s9918_s19 }
 0x5ac   :  { %v1063_v54 = vpop.permute.xlu0 %1062 }
 0x5ad   :  { %v1064_v55 = vsel %vm15_vm0, %v1063_v54, 0 }
 0x5ae   :  { %v1135_v56 = vand.u32 4294901760, %v1064_v55 }
 0x5b0   :  { %v1136_v57 = vsub.f32 %v1064_v55, %v1135_v56  ;;  %8942 = vmatmul.mubr.f32.vlgmr.msra.gmra.mxu1 %v1135_v56 }
 0x5b1   :  { %8956 = vmatpush3.msra.mxu1 %v9950_v4  ;;  %8963 = vmatprep.mubr.msk.f32.mxu1 %vm9916_vm1, %v9915_v0 }
 0x5b2   :  { %v1137_v58 = vand.u32 4294901760, %v1136_v57  ;;  %8957 = vmatprep.subr.mxu1 %v9915_v0 }
 0x5b3   :  { %8958 = vmatpush3.msra.mxu1 %v9952_v5 }
 0x5b4   :  { %v1138_v59 = vsub.f32 %v1136_v57, %v1137_v58  ;;  %8959 = vmatprep.subr.mxu1 %v9915_v0 }
 0x5b5   :  { %8960 = vmatpush3.msra.mxu1 %v9954_v6 }
 0x5b6   :  { %v1139_v60 = vand.u32 4294901760, %v1138_v59  ;;  %8961 = vmatprep.subr.mxu1 %v9915_v0 }
 0x5b7   :  { %8962 = vmatpush3.msra.mxu1 %v9963_v8 }
 0x5b8   :  { %8964 = vmatmul.mubr.f32.vlgmr.msra.gmra.mxu1 %v1137_v58  ;;  %8977 = vmatprep.subr.mxu1 %v9915_v0 }
 0x5b9   :  { %8931 = vmatmul.mubr.f32.vlgmr.msra.gmra.mxu0 %v1139_v60  ;;  %8978 = vmatpush3.msra.mxu1 %v9950_v4 }
 0x5ba   :  { %8945 = vmatpush3.msra.mxu0 %v9967_v9  ;;  %8979 = vmatprep.subr.mxu1 %v9915_v0 }
 0x5bb   :  { %8946 = vmatprep.subr.mxu0 %v9915_v0  ;;  %8980 = vmatpush3.msra.mxu1 %v9952_v5 }
 0x5bc   :  { %8947 = vmatpush3.msra.mxu0 %v9970_v10  ;;  %8981 = vmatprep.subr.mxu1 %v9915_v0 }
 0x5bd   :  { %8948 = vmatprep.subr.mxu0 %v9915_v0  ;;  %8982 = vmatpush3.msra.mxu1 %v9954_v6 }
 0x5be   :  { %8949 = vmatpush3.msra.mxu0 %v9973_v11  ;;  %8983 = vmatprep.subr.mxu1 %v9915_v0 }
 0x5bf   :  { %8950 = vmatprep.subr.mxu0 %v9915_v0  ;;  %8952 = vmatprep.mubr.msk.f32.mxu0 %vm9916_vm1, %v9915_v0 }
 0x5c0   :  { %8951 = vmatpush3.msra.mxu0 %v9977_v12  ;;  %8984 = vmatpush3.msra.mxu1 %v9963_v8 }
 0x5c1   :  { %8985 = vmatprep.mubr.msk.f32.mxu1 %vm9916_vm1, %v9915_v0  ;;  %8953 = vmatmul.mubr.f32.vlgmr.msra.gmra.mxu0 %v1136_v57 }
 0x5c2   :  { %8966 = vmatprep.subr.mxu0 %v9915_v0  ;;  %8986 = vmatmul.mubr.f32.vlgmr.msra.gmra.mxu1 %v1135_v56 }
 0x5c3   :  { %8967 = vmatpush3.msra.mxu0 %v9980_v13  ;;  %8974 = vmatprep.mubr.msk.f32.mxu0 %vm9916_vm1, %v9915_v0 }
 0x5c4   :  { %8968 = vmatprep.subr.mxu0 %v9915_v0  ;;  %8999 = vmatprep.subr.mxu1 %v9915_v0 }
 0x5c5   :  { %8969 = vmatpush3.msra.mxu0 %v9984_v14  ;;  %9000 = vmatpush3.msra.mxu1 %v10002_v22 }
 0x5c6   :  { %8970 = vmatprep.subr.mxu0 %v9915_v0  ;;  %9001 = vmatprep.subr.mxu1 %v9915_v0 }
 0x5c7   :  { %8971 = vmatpush3.msra.mxu0 %v9987_v15  ;;  %9002 = vmatpush3.msra.mxu1 %v10004_v23 }
 0x5c8   :  { %8972 = vmatprep.subr.mxu0 %v9915_v0  ;;  %9003 = vmatprep.subr.mxu1 %v9915_v0 }
 0x5c9   :  { %8973 = vmatpush3.msra.mxu0 %v9991_v16  ;;  %9004 = vmatpush3.msra.mxu1 %v10011_v26 }
 0x5ca   :  { %8975 = vmatmul.mubr.f32.vlgmr.msra.gmra.mxu0 %v1135_v56  ;;  %9005 = vmatprep.subr.mxu1 %v9915_v0 }
 0x5cb   :  { %9006 = vmatpush3.msra.mxu1 %v10015_v28  ;;  %8988 = vmatprep.subr.mxu0 %v9915_v0 }
 0x5cc   :  { %9007 = vmatprep.mubr.msk.f32.mxu1 %vm9916_vm1, %v9915_v0  ;;  %9021 = vmatprep.subr.mxu1 %v9915_v0 }
 0x5cd   :  { %8989 = vmatpush3.msra.mxu0 %v9950_v4  ;;  %8996 = vmatprep.mubr.msk.f32.mxu0 %vm9916_vm1, %v9915_v0 }
 0x5ce   :  { %8990 = vmatprep.subr.mxu0 %v9915_v0 }
 0x5cf   :  { %8991 = vmatpush3.msra.mxu0 %v9952_v5 }
 0x5d0   :  { %8992 = vmatprep.subr.mxu0 %v9915_v0 }
 0x5d1   :  { %8993 = vmatpush3.msra.mxu0 %v9954_v6 }
 0x5d2   :  { %8994 = vmatprep.subr.mxu0 %v9915_v0 }
 0x5d3   :  { %8995 = vmatpush3.msra.mxu0 %v9963_v8 }
 0x5d4   :  { %9010 = vmatprep.subr.mxu0 %v9915_v0 }
 0x670   :  { %v1232_v61 = vpop.f32.mrf.mxu1 }
 0x672   :  { %v8943_v62 = vpop.f32.mrf.mxu1 }
 0x678   :  { %v1389_v63 = vpop.f32.mrf.mxu1 }
 0x679   :  { %v1141_v1 = vpop.f32.mrf.mxu0 }
 0x67a   :  { %v8965_v2 = vpop.f32.mrf.mxu1  ;;  %v1233_v18 = vadd.f32 %v1232_v61, %v1141_v1 }
 0x67b   :  { %v8932_v3 = vpop.f32.mrf.mxu0 }
 0x681   :  { %v1312_v7 = vpop.f32.mrf.mxu0 }
 0x682   :  { %v1547_v17 = vpop.f32.mrf.mxu1  ;;  %v1313_v21 = vadd.f32 %v1312_v7, %v1233_v18  ;;  %v8297_v7 = vld [vmem:[%s11268_s0 + $0x18] sm:$0xff] }
 0x683   :  { %v8954_v19 = vpop.f32.mrf.mxu0 }
 0x684   :  { %v8987_v20 = vpop.f32.mrf.mxu1  ;;  %v1390_v24 = vadd.f32 %v1389_v63, %v1313_v21 }
 0x68a   :  { %v1472_v25 = vpop.f32.mrf.mxu0 }
 0x68b   :  { %v1473_v27 = vadd.f32 %v1472_v25, %v1390_v24 }
 0x68c   :  { %v8976_v30 = vpop.f32.mrf.mxu0 }
 0x68d   :  { %v1548_v31 = vadd.f32 %v1547_v17, %v1473_v27 }
 0x68f   :  { %v1551_v32 = vadd.f32 %v8296_v29, %v1548_v31 }
 0x691   :  { %9859 = vtanh.f32 %v1551_v32 }
 0x69e   :  { %v9860_v33 = vpop.eup %9859 }
 0x69f   :  { %1557 = vrot.lane.b32.xlu1 %v9860_v33, %s9917_s18  ;;  %v1553_v34 = vmul.f32 0.5, %v9860_v33 }
 0x6a1   :  { %v1554_v35 = vadd.f32 0.5, %v1553_v34 }
 0x6a3   :  { %v1555_v38 = vmul.f32 %v1554_v35, %v10164_v50 }
 0x711   :  { %v1558_v36 = vpop.permute.xlu1 %1557 }
 0x712   :  { %v1560_v37 = vmul.f32 %v1558_v36, %v1554_v35 }
 0x714   :  { %1562 = vrot.lane.b32.xlu0 %v1560_v37, %s9917_s18 }
 0x786   :  { %v1563_v39 = vpop.permute.xlu0 %1562 }
 0x787   :  { %v10239_v40 = vadd.f32 %v1563_v39, %v1555_v38 }
 0x789   :  { %9861 = vtanh.f32 %v10239_v40 }
 0x796   :  { %v9862_v41 = vpop.eup %9861 }
 0x797   :  { %1568 = vrot.lane.b32.xlu1 %v9862_v41, %s9917_s18 }
 0x809   :  { %v1569_v42 = vpop.permute.xlu1 %1568 }
 0x80a   :  { %v10243_v43 = vmul.f32 %v1569_v42, %v1554_v35 }
 0x80c   :  { %1577 = vrot.lane.b32.xlu0 %v10243_v43, %s9918_s19 }
 0x87e   :  { %v1578_v44 = vpop.permute.xlu0 %1577 }
 0x87f   :  { %v1579_v45 = vsel %vm15_vm0, %v1578_v44, 0 }
 0x880   :  { %v1650_v46 = vand.u32 4294901760, %v1579_v45 }
 0x882   :  { %v1651_v47 = vsub.f32 %v1579_v45, %v1650_v46  ;;  %9008 = vmatmul.mubr.f32.vlgmr.msra.gmra.mxu1 %v1650_v46 }
 0x883   :  { %9022 = vmatpush3.msra.mxu1 %v9950_v4  ;;  %9029 = vmatprep.mubr.msk.f32.mxu1 %vm9916_vm1, %v9915_v0 }
 0x884   :  { %v1652_v48 = vand.u32 4294901760, %v1651_v47  ;;  %9023 = vmatprep.subr.mxu1 %v9915_v0 }
 0x885   :  { %9024 = vmatpush3.msra.mxu1 %v9952_v5 }
 0x886   :  { %v1653_v49 = vsub.f32 %v1651_v47, %v1652_v48  ;;  %9025 = vmatprep.subr.mxu1 %v9915_v0 }
 0x887   :  { %9026 = vmatpush3.msra.mxu1 %v9954_v6 }
 0x888   :  { %v1654_v50 = vand.u32 4294901760, %v1653_v49  ;;  %9027 = vmatprep.subr.mxu1 %v9915_v0 }
 0x889   :  { %9028 = vmatpush3.msra.mxu1 %v9963_v8 }
 0x88a   :  { %9030 = vmatmul.mubr.f32.vlgmr.msra.gmra.mxu1 %v1652_v48  ;;  %9043 = vmatprep.subr.mxu1 %v9915_v0 }
 0x88b   :  { %8997 = vmatmul.mubr.f32.vlgmr.msra.gmra.mxu0 %v1654_v50  ;;  %9044 = vmatpush3.msra.mxu1 %v9950_v4 }
 0x88c   :  { %9011 = vmatpush3.msra.mxu0 %v9967_v9  ;;  %9045 = vmatprep.subr.mxu1 %v9915_v0 }
 0x88d   :  { %9012 = vmatprep.subr.mxu0 %v9915_v0  ;;  %9046 = vmatpush3.msra.mxu1 %v9952_v5 }
 0x88e   :  { %9013 = vmatpush3.msra.mxu0 %v9970_v10  ;;  %9047 = vmatprep.subr.mxu1 %v9915_v0 }
 0x88f   :  { %9014 = vmatprep.subr.mxu0 %v9915_v0  ;;  %9048 = vmatpush3.msra.mxu1 %v9954_v6 }
 0x890   :  { %9015 = vmatpush3.msra.mxu0 %v9973_v11  ;;  %9049 = vmatprep.subr.mxu1 %v9915_v0 }
 0x891   :  { %9016 = vmatprep.subr.mxu0 %v9915_v0  ;;  %9018 = vmatprep.mubr.msk.f32.mxu0 %vm9916_vm1, %v9915_v0 }
 0x892   :  { %9017 = vmatpush3.msra.mxu0 %v9977_v12  ;;  %9050 = vmatpush3.msra.mxu1 %v9963_v8 }
 0x893   :  { %9051 = vmatprep.mubr.msk.f32.mxu1 %vm9916_vm1, %v9915_v0  ;;  %9019 = vmatmul.mubr.f32.vlgmr.msra.gmra.mxu0 %v1651_v47 }
 0x894   :  { %9032 = vmatprep.subr.mxu0 %v9915_v0  ;;  %9052 = vmatmul.mubr.f32.vlgmr.msra.gmra.mxu1 %v1650_v46 }
 0x895   :  { %9033 = vmatpush3.msra.mxu0 %v9980_v13  ;;  %9040 = vmatprep.mubr.msk.f32.mxu0 %vm9916_vm1, %v9915_v0 }
 0x896   :  { %9034 = vmatprep.subr.mxu0 %v9915_v0  ;;  %9065 = vmatprep.subr.mxu1 %v9915_v0 }
 0x897   :  { %9035 = vmatpush3.msra.mxu0 %v9984_v14  ;;  %9066 = vmatpush3.msra.mxu1 %v10002_v22 }
 0x898   :  { %9036 = vmatprep.subr.mxu0 %v9915_v0  ;;  %9067 = vmatprep.subr.mxu1 %v9915_v0 }
 0x899   :  { %9037 = vmatpush3.msra.mxu0 %v9987_v15  ;;  %9068 = vmatpush3.msra.mxu1 %v10004_v23 }
 0x89a   :  { %9038 = vmatprep.subr.mxu0 %v9915_v0  ;;  %9069 = vmatprep.subr.mxu1 %v9915_v0 }
 0x89b   :  { %9039 = vmatpush3.msra.mxu0 %v9991_v16  ;;  %9070 = vmatpush3.msra.mxu1 %v10011_v26 }
 0x89c   :  { %9041 = vmatmul.mubr.f32.vlgmr.msra.gmra.mxu0 %v1650_v46  ;;  %9071 = vmatprep.subr.mxu1 %v9915_v0 }
 0x89d   :  { %9072 = vmatpush3.msra.mxu1 %v10015_v28  ;;  %9054 = vmatprep.subr.mxu0 %v9915_v0 }
 0x89e   :  { %9073 = vmatprep.mubr.msk.f32.mxu1 %vm9916_vm1, %v9915_v0  ;;  %9087 = vmatprep.subr.mxu1 %v9915_v0 }
 0x89f   :  { %9055 = vmatpush3.msra.mxu0 %v9950_v4  ;;  %9062 = vmatprep.mubr.msk.f32.mxu0 %vm9916_vm1, %v9915_v0 }
 0x8a0   :  { %9056 = vmatprep.subr.mxu0 %v9915_v0 }
 0x8a1   :  { %9057 = vmatpush3.msra.mxu0 %v9952_v5 }
 0x8a2   :  { %9058 = vmatprep.subr.mxu0 %v9915_v0 }
 0x8a3   :  { %9059 = vmatpush3.msra.mxu0 %v9954_v6 }
 0x8a4   :  { %9060 = vmatprep.subr.mxu0 %v9915_v0 }
 0x8a5   :  { %9061 = vmatpush3.msra.mxu0 %v9963_v8 }
 0x8a6   :  { %9076 = vmatprep.subr.mxu0 %v9915_v0 }
 0x942   :  { %v1747_v51 = vpop.f32.mrf.mxu1 }
 0x944   :  { %v9009_v52 = vpop.f32.mrf.mxu1 }
 0x94a   :  { %v1904_v54 = vpop.f32.mrf.mxu1 }
 0x94b   :  { %v1656_v55 = vpop.f32.mrf.mxu0 }
 0x94c   :  { %v9031_v56 = vpop.f32.mrf.mxu1  ;;  %v1748_v60 = vadd.f32 %v1747_v51, %v1656_v55 }
 0x94d   :  { %v8998_v57 = vpop.f32.mrf.mxu0 }
 0x953   :  { %v1827_v58 = vpop.f32.mrf.mxu0 }
 0x954   :  { %v2062_v59 = vpop.f32.mrf.mxu1  ;;  %v1828_v63 = vadd.f32 %v1827_v58, %v1748_v60 }
 0x955   :  { %v9020_v61 = vpop.f32.mrf.mxu0 }
 0x956   :  { %v9053_v62 = vpop.f32.mrf.mxu1  ;;  %v1905_v1 = vadd.f32 %v1904_v54, %v1828_v63 }
 0x95c   :  { %v1987_v2 = vpop.f32.mrf.mxu0 }
 0x95d   :  { %v1988_v3 = vadd.f32 %v1987_v2, %v1905_v1 }
 0x95e   :  { %v9042_v17 = vpop.f32.mrf.mxu0 }
 0x95f   :  { %v2063_v18 = vadd.f32 %v2062_v59, %v1988_v3  ;;  %v8298_v59 = vld [vmem:[%s11268_s0 + $0x20] sm:$0xff] }
 0x961   :  { %v2066_v19 = vadd.f32 %v8297_v7, %v2063_v18 }
 0x963   :  { %9863 = vtanh.f32 %v2066_v19 }
 0x970   :  { %v9864_v20 = vpop.eup %9863 }
 0x971   :  { %2072 = vrot.lane.b32.xlu1 %v9864_v20, %s9917_s18  ;;  %v2068_v21 = vmul.f32 0.5, %v9864_v20 }
 0x973   :  { %v2069_v24 = vadd.f32 0.5, %v2068_v21 }
 0x975   :  { %v2070_v29 = vmul.f32 %v2069_v24, %v10239_v40 }
 0x9e3   :  { %v2073_v25 = vpop.permute.xlu1 %2072 }
 0x9e4   :  { %v2075_v27 = vmul.f32 %v2073_v25, %v2069_v24 }
 0x9e6   :  { %2077 = vrot.lane.b32.xlu0 %v2075_v27, %s9917_s18 }
 0xa58   :  { %v2078_v30 = vpop.permute.xlu0 %2077 }
 0xa59   :  { %v10314_v31 = vadd.f32 %v2078_v30, %v2070_v29 }
 0xa5b   :  { %9865 = vtanh.f32 %v10314_v31 }
 0xa68   :  { %v9866_v32 = vpop.eup %9865 }
 0xa69   :  { %2083 = vrot.lane.b32.xlu1 %v9866_v32, %s9917_s18 }
 0xadb   :  { %v2084_v33 = vpop.permute.xlu1 %2083 }
 0xadc   :  { %v10318_v34 = vmul.f32 %v2084_v33, %v2069_v24 }
 0xade   :  { %2095 = vrot.lane.b32.xlu0 %v10318_v34, %s9918_s19 }
 0xb50   :  { %v2096_v35 = vpop.permute.xlu0 %2095 }
 0xb51   :  { %v2097_v36 = vsel %vm15_vm0, %v2096_v35, 0 }
 0xb52   :  { %v2168_v37 = vand.u32 4294901760, %v2097_v36 }
 0xb54   :  { %v2169_v38 = vsub.f32 %v2097_v36, %v2168_v37  ;;  %9074 = vmatmul.mubr.f32.vlgmr.msra.gmra.mxu1 %v2168_v37 }
 0xb55   :  { %9088 = vmatpush3.msra.mxu1 %v9950_v4  ;;  %9095 = vmatprep.mubr.msk.f32.mxu1 %vm9916_vm1, %v9915_v0 }
 0xb56   :  { %v2170_v39 = vand.u32 4294901760, %v2169_v38  ;;  %9089 = vmatprep.subr.mxu1 %v9915_v0 }
 0xb57   :  { %9090 = vmatpush3.msra.mxu1 %v9952_v5 }
 0xb58   :  { %v2171_v40 = vsub.f32 %v2169_v38, %v2170_v39  ;;  %9091 = vmatprep.subr.mxu1 %v9915_v0 }
 0xb59   :  { %9092 = vmatpush3.msra.mxu1 %v9954_v6 }
 0xb5a   :  { %v2172_v41 = vand.u32 4294901760, %v2171_v40  ;;  %9093 = vmatprep.subr.mxu1 %v9915_v0 }
 0xb5b   :  { %9094 = vmatpush3.msra.mxu1 %v9963_v8 }
 0xb5c   :  { %9096 = vmatmul.mubr.f32.vlgmr.msra.gmra.mxu1 %v2170_v39  ;;  %9109 = vmatprep.subr.mxu1 %v9915_v0 }
 0xb5d   :  { %9063 = vmatmul.mubr.f32.vlgmr.msra.gmra.mxu0 %v2172_v41  ;;  %9110 = vmatpush3.msra.mxu1 %v9950_v4 }
 0xb5e   :  { %9077 = vmatpush3.msra.mxu0 %v9967_v9  ;;  %9111 = vmatprep.subr.mxu1 %v9915_v0 }
 0xb5f   :  { %9078 = vmatprep.subr.mxu0 %v9915_v0  ;;  %9112 = vmatpush3.msra.mxu1 %v9952_v5 }
 0xb60   :  { %9079 = vmatpush3.msra.mxu0 %v9970_v10  ;;  %9113 = vmatprep.subr.mxu1 %v9915_v0 }
 0xb61   :  { %9080 = vmatprep.subr.mxu0 %v9915_v0  ;;  %9114 = vmatpush3.msra.mxu1 %v9954_v6 }
 0xb62   :  { %9081 = vmatpush3.msra.mxu0 %v9973_v11  ;;  %9115 = vmatprep.subr.mxu1 %v9915_v0 }
 0xb63   :  { %9082 = vmatprep.subr.mxu0 %v9915_v0  ;;  %9084 = vmatprep.mubr.msk.f32.mxu0 %vm9916_vm1, %v9915_v0 }
 0xb64   :  { %9083 = vmatpush3.msra.mxu0 %v9977_v12  ;;  %9116 = vmatpush3.msra.mxu1 %v9963_v8 }
 0xb65   :  { %9117 = vmatprep.mubr.msk.f32.mxu1 %vm9916_vm1, %v9915_v0  ;;  %9085 = vmatmul.mubr.f32.vlgmr.msra.gmra.mxu0 %v2169_v38 }
 0xb66   :  { %9098 = vmatprep.subr.mxu0 %v9915_v0  ;;  %9118 = vmatmul.mubr.f32.vlgmr.msra.gmra.mxu1 %v2168_v37 }
 0xb67   :  { %9099 = vmatpush3.msra.mxu0 %v9980_v13  ;;  %9106 = vmatprep.mubr.msk.f32.mxu0 %vm9916_vm1, %v9915_v0 }
 0xb68   :  { %9100 = vmatprep.subr.mxu0 %v9915_v0  ;;  %9131 = vmatprep.subr.mxu1 %v9915_v0 }
 0xb69   :  { %9101 = vmatpush3.msra.mxu0 %v9984_v14  ;;  %9132 = vmatpush3.msra.mxu1 %v10002_v22 }
 0xb6a   :  { %9102 = vmatprep.subr.mxu0 %v9915_v0  ;;  %9133 = vmatprep.subr.mxu1 %v9915_v0 }
 0xb6b   :  { %9103 = vmatpush3.msra.mxu0 %v9987_v15  ;;  %9134 = vmatpush3.msra.mxu1 %v10004_v23 }
 0xb6c   :  { %9104 = vmatprep.subr.mxu0 %v9915_v0  ;;  %9135 = vmatprep.subr.mxu1 %v9915_v0 }
 0xb6d   :  { %9105 = vmatpush3.msra.mxu0 %v9991_v16  ;;  %9136 = vmatpush3.msra.mxu1 %v10011_v26 }
 0xb6e   :  { %9107 = vmatmul.mubr.f32.vlgmr.msra.gmra.mxu0 %v2168_v37  ;;  %9137 = vmatprep.subr.mxu1 %v9915_v0 }
 0xb6f   :  { %9138 = vmatpush3.msra.mxu1 %v10015_v28  ;;  %9120 = vmatprep.subr.mxu0 %v9915_v0 }
 0xb70   :  { %9139 = vmatprep.mubr.msk.f32.mxu1 %vm9916_vm1, %v9915_v0  ;;  %9153 = vmatprep.subr.mxu1 %v9915_v0 }
 0xb71   :  { %9121 = vmatpush3.msra.mxu0 %v9950_v4  ;;  %9128 = vmatprep.mubr.msk.f32.mxu0 %vm9916_vm1, %v9915_v0 }
 0xb72   :  { %9122 = vmatprep.subr.mxu0 %v9915_v0 }
 0xb73   :  { %9123 = vmatpush3.msra.mxu0 %v9952_v5 }
 0xb74   :  { %9124 = vmatprep.subr.mxu0 %v9915_v0 }
 0xb75   :  { %9125 = vmatpush3.msra.mxu0 %v9954_v6 }
 0xb76   :  { %9126 = vmatprep.subr.mxu0 %v9915_v0 }
 0xb77   :  { %9127 = vmatpush3.msra.mxu0 %v9963_v8 }
 0xb78   :  { %9142 = vmatprep.subr.mxu0 %v9915_v0 }
 0xc14   :  { %v2265_v42 = vpop.f32.mrf.mxu1 }
 0xc16   :  { %v9075_v44 = vpop.f32.mrf.mxu1 }
 0xc1c   :  { %v2422_v45 = vpop.f32.mrf.mxu1 }
 0xc1d   :  { %v2174_v46 = vpop.f32.mrf.mxu0 }
 0xc1e   :  { %v9097_v47 = vpop.f32.mrf.mxu1  ;;  %v2266_v51 = vadd.f32 %v2265_v42, %v2174_v46 }
 0xc1f   :  { %v9064_v48 = vpop.f32.mrf.mxu0 }
 0xc25   :  { %v2345_v49 = vpop.f32.mrf.mxu0 }
 0xc26   :  { %v2580_v50 = vpop.f32.mrf.mxu1  ;;  %v2346_v55 = vadd.f32 %v2345_v49, %v2266_v51  ;;  %v8299_v51 = vld [vmem:[%s11268_s0 + $0x28] sm:$0xff] }
 0xc27   :  { %v9086_v52 = vpop.f32.mrf.mxu0 }
 0xc28   :  { %v9119_v54 = vpop.f32.mrf.mxu1  ;;  %v2423_v56 = vadd.f32 %v2422_v45, %v2346_v55 }
 0xc2e   :  { %v2505_v57 = vpop.f32.mrf.mxu0 }
 0xc2f   :  { %v2506_v58 = vadd.f32 %v2505_v57, %v2423_v56 }
 0xc30   :  { %v9108_v60 = vpop.f32.mrf.mxu0 }
 0xc31   :  { %v2581_v61 = vadd.f32 %v2580_v50, %v2506_v58 }
 0xc33   :  { %v2584_v62 = vadd.f32 %v8298_v59, %v2581_v61 }
 0xc35   :  { %9867 = vtanh.f32 %v2584_v62 }
 0xc42   :  { %v9868_v63 = vpop.eup %9867 }
 0xc43   :  { %2590 = vrot.lane.b32.xlu1 %v9868_v63, %s9917_s18  ;;  %v2586_v1 = vmul.f32 0.5, %v9868_v63 }
 0xc45   :  { %v2587_v2 = vadd.f32 0.5, %v2586_v1 }
 0xc47   :  { %v2588_v17 = vmul.f32 %v2587_v2, %v10314_v31 }
 0xcb5   :  { %v2591_v3 = vpop.permute.xlu1 %2590 }
 0xcb6   :  { %v2593_v7 = vmul.f32 %v2591_v3, %v2587_v2 }
 0xcb8   :  { %2595 = vrot.lane.b32.xlu0 %v2593_v7, %s9917_s18 }
 0xd2a   :  { %v2596_v18 = vpop.permute.xlu0 %2595 }
 0xd2b   :  { %v10389_v19 = vadd.f32 %v2596_v18, %v2588_v17 }
 0xd2d   :  { %9869 = vtanh.f32 %v10389_v19 }
 0xd3a   :  { %v9870_v20 = vpop.eup %9869 }
 0xd3b   :  { %2601 = vrot.lane.b32.xlu1 %v9870_v20, %s9917_s18 }
 0xdad   :  { %v2602_v21 = vpop.permute.xlu1 %2601 }
 0xdae   :  { %v2604_v24 = vmul.f32 %v2602_v21, %v2587_v2 }
 0xdb0   :  { %2606 = vrot.lane.b32.xlu0 %v2604_v24, %s9918_s19 }
 0xe22   :  { %v2607_v25 = vpop.permute.xlu0 %2606 }
 0xe23   :  { %2609 = vst.msk [vmem:[%s11269_s2 + $0x8] sm:$0xff] %vm15_vm0, %v2607_v25  ;;  %v2612_v27 = vsel %vm15_vm0, %v2607_v25, 0 }
 0xe24   :  { %v2683_v29 = vand.u32 4294901760, %v2612_v27 }
 0xe26   :  { %v2684_v30 = vsub.f32 %v2612_v27, %v2683_v29  ;;  %9140 = vmatmul.mubr.f32.vlgmr.msra.gmra.mxu1 %v2683_v29 }
 0xe27   :  { %9154 = vmatpush3.msra.mxu1 %v9950_v4  ;;  %9161 = vmatprep.mubr.msk.f32.mxu1 %vm9916_vm1, %v9915_v0 }
 0xe28   :  { %v2685_v31 = vand.u32 4294901760, %v2684_v30  ;;  %9155 = vmatprep.subr.mxu1 %v9915_v0 }
 0xe29   :  { %9156 = vmatpush3.msra.mxu1 %v9952_v5 }
 0xe2a   :  { %v2686_v32 = vsub.f32 %v2684_v30, %v2685_v31  ;;  %9157 = vmatprep.subr.mxu1 %v9915_v0 }
 0xe2b   :  { %9158 = vmatpush3.msra.mxu1 %v9954_v6 }
 0xe2c   :  { %9159 = vmatprep.subr.mxu1 %v9915_v0  ;;  %v2687_v33 = vand.u32 4294901760, %v2686_v32 }
 0xe2d   :  { %9160 = vmatpush3.msra.mxu1 %v9963_v8 }
 0xe2e   :  { %9162 = vmatmul.mubr.f32.vlgmr.msra.gmra.mxu1 %v2685_v31  ;;  %9175 = vmatprep.subr.mxu1 %v9915_v0 }
 0xe2f   :  { %9129 = vmatmul.mubr.f32.vlgmr.msra.gmra.mxu0 %v2687_v33  ;;  %9176 = vmatpush3.msra.mxu1 %v9950_v4 }
 0xe30   :  { %9143 = vmatpush3.msra.mxu0 %v9967_v9  ;;  %9177 = vmatprep.subr.mxu1 %v9915_v0 }
 0xe31   :  { %9144 = vmatprep.subr.mxu0 %v9915_v0  ;;  %9178 = vmatpush3.msra.mxu1 %v9952_v5 }
 0xe32   :  { %9145 = vmatpush3.msra.mxu0 %v9970_v10  ;;  %9179 = vmatprep.subr.mxu1 %v9915_v0 }
 0xe33   :  { %9146 = vmatprep.subr.mxu0 %v9915_v0  ;;  %9180 = vmatpush3.msra.mxu1 %v9954_v6 }
 0xe34   :  { %9147 = vmatpush3.msra.mxu0 %v9973_v11  ;;  %9181 = vmatprep.subr.mxu1 %v9915_v0 }
 0xe35   :  { %9148 = vmatprep.subr.mxu0 %v9915_v0  ;;  %9150 = vmatprep.mubr.msk.f32.mxu0 %vm9916_vm1, %v9915_v0 }
 0xe36   :  { %9149 = vmatpush3.msra.mxu0 %v9977_v12  ;;  %9182 = vmatpush3.msra.mxu1 %v9963_v8 }
 0xe37   :  { %9183 = vmatprep.mubr.msk.f32.mxu1 %vm9916_vm1, %v9915_v0  ;;  %9151 = vmatmul.mubr.f32.vlgmr.msra.gmra.mxu0 %v2684_v30 }
 0xe38   :  { %9164 = vmatprep.subr.mxu0 %v9915_v0  ;;  %9184 = vmatmul.mubr.f32.vlgmr.msra.gmra.mxu1 %v2683_v29 }
 0xe39   :  { %9165 = vmatpush3.msra.mxu0 %v9980_v13  ;;  %9172 = vmatprep.mubr.msk.f32.mxu0 %vm9916_vm1, %v9915_v0 }
 0xe3a   :  { %9166 = vmatprep.subr.mxu0 %v9915_v0  ;;  %9197 = vmatprep.subr.mxu1 %v9915_v0 }
 0xe3b   :  { %9167 = vmatpush3.msra.mxu0 %v9984_v14  ;;  %9198 = vmatpush3.msra.mxu1 %v10002_v22 }
 0xe3c   :  { %9168 = vmatprep.subr.mxu0 %v9915_v0  ;;  %9199 = vmatprep.subr.mxu1 %v9915_v0 }
 0xe3d   :  { %9169 = vmatpush3.msra.mxu0 %v9987_v15  ;;  %9200 = vmatpush3.msra.mxu1 %v10004_v23 }
 0xe3e   :  { %9170 = vmatprep.subr.mxu0 %v9915_v0  ;;  %9201 = vmatprep.subr.mxu1 %v9915_v0 }
 0xe3f   :  { %9171 = vmatpush3.msra.mxu0 %v9991_v16  ;;  %9202 = vmatpush3.msra.mxu1 %v10011_v26 }
 0xe40   :  { %9173 = vmatmul.mubr.f32.vlgmr.msra.gmra.mxu0 %v2683_v29  ;;  %9203 = vmatprep.subr.mxu1 %v9915_v0 }
 0xe41   :  { %9204 = vmatpush3.msra.mxu1 %v10015_v28  ;;  %9186 = vmatprep.subr.mxu0 %v9915_v0 }
 0xe42   :  { %9205 = vmatprep.mubr.msk.f32.mxu1 %vm9916_vm1, %v9915_v0  ;;  %9219 = vmatprep.subr.mxu1 %v9915_v0 }
 0xe43   :  { %9187 = vmatpush3.msra.mxu0 %v9950_v4  ;;  %9194 = vmatprep.mubr.msk.f32.mxu0 %vm9916_vm1, %v9915_v0 }
 0xe44   :  { %9188 = vmatprep.subr.mxu0 %v9915_v0 }
 0xe45   :  { %9189 = vmatpush3.msra.mxu0 %v9952_v5 }
 0xe46   :  { %9190 = vmatprep.subr.mxu0 %v9915_v0 }
 0xe47   :  { %9191 = vmatpush3.msra.mxu0 %v9954_v6 }
 0xe48   :  { %9192 = vmatprep.subr.mxu0 %v9915_v0 }
 0xe49   :  { %9193 = vmatpush3.msra.mxu0 %v9963_v8 }
 0xe4a   :  { %9208 = vmatprep.subr.mxu0 %v9915_v0 }
 0xee6   :  { %v2780_v35 = vpop.f32.mrf.mxu1 }
 0xee8   :  { %v9141_v36 = vpop.f32.mrf.mxu1 }
 0xeee   :  { %v2937_v37 = vpop.f32.mrf.mxu1 }
 0xeef   :  { %v2689_v38 = vpop.f32.mrf.mxu0 }
 0xef0   :  { %v9163_v39 = vpop.f32.mrf.mxu1  ;;  %v2781_v44 = vadd.f32 %v2780_v35, %v2689_v38 }
 0xef1   :  { %v9130_v40 = vpop.f32.mrf.mxu0 }
 0xef7   :  { %v2860_v41 = vpop.f32.mrf.mxu0 }
 0xef8   :  { %v3095_v42 = vpop.f32.mrf.mxu1  ;;  %v2861_v47 = vadd.f32 %v2860_v41, %v2781_v44  ;;  %v8300_v44 = vld [vmem:[%s11268_s0 + $0x30] sm:$0xff] }
 0xef9   :  { %v9152_v45 = vpop.f32.mrf.mxu0 }
 0xefa   :  { %v9185_v46 = vpop.f32.mrf.mxu1  ;;  %v2938_v48 = vadd.f32 %v2937_v37, %v2861_v47 }
 0xf00   :  { %v3020_v49 = vpop.f32.mrf.mxu0 }
 0xf01   :  { %v3021_v50 = vadd.f32 %v3020_v49, %v2938_v48 }
 0xf02   :  { %v9174_v52 = vpop.f32.mrf.mxu0 }
 0xf03   :  { %v3096_v54 = vadd.f32 %v3095_v42, %v3021_v50 }
 0xf05   :  { %v3099_v55 = vadd.f32 %v8299_v51, %v3096_v54 }
 0xf07   :  { %9871 = vtanh.f32 %v3099_v55 }
 0xf14   :  { %v9872_v56 = vpop.eup %9871 }
 0xf15   :  { %3105 = vrot.lane.b32.xlu1 %v9872_v56, %s9917_s18  ;;  %v3101_v57 = vmul.f32 0.5, %v9872_v56 }
 0xf17   :  { %v3102_v58 = vadd.f32 0.5, %v3101_v57 }
 0xf19   :  { %v3103_v61 = vmul.f32 %v3102_v58, %v10389_v19 }
 0xf87   :  { %v3106_v59 = vpop.permute.xlu1 %3105 }
 0xf88   :  { %v3108_v60 = vmul.f32 %v3106_v59, %v3102_v58 }
 0xf8a   :  { %3110 = vrot.lane.b32.xlu0 %v3108_v60, %s9917_s18 }
 0xffc   :  { %v3111_v62 = vpop.permute.xlu0 %3110 }
 0xffd   :  { %v10465_v63 = vadd.f32 %v3111_v62, %v3103_v61 }
 0xfff   :  { %9873 = vtanh.f32 %v10465_v63 }
0x100c   :  { %v9874_v1 = vpop.eup %9873 }
0x100d   :  { %3116 = vrot.lane.b32.xlu1 %v9874_v1, %s9917_s18 }
0x107f   :  { %v3117_v2 = vpop.permute.xlu1 %3116 }
0x1080   :  { %v10469_v3 = vmul.f32 %v3117_v2, %v3102_v58 }
0x1082   :  { %3127 = vrot.lane.b32.xlu0 %v10469_v3, %s9918_s19 }
0x10f4   :  { %v3128_v7 = vpop.permute.xlu0 %3127 }
0x10f5   :  { %v3129_v17 = vsel %vm15_vm0, %v3128_v7, 0 }
0x10f6   :  { %v3200_v18 = vand.u32 4294901760, %v3129_v17 }
0x10f8   :  { %v3201_v20 = vsub.f32 %v3129_v17, %v3200_v18  ;;  %9206 = vmatmul.mubr.f32.vlgmr.msra.gmra.mxu1 %v3200_v18 }
0x10f9   :  { %9220 = vmatpush3.msra.mxu1 %v9950_v4  ;;  %9227 = vmatprep.mubr.msk.f32.mxu1 %vm9916_vm1, %v9915_v0 }
0x10fa   :  { %v3202_v19 = vand.u32 4294901760, %v3201_v20  ;;  %9221 = vmatprep.subr.mxu1 %v9915_v0 }
0x10fb   :  { %9222 = vmatpush3.msra.mxu1 %v9952_v5 }
0x10fc   :  { %v3203_v21 = vsub.f32 %v3201_v20, %v3202_v19  ;;  %9223 = vmatprep.subr.mxu1 %v9915_v0 }
0x10fd   :  { %9224 = vmatpush3.msra.mxu1 %v9954_v6 }
0x10fe   :  { %v3204_v24 = vand.u32 4294901760, %v3203_v21  ;;  %9225 = vmatprep.subr.mxu1 %v9915_v0 }
0x10ff   :  { %9226 = vmatpush3.msra.mxu1 %v9963_v8 }
0x1100   :  { %9228 = vmatmul.mubr.f32.vlgmr.msra.gmra.mxu1 %v3202_v19  ;;  %9241 = vmatprep.subr.mxu1 %v9915_v0 }
0x1101   :  { %9195 = vmatmul.mubr.f32.vlgmr.msra.gmra.mxu0 %v3204_v24  ;;  %9242 = vmatpush3.msra.mxu1 %v9950_v4 }
0x1102   :  { %9209 = vmatpush3.msra.mxu0 %v9967_v9  ;;  %9243 = vmatprep.subr.mxu1 %v9915_v0 }
0x1103   :  { %9210 = vmatprep.subr.mxu0 %v9915_v0  ;;  %9244 = vmatpush3.msra.mxu1 %v9952_v5 }
0x1104   :  { %9211 = vmatpush3.msra.mxu0 %v9970_v10  ;;  %9245 = vmatprep.subr.mxu1 %v9915_v0 }
0x1105   :  { %9212 = vmatprep.subr.mxu0 %v9915_v0  ;;  %9246 = vmatpush3.msra.mxu1 %v9954_v6 }
0x1106   :  { %9213 = vmatpush3.msra.mxu0 %v9973_v11  ;;  %9247 = vmatprep.subr.mxu1 %v9915_v0 }
0x1107   :  { %9214 = vmatprep.subr.mxu0 %v9915_v0  ;;  %9216 = vmatprep.mubr.msk.f32.mxu0 %vm9916_vm1, %v9915_v0 }
0x1108   :  { %9215 = vmatpush3.msra.mxu0 %v9977_v12  ;;  %9248 = vmatpush3.msra.mxu1 %v9963_v8 }
0x1109   :  { %9249 = vmatprep.mubr.msk.f32.mxu1 %vm9916_vm1, %v9915_v0  ;;  %9217 = vmatmul.mubr.f32.vlgmr.msra.gmra.mxu0 %v3201_v20 }
0x110a   :  { %9230 = vmatprep.subr.mxu0 %v9915_v0  ;;  %9250 = vmatmul.mubr.f32.vlgmr.msra.gmra.mxu1 %v3200_v18 }
0x110b   :  { %9231 = vmatpush3.msra.mxu0 %v9980_v13  ;;  %9238 = vmatprep.mubr.msk.f32.mxu0 %vm9916_vm1, %v9915_v0 }
0x110c   :  { %9232 = vmatprep.subr.mxu0 %v9915_v0  ;;  %9263 = vmatprep.subr.mxu1 %v9915_v0 }
0x110d   :  { %9233 = vmatpush3.msra.mxu0 %v9984_v14  ;;  %9264 = vmatpush3.msra.mxu1 %v10002_v22 }
0x110e   :  { %9234 = vmatprep.subr.mxu0 %v9915_v0  ;;  %9265 = vmatprep.subr.mxu1 %v9915_v0 }
0x110f   :  { %9235 = vmatpush3.msra.mxu0 %v9987_v15  ;;  %9266 = vmatpush3.msra.mxu1 %v10004_v23 }
0x1110   :  { %9236 = vmatprep.subr.mxu0 %v9915_v0  ;;  %9267 = vmatprep.subr.mxu1 %v9915_v0 }
0x1111   :  { %9237 = vmatpush3.msra.mxu0 %v9991_v16  ;;  %9268 = vmatpush3.msra.mxu1 %v10011_v26 }
0x1112   :  { %9239 = vmatmul.mubr.f32.vlgmr.msra.gmra.mxu0 %v3200_v18  ;;  %9269 = vmatprep.subr.mxu1 %v9915_v0 }
0x1113   :  { %9270 = vmatpush3.msra.mxu1 %v10015_v28  ;;  %9252 = vmatprep.subr.mxu0 %v9915_v0 }
0x1114   :  { %9271 = vmatprep.mubr.msk.f32.mxu1 %vm9916_vm1, %v9915_v0  ;;  %9285 = vmatprep.subr.mxu1 %v9915_v0 }
0x1115   :  { %9253 = vmatpush3.msra.mxu0 %v9950_v4  ;;  %9260 = vmatprep.mubr.msk.f32.mxu0 %vm9916_vm1, %v9915_v0 }
0x1116   :  { %9254 = vmatprep.subr.mxu0 %v9915_v0 }
0x1117   :  { %9255 = vmatpush3.msra.mxu0 %v9952_v5 }
0x1118   :  { %9256 = vmatprep.subr.mxu0 %v9915_v0 }
0x1119   :  { %9257 = vmatpush3.msra.mxu0 %v9954_v6 }
0x111a   :  { %9258 = vmatprep.subr.mxu0 %v9915_v0 }
0x111b   :  { %9259 = vmatpush3.msra.mxu0 %v9963_v8 }
0x111c   :  { %9274 = vmatprep.subr.mxu0 %v9915_v0 }
0x11b8   :  { %v3297_v25 = vpop.f32.mrf.mxu1 }
0x11ba   :  { %v9207_v27 = vpop.f32.mrf.mxu1 }
0x11c0   :  { %v3454_v29 = vpop.f32.mrf.mxu1 }
0x11c1   :  { %v3206_v30 = vpop.f32.mrf.mxu0 }
0x11c2   :  { %v9229_v31 = vpop.f32.mrf.mxu1  ;;  %v3298_v36 = vadd.f32 %v3297_v25, %v3206_v30 }
0x11c3   :  { %v9196_v32 = vpop.f32.mrf.mxu0 }
0x11c9   :  { %v3377_v33 = vpop.f32.mrf.mxu0 }
0x11ca   :  { %v3612_v35 = vpop.f32.mrf.mxu1  ;;  %v3378_v39 = vadd.f32 %v3377_v33, %v3298_v36 }
0x11cb   :  { %v9218_v37 = vpop.f32.mrf.mxu0 }
0x11cc   :  { %v9251_v38 = vpop.f32.mrf.mxu1  ;;  %v3455_v40 = vadd.f32 %v3454_v29, %v3378_v39  ;;  %v8301_v37 = vld [vmem:[%s11268_s0 + $0x38] sm:$0xff] }
0x11d2   :  { %v3537_v41 = vpop.f32.mrf.mxu0 }
0x11d3   :  { %v3538_v42 = vadd.f32 %v3537_v41, %v3455_v40 }
0x11d4   :  { %v9240_v45 = vpop.f32.mrf.mxu0 }
0x11d5   :  { %v3613_v46 = vadd.f32 %v3612_v35, %v3538_v42 }
0x11d7   :  { %v3616_v47 = vadd.f32 %v8300_v44, %v3613_v46 }
0x11d9   :  { %9875 = vtanh.f32 %v3616_v47 }
0x11e6   :  { %v9876_v48 = vpop.eup %9875 }
0x11e7   :  { %3622 = vrot.lane.b32.xlu1 %v9876_v48, %s9917_s18  ;;  %v3618_v49 = vmul.f32 0.5, %v9876_v48 }
0x11e9   :  { %v3619_v50 = vadd.f32 0.5, %v3618_v49 }
0x11eb   :  { %v3620_v54 = vmul.f32 %v3619_v50, %v10465_v63 }
0x1259   :  { %v3623_v51 = vpop.permute.xlu1 %3622 }
0x125a   :  { %v3625_v52 = vmul.f32 %v3623_v51, %v3619_v50 }
0x125c   :  { %3627 = vrot.lane.b32.xlu0 %v3625_v52, %s9917_s18 }
0x12ce   :  { %v3628_v55 = vpop.permute.xlu0 %3627 }
0x12cf   :  { %v10540_v56 = vadd.f32 %v3628_v55, %v3620_v54 }
0x12d1   :  { %9877 = vtanh.f32 %v10540_v56 }
0x12de   :  { %v9878_v57 = vpop.eup %9877 }
0x12df   :  { %3633 = vrot.lane.b32.xlu1 %v9878_v57, %s9917_s18 }
0x1351   :  { %v3634_v58 = vpop.permute.xlu1 %3633 }
0x1352   :  { %v10544_v59 = vmul.f32 %v3634_v58, %v3619_v50 }
0x1354   :  { %3641 = vrot.lane.b32.xlu0 %v10544_v59, %s9918_s19 }
0x13c6   :  { %v3642_v60 = vpop.permute.xlu0 %3641 }
0x13c7   :  { %v3643_v61 = vsel %vm15_vm0, %v3642_v60, 0 }
0x13c8   :  { %v3714_v62 = vand.u32 4294901760, %v3643_v61 }
0x13ca   :  { %v3715_v1 = vsub.f32 %v3643_v61, %v3714_v62  ;;  %9272 = vmatmul.mubr.f32.vlgmr.msra.gmra.mxu1 %v3714_v62 }
0x13cb   :  { %9286 = vmatpush3.msra.mxu1 %v9950_v4  ;;  %9293 = vmatprep.mubr.msk.f32.mxu1 %vm9916_vm1, %v9915_v0 }
0x13cc   :  { %v3716_v63 = vand.u32 4294901760, %v3715_v1  ;;  %9287 = vmatprep.subr.mxu1 %v9915_v0 }
0x13cd   :  { %9288 = vmatpush3.msra.mxu1 %v9952_v5 }
0x13ce   :  { %v3717_v2 = vsub.f32 %v3715_v1, %v3716_v63  ;;  %9289 = vmatprep.subr.mxu1 %v9915_v0 }
0x13cf   :  { %9290 = vmatpush3.msra.mxu1 %v9954_v6 }
0x13d0   :  { %v3718_v7 = vand.u32 4294901760, %v3717_v2  ;;  %9291 = vmatprep.subr.mxu1 %v9915_v0 }
0x13d1   :  { %9292 = vmatpush3.msra.mxu1 %v9963_v8 }
0x13d2   :  { %9294 = vmatmul.mubr.f32.vlgmr.msra.gmra.mxu1 %v3716_v63  ;;  %9307 = vmatprep.subr.mxu1 %v9915_v0 }
0x13d3   :  { %9261 = vmatmul.mubr.f32.vlgmr.msra.gmra.mxu0 %v3718_v7  ;;  %9308 = vmatpush3.msra.mxu1 %v9950_v4 }
0x13d4   :  { %9275 = vmatpush3.msra.mxu0 %v9967_v9  ;;  %9309 = vmatprep.subr.mxu1 %v9915_v0 }
0x13d5   :  { %9276 = vmatprep.subr.mxu0 %v9915_v0  ;;  %9310 = vmatpush3.msra.mxu1 %v9952_v5 }
0x13d6   :  { %9277 = vmatpush3.msra.mxu0 %v9970_v10  ;;  %9311 = vmatprep.subr.mxu1 %v9915_v0 }
0x13d7   :  { %9278 = vmatprep.subr.mxu0 %v9915_v0  ;;  %9312 = vmatpush3.msra.mxu1 %v9954_v6 }
0x13d8   :  { %9279 = vmatpush3.msra.mxu0 %v9973_v11  ;;  %9313 = vmatprep.subr.mxu1 %v9915_v0 }
0x13d9   :  { %9280 = vmatprep.subr.mxu0 %v9915_v0  ;;  %9282 = vmatprep.mubr.msk.f32.mxu0 %vm9916_vm1, %v9915_v0 }
0x13da   :  { %9281 = vmatpush3.msra.mxu0 %v9977_v12  ;;  %9314 = vmatpush3.msra.mxu1 %v9963_v8 }
0x13db   :  { %9315 = vmatprep.mubr.msk.f32.mxu1 %vm9916_vm1, %v9915_v0  ;;  %9283 = vmatmul.mubr.f32.vlgmr.msra.gmra.mxu0 %v3715_v1 }
0x13dc   :  { %9296 = vmatprep.subr.mxu0 %v9915_v0  ;;  %9316 = vmatmul.mubr.f32.vlgmr.msra.gmra.mxu1 %v3714_v62 }
0x13dd   :  { %9297 = vmatpush3.msra.mxu0 %v9980_v13  ;;  %9304 = vmatprep.mubr.msk.f32.mxu0 %vm9916_vm1, %v9915_v0 }
0x13de   :  { %9298 = vmatprep.subr.mxu0 %v9915_v0  ;;  %9329 = vmatprep.subr.mxu1 %v9915_v0 }
0x13df   :  { %9299 = vmatpush3.msra.mxu0 %v9984_v14  ;;  %9330 = vmatpush3.msra.mxu1 %v10002_v22 }
0x13e0   :  { %9300 = vmatprep.subr.mxu0 %v9915_v0  ;;  %9331 = vmatprep.subr.mxu1 %v9915_v0 }
0x13e1   :  { %9301 = vmatpush3.msra.mxu0 %v9987_v15  ;;  %9332 = vmatpush3.msra.mxu1 %v10004_v23 }
0x13e2   :  { %9302 = vmatprep.subr.mxu0 %v9915_v0  ;;  %9333 = vmatprep.subr.mxu1 %v9915_v0 }
0x13e3   :  { %9303 = vmatpush3.msra.mxu0 %v9991_v16  ;;  %9334 = vmatpush3.msra.mxu1 %v10011_v26 }
0x13e4   :  { %9305 = vmatmul.mubr.f32.vlgmr.msra.gmra.mxu0 %v3714_v62  ;;  %9335 = vmatprep.subr.mxu1 %v9915_v0 }
0x13e5   :  { %9336 = vmatpush3.msra.mxu1 %v10015_v28  ;;  %9318 = vmatprep.subr.mxu0 %v9915_v0 }
0x13e6   :  { %9337 = vmatprep.mubr.msk.f32.mxu1 %vm9916_vm1, %v9915_v0  ;;  %9351 = vmatprep.subr.mxu1 %v9915_v0 }
0x13e7   :  { %9319 = vmatpush3.msra.mxu0 %v9950_v4  ;;  %9326 = vmatprep.mubr.msk.f32.mxu0 %vm9916_vm1, %v9915_v0 }
0x13e8   :  { %9320 = vmatprep.subr.mxu0 %v9915_v0 }
0x13e9   :  { %9321 = vmatpush3.msra.mxu0 %v9952_v5 }
0x13ea   :  { %9322 = vmatprep.subr.mxu0 %v9915_v0 }
0x13eb   :  { %9323 = vmatpush3.msra.mxu0 %v9954_v6 }
0x13ec   :  { %9324 = vmatprep.subr.mxu0 %v9915_v0 }
0x13ed   :  { %9325 = vmatpush3.msra.mxu0 %v9963_v8 }
0x13ee   :  { %9340 = vmatprep.subr.mxu0 %v9915_v0 }
0x148a   :  { %v3811_v17 = vpop.f32.mrf.mxu1 }
0x148c   :  { %v9273_v18 = vpop.f32.mrf.mxu1 }
0x1492   :  { %v3968_v20 = vpop.f32.mrf.mxu1 }
0x1493   :  { %v3720_v19 = vpop.f32.mrf.mxu0 }
0x1494   :  { %v9295_v21 = vpop.f32.mrf.mxu1  ;;  %v3812_v29 = vadd.f32 %v3811_v17, %v3720_v19 }
0x1495   :  { %v9262_v24 = vpop.f32.mrf.mxu0 }
0x149b   :  { %v3891_v25 = vpop.f32.mrf.mxu0 }
0x149c   :  { %v4126_v27 = vpop.f32.mrf.mxu1  ;;  %v3892_v32 = vadd.f32 %v3891_v25, %v3812_v29 }
0x149d   :  { %v9284_v30 = vpop.f32.mrf.mxu0 }
0x149e   :  { %v9317_v31 = vpop.f32.mrf.mxu1  ;;  %v3969_v33 = vadd.f32 %v3968_v20, %v3892_v32 }
0x149f   :  { %v8302_v31 = vld [vmem:[%s11268_s0 + $0x40] sm:$0xff] }
0x14a4   :  { %v4051_v35 = vpop.f32.mrf.mxu0 }
0x14a5   :  { %v4052_v36 = vadd.f32 %v4051_v35, %v3969_v33 }
0x14a6   :  { %v9306_v38 = vpop.f32.mrf.mxu0 }
0x14a7   :  { %v4127_v39 = vadd.f32 %v4126_v27, %v4052_v36 }
0x14a9   :  { %v4130_v40 = vadd.f32 %v8301_v37, %v4127_v39 }
0x14ab   :  { %9879 = vtanh.f32 %v4130_v40 }
0x14b8   :  { %v9880_v41 = vpop.eup %9879 }
0x14b9   :  { %4136 = vrot.lane.b32.xlu1 %v9880_v41, %s9917_s18  ;;  %v4132_v42 = vmul.f32 0.5, %v9880_v41 }
0x14bb   :  { %v4133_v44 = vadd.f32 0.5, %v4132_v42 }
0x14bd   :  { %v4134_v47 = vmul.f32 %v4133_v44, %v10540_v56 }
0x152b   :  { %v4137_v45 = vpop.permute.xlu1 %4136 }
0x152c   :  { %v4139_v46 = vmul.f32 %v4137_v45, %v4133_v44 }
0x152e   :  { %4141 = vrot.lane.b32.xlu0 %v4139_v46, %s9917_s18 }
0x15a0   :  { %v4142_v48 = vpop.permute.xlu0 %4141 }
0x15a1   :  { %v10615_v49 = vadd.f32 %v4142_v48, %v4134_v47 }
0x15a3   :  { %9881 = vtanh.f32 %v10615_v49 }
0x15b0   :  { %v9882_v50 = vpop.eup %9881 }
0x15b1   :  { %4147 = vrot.lane.b32.xlu1 %v9882_v50, %s9917_s18 }
0x1623   :  { %v4148_v51 = vpop.permute.xlu1 %4147 }
0x1624   :  { %v10619_v52 = vmul.f32 %v4148_v51, %v4133_v44 }
0x1626   :  { %4158 = vrot.lane.b32.xlu0 %v10619_v52, %s9918_s19 }
0x1698   :  { %v4159_v54 = vpop.permute.xlu0 %4158 }
0x1699   :  { %v4160_v55 = vsel %vm15_vm0, %v4159_v54, 0 }
0x169a   :  { %v4231_v57 = vand.u32 4294901760, %v4160_v55 }
0x169c   :  { %v4232_v58 = vsub.f32 %v4160_v55, %v4231_v57  ;;  %9338 = vmatmul.mubr.f32.vlgmr.msra.gmra.mxu1 %v4231_v57 }
0x169d   :  { %9352 = vmatpush3.msra.mxu1 %v9950_v4  ;;  %9359 = vmatprep.mubr.msk.f32.mxu1 %vm9916_vm1, %v9915_v0 }
0x169e   :  { %v4233_v56 = vand.u32 4294901760, %v4232_v58  ;;  %9353 = vmatprep.subr.mxu1 %v9915_v0 }
0x169f   :  { %9354 = vmatpush3.msra.mxu1 %v9952_v5 }
0x16a0   :  { %v4234_v60 = vsub.f32 %v4232_v58, %v4233_v56  ;;  %9355 = vmatprep.subr.mxu1 %v9915_v0 }
0x16a1   :  { %9356 = vmatpush3.msra.mxu1 %v9954_v6 }
0x16a2   :  { %v4235_v61 = vand.u32 4294901760, %v4234_v60  ;;  %9357 = vmatprep.subr.mxu1 %v9915_v0 }
0x16a3   :  { %9358 = vmatpush3.msra.mxu1 %v9963_v8 }
0x16a4   :  { %9360 = vmatmul.mubr.f32.vlgmr.msra.gmra.mxu1 %v4233_v56  ;;  %9373 = vmatprep.subr.mxu1 %v9915_v0 }
0x16a5   :  { %9327 = vmatmul.mubr.f32.vlgmr.msra.gmra.mxu0 %v4235_v61  ;;  %9374 = vmatpush3.msra.mxu1 %v9950_v4 }
0x16a6   :  { %9341 = vmatpush3.msra.mxu0 %v9967_v9  ;;  %9375 = vmatprep.subr.mxu1 %v9915_v0 }
0x16a7   :  { %9342 = vmatprep.subr.mxu0 %v9915_v0  ;;  %9376 = vmatpush3.msra.mxu1 %v9952_v5 }
0x16a8   :  { %9343 = vmatpush3.msra.mxu0 %v9970_v10  ;;  %9377 = vmatprep.subr.mxu1 %v9915_v0 }
0x16a9   :  { %9344 = vmatprep.subr.mxu0 %v9915_v0  ;;  %9378 = vmatpush3.msra.mxu1 %v9954_v6 }
0x16aa   :  { %9345 = vmatpush3.msra.mxu0 %v9973_v11  ;;  %9379 = vmatprep.subr.mxu1 %v9915_v0 }
0x16ab   :  { %9346 = vmatprep.subr.mxu0 %v9915_v0  ;;  %9348 = vmatprep.mubr.msk.f32.mxu0 %vm9916_vm1, %v9915_v0 }
0x16ac   :  { %9347 = vmatpush3.msra.mxu0 %v9977_v12  ;;  %9380 = vmatpush3.msra.mxu1 %v9963_v8 }
0x16ad   :  { %9381 = vmatprep.mubr.msk.f32.mxu1 %vm9916_vm1, %v9915_v0  ;;  %9349 = vmatmul.mubr.f32.vlgmr.msra.gmra.mxu0 %v4232_v58 }
0x16ae   :  { %9362 = vmatprep.subr.mxu0 %v9915_v0  ;;  %9382 = vmatmul.mubr.f32.vlgmr.msra.gmra.mxu1 %v4231_v57 }
0x16af   :  { %9363 = vmatpush3.msra.mxu0 %v9980_v13  ;;  %9370 = vmatprep.mubr.msk.f32.mxu0 %vm9916_vm1, %v9915_v0 }
0x16b0   :  { %9364 = vmatprep.subr.mxu0 %v9915_v0  ;;  %9395 = vmatprep.subr.mxu1 %v9915_v0 }
0x16b1   :  { %9365 = vmatpush3.msra.mxu0 %v9984_v14  ;;  %9396 = vmatpush3.msra.mxu1 %v10002_v22 }
0x16b2   :  { %9366 = vmatprep.subr.mxu0 %v9915_v0  ;;  %9397 = vmatprep.subr.mxu1 %v9915_v0 }
0x16b3   :  { %9367 = vmatpush3.msra.mxu0 %v9987_v15  ;;  %9398 = vmatpush3.msra.mxu1 %v10004_v23 }
0x16b4   :  { %9368 = vmatprep.subr.mxu0 %v9915_v0  ;;  %9399 = vmatprep.subr.mxu1 %v9915_v0 }
0x16b5   :  { %9369 = vmatpush3.msra.mxu0 %v9991_v16  ;;  %9400 = vmatpush3.msra.mxu1 %v10011_v26 }
0x16b6   :  { %9371 = vmatmul.mubr.f32.vlgmr.msra.gmra.mxu0 %v4231_v57  ;;  %9401 = vmatprep.subr.mxu1 %v9915_v0 }
0x16b7   :  { %9402 = vmatpush3.msra.mxu1 %v10015_v28  ;;  %9384 = vmatprep.subr.mxu0 %v9915_v0 }
0x16b8   :  { %9403 = vmatprep.mubr.msk.f32.mxu1 %vm9916_vm1, %v9915_v0  ;;  %9417 = vmatprep.subr.mxu1 %v9915_v0 }
0x16b9   :  { %9385 = vmatpush3.msra.mxu0 %v9950_v4  ;;  %9392 = vmatprep.mubr.msk.f32.mxu0 %vm9916_vm1, %v9915_v0 }
0x16ba   :  { %9386 = vmatprep.subr.mxu0 %v9915_v0 }
0x16bb   :  { %9387 = vmatpush3.msra.mxu0 %v9952_v5 }
0x16bc   :  { %9388 = vmatprep.subr.mxu0 %v9915_v0 }
0x16bd   :  { %9389 = vmatpush3.msra.mxu0 %v9954_v6 }
0x16be   :  { %9390 = vmatprep.subr.mxu0 %v9915_v0 }
0x16bf   :  { %9391 = vmatpush3.msra.mxu0 %v9963_v8 }
0x16c0   :  { %9406 = vmatprep.subr.mxu0 %v9915_v0 }
0x175c   :  { %v4328_v62 = vpop.f32.mrf.mxu1 }
0x175e   :  { %v9339_v1 = vpop.f32.mrf.mxu1 }
0x1764   :  { %v4485_v63 = vpop.f32.mrf.mxu1 }
0x1765   :  { %v4237_v2 = vpop.f32.mrf.mxu0 }
0x1766   :  { %v9361_v7 = vpop.f32.mrf.mxu1  ;;  %v4329_v19 = vadd.f32 %v4328_v62, %v4237_v2 }
0x1767   :  { %v9328_v17 = vpop.f32.mrf.mxu0 }
0x176d   :  { %v4408_v18 = vpop.f32.mrf.mxu0 }
0x176e   :  { %v4643_v20 = vpop.f32.mrf.mxu1  ;;  %v4409_v25 = vadd.f32 %v4408_v18, %v4329_v19 }
0x176f   :  { %v9350_v21 = vpop.f32.mrf.mxu0 }
0x1770   :  { %v9383_v24 = vpop.f32.mrf.mxu1  ;;  %v4486_v27 = vadd.f32 %v4485_v63, %v4409_v25  ;;  %v8303_v25 = vld [vmem:[%s11268_s0 + $0x48] sm:$0xff] }
0x1776   :  { %v4568_v29 = vpop.f32.mrf.mxu0 }
0x1777   :  { %v4569_v30 = vadd.f32 %v4568_v29, %v4486_v27 }
0x1778   :  { %v9372_v32 = vpop.f32.mrf.mxu0 }
0x1779   :  { %v4644_v33 = vadd.f32 %v4643_v20, %v4569_v30 }
0x177b   :  { %v4647_v35 = vadd.f32 %v8302_v31, %v4644_v33 }
0x177d   :  { %9883 = vtanh.f32 %v4647_v35 }
0x178a   :  { %v9884_v36 = vpop.eup %9883 }
0x178b   :  { %4653 = vrot.lane.b32.xlu1 %v9884_v36, %s9917_s18  ;;  %v4649_v37 = vmul.f32 0.5, %v9884_v36 }
0x178d   :  { %v4650_v38 = vadd.f32 0.5, %v4649_v37 }
0x178f   :  { %v4651_v41 = vmul.f32 %v4650_v38, %v10615_v49 }
0x17fd   :  { %v4654_v39 = vpop.permute.xlu1 %4653 }
0x17fe   :  { %v4656_v40 = vmul.f32 %v4654_v39, %v4650_v38 }
0x1800   :  { %4658 = vrot.lane.b32.xlu0 %v4656_v40, %s9917_s18 }
0x1872   :  { %v4659_v42 = vpop.permute.xlu0 %4658 }
0x1873   :  { %v10690_v44 = vadd.f32 %v4659_v42, %v4651_v41 }
0x1875   :  { %9885 = vtanh.f32 %v10690_v44 }
0x1882   :  { %v9886_v45 = vpop.eup %9885 }
0x1883   :  { %4664 = vrot.lane.b32.xlu1 %v9886_v45, %s9917_s18 }
0x18f5   :  { %v4665_v46 = vpop.permute.xlu1 %4664 }
0x18f6   :  { %v4667_v47 = vmul.f32 %v4665_v46, %v4650_v38 }
0x18f8   :  { %4669 = vrot.lane.b32.xlu0 %v4667_v47, %s9918_s19 }
0x196a   :  { %v4670_v48 = vpop.permute.xlu0 %4669 }
0x196b   :  { %4672 = vst.msk [vmem:[%s11269_s2 + $0x10] sm:$0xff] %vm15_vm0, %v4670_v48  ;;  %v4675_v49 = vsel %vm15_vm0, %v4670_v48, 0 }
0x196c   :  { %v4746_v50 = vand.u32 4294901760, %v4675_v49 }
0x196e   :  { %v4747_v51 = vsub.f32 %v4675_v49, %v4746_v50  ;;  %9404 = vmatmul.mubr.f32.vlgmr.msra.gmra.mxu1 %v4746_v50 }
0x196f   :  { %9418 = vmatpush3.msra.mxu1 %v9950_v4  ;;  %9425 = vmatprep.mubr.msk.f32.mxu1 %vm9916_vm1, %v9915_v0 }
0x1970   :  { %v4748_v54 = vand.u32 4294901760, %v4747_v51  ;;  %9419 = vmatprep.subr.mxu1 %v9915_v0 }
0x1971   :  { %9420 = vmatpush3.msra.mxu1 %v9952_v5 }
0x1972   :  { %v4749_v55 = vsub.f32 %v4747_v51, %v4748_v54  ;;  %9421 = vmatprep.subr.mxu1 %v9915_v0 }
0x1973   :  { %9422 = vmatpush3.msra.mxu1 %v9954_v6 }
0x1974   :  { %9423 = vmatprep.subr.mxu1 %v9915_v0  ;;  %v4750_v57 = vand.u32 4294901760, %v4749_v55 }
0x1975   :  { %9424 = vmatpush3.msra.mxu1 %v9963_v8 }
0x1976   :  { %9426 = vmatmul.mubr.f32.vlgmr.msra.gmra.mxu1 %v4748_v54  ;;  %9439 = vmatprep.subr.mxu1 %v9915_v0 }
0x1977   :  { %9393 = vmatmul.mubr.f32.vlgmr.msra.gmra.mxu0 %v4750_v57  ;;  %9440 = vmatpush3.msra.mxu1 %v9950_v4 }
0x1978   :  { %9407 = vmatpush3.msra.mxu0 %v9967_v9  ;;  %9441 = vmatprep.subr.mxu1 %v9915_v0 }
0x1979   :  { %9408 = vmatprep.subr.mxu0 %v9915_v0  ;;  %9442 = vmatpush3.msra.mxu1 %v9952_v5 }
0x197a   :  { %9409 = vmatpush3.msra.mxu0 %v9970_v10  ;;  %9443 = vmatprep.subr.mxu1 %v9915_v0 }
0x197b   :  { %9410 = vmatprep.subr.mxu0 %v9915_v0  ;;  %9444 = vmatpush3.msra.mxu1 %v9954_v6 }
0x197c   :  { %9411 = vmatpush3.msra.mxu0 %v9973_v11  ;;  %9445 = vmatprep.subr.mxu1 %v9915_v0 }
0x197d   :  { %9412 = vmatprep.subr.mxu0 %v9915_v0  ;;  %9414 = vmatprep.mubr.msk.f32.mxu0 %vm9916_vm1, %v9915_v0 }
0x197e   :  { %9413 = vmatpush3.msra.mxu0 %v9977_v12  ;;  %9446 = vmatpush3.msra.mxu1 %v9963_v8 }
0x197f   :  { %9447 = vmatprep.mubr.msk.f32.mxu1 %vm9916_vm1, %v9915_v0  ;;  %9415 = vmatmul.mubr.f32.vlgmr.msra.gmra.mxu0 %v4747_v51 }
0x1980   :  { %9428 = vmatprep.subr.mxu0 %v9915_v0  ;;  %9448 = vmatmul.mubr.f32.vlgmr.msra.gmra.mxu1 %v4746_v50 }
0x1981   :  { %9429 = vmatpush3.msra.mxu0 %v9980_v13  ;;  %9436 = vmatprep.mubr.msk.f32.mxu0 %vm9916_vm1, %v9915_v0 }
0x1982   :  { %9430 = vmatprep.subr.mxu0 %v9915_v0  ;;  %9461 = vmatprep.subr.mxu1 %v9915_v0 }
0x1983   :  { %9431 = vmatpush3.msra.mxu0 %v9984_v14  ;;  %9462 = vmatpush3.msra.mxu1 %v10002_v22 }
0x1984   :  { %9432 = vmatprep.subr.mxu0 %v9915_v0  ;;  %9463 = vmatprep.subr.mxu1 %v9915_v0 }
0x1985   :  { %9433 = vmatpush3.msra.mxu0 %v9987_v15  ;;  %9464 = vmatpush3.msra.mxu1 %v10004_v23 }
0x1986   :  { %9434 = vmatprep.subr.mxu0 %v9915_v0  ;;  %9465 = vmatprep.subr.mxu1 %v9915_v0 }
0x1987   :  { %9435 = vmatpush3.msra.mxu0 %v9991_v16  ;;  %9466 = vmatpush3.msra.mxu1 %v10011_v26 }
0x1988   :  { %9437 = vmatmul.mubr.f32.vlgmr.msra.gmra.mxu0 %v4746_v50  ;;  %9467 = vmatprep.subr.mxu1 %v9915_v0 }
0x1989   :  { %9468 = vmatpush3.msra.mxu1 %v10015_v28  ;;  %9450 = vmatprep.subr.mxu0 %v9915_v0 }
0x198a   :  { %9469 = vmatprep.mubr.msk.f32.mxu1 %vm9916_vm1, %v9915_v0  ;;  %9483 = vmatprep.subr.mxu1 %v9915_v0 }
0x198b   :  { %9451 = vmatpush3.msra.mxu0 %v9950_v4  ;;  %9458 = vmatprep.mubr.msk.f32.mxu0 %vm9916_vm1, %v9915_v0 }
0x198c   :  { %9452 = vmatprep.subr.mxu0 %v9915_v0 }
0x198d   :  { %9453 = vmatpush3.msra.mxu0 %v9952_v5 }
0x198e   :  { %9454 = vmatprep.subr.mxu0 %v9915_v0 }
0x198f   :  { %9455 = vmatpush3.msra.mxu0 %v9954_v6 }
0x1990   :  { %9456 = vmatprep.subr.mxu0 %v9915_v0 }
0x1991   :  { %9457 = vmatpush3.msra.mxu0 %v9963_v8 }
0x1992   :  { %9472 = vmatprep.subr.mxu0 %v9915_v0 }
0x1a2e   :  { %v4843_v58 = vpop.f32.mrf.mxu1 }
0x1a30   :  { %v9405_v56 = vpop.f32.mrf.mxu1 }
0x1a36   :  { %v5000_v60 = vpop.f32.mrf.mxu1 }
0x1a37   :  { %v4752_v61 = vpop.f32.mrf.mxu0 }
0x1a38   :  { %v9427_v62 = vpop.f32.mrf.mxu1  ;;  %v4844_v7 = vadd.f32 %v4843_v58, %v4752_v61 }
0x1a39   :  { %v9394_v1 = vpop.f32.mrf.mxu0 }
0x1a3f   :  { %v4923_v63 = vpop.f32.mrf.mxu0 }
0x1a40   :  { %v5158_v2 = vpop.f32.mrf.mxu1  ;;  %v4924_v20 = vadd.f32 %v4923_v63, %v4844_v7 }
0x1a41   :  { %v9416_v17 = vpop.f32.mrf.mxu0 }
0x1a42   :  { %v9449_v18 = vpop.f32.mrf.mxu1  ;;  %v5001_v19 = vadd.f32 %v5000_v60, %v4924_v20  ;;  %v8304_v20 = vld [vmem:[%s11268_s0 + $0x50] sm:$0xff] }
0x1a48   :  { %v5083_v21 = vpop.f32.mrf.mxu0 }
0x1a49   :  { %v5084_v24 = vadd.f32 %v5083_v21, %v5001_v19 }
0x1a4a   :  { %v9438_v27 = vpop.f32.mrf.mxu0 }
0x1a4b   :  { %v5159_v29 = vadd.f32 %v5158_v2, %v5084_v24 }
0x1a4d   :  { %v5162_v30 = vadd.f32 %v8303_v25, %v5159_v29 }
0x1a4f   :  { %9887 = vtanh.f32 %v5162_v30 }
0x1a5c   :  { %v9888_v31 = vpop.eup %9887 }
0x1a5d   :  { %5168 = vrot.lane.b32.xlu1 %v9888_v31, %s9917_s18  ;;  %v5164_v32 = vmul.f32 0.5, %v9888_v31 }
0x1a5f   :  { %v5165_v33 = vadd.f32 0.5, %v5164_v32 }
0x1a61   :  { %v5166_v37 = vmul.f32 %v5165_v33, %v10690_v44 }
0x1acf   :  { %v5169_v35 = vpop.permute.xlu1 %5168 }
0x1ad0   :  { %v5171_v36 = vmul.f32 %v5169_v35, %v5165_v33 }
0x1ad2   :  { %5173 = vrot.lane.b32.xlu0 %v5171_v36, %s9917_s18 }
0x1b44   :  { %v5174_v38 = vpop.permute.xlu0 %5173 }
0x1b45   :  { %v10766_v39 = vadd.f32 %v5174_v38, %v5166_v37 }
0x1b47   :  { %9889 = vtanh.f32 %v10766_v39 }
0x1b54   :  { %v9890_v40 = vpop.eup %9889 }
0x1b55   :  { %5179 = vrot.lane.b32.xlu1 %v9890_v40, %s9917_s18 }
0x1bc7   :  { %v5180_v41 = vpop.permute.xlu1 %5179 }
0x1bc8   :  { %v10770_v42 = vmul.f32 %v5180_v41, %v5165_v33 }
0x1bca   :  { %5190 = vrot.lane.b32.xlu0 %v10770_v42, %s9918_s19 }
0x1c3c   :  { %v5191_v45 = vpop.permute.xlu0 %5190 }
0x1c3d   :  { %v5192_v46 = vsel %vm15_vm0, %v5191_v45, 0 }
0x1c3e   :  { %v5263_v47 = vand.u32 4294901760, %v5192_v46 }
0x1c40   :  { %v5264_v48 = vsub.f32 %v5192_v46, %v5263_v47  ;;  %9470 = vmatmul.mubr.f32.vlgmr.msra.gmra.mxu1 %v5263_v47 }
0x1c41   :  { %9484 = vmatpush3.msra.mxu1 %v9950_v4  ;;  %9491 = vmatprep.mubr.msk.f32.mxu1 %vm9916_vm1, %v9915_v0 }
0x1c42   :  { %v5265_v44 = vand.u32 4294901760, %v5264_v48  ;;  %9485 = vmatprep.subr.mxu1 %v9915_v0 }
0x1c43   :  { %9486 = vmatpush3.msra.mxu1 %v9952_v5 }
0x1c44   :  { %v5266_v49 = vsub.f32 %v5264_v48, %v5265_v44  ;;  %9487 = vmatprep.subr.mxu1 %v9915_v0 }
0x1c45   :  { %9488 = vmatpush3.msra.mxu1 %v9954_v6 }
0x1c46   :  { %v5267_v50 = vand.u32 4294901760, %v5266_v49  ;;  %9489 = vmatprep.subr.mxu1 %v9915_v0 }
0x1c47   :  { %9490 = vmatpush3.msra.mxu1 %v9963_v8 }
0x1c48   :  { %9492 = vmatmul.mubr.f32.vlgmr.msra.gmra.mxu1 %v5265_v44  ;;  %9505 = vmatprep.subr.mxu1 %v9915_v0 }
0x1c49   :  { %9459 = vmatmul.mubr.f32.vlgmr.msra.gmra.mxu0 %v5267_v50  ;;  %9506 = vmatpush3.msra.mxu1 %v9950_v4 }
0x1c4a   :  { %9473 = vmatpush3.msra.mxu0 %v9967_v9  ;;  %9507 = vmatprep.subr.mxu1 %v9915_v0 }
0x1c4b   :  { %9474 = vmatprep.subr.mxu0 %v9915_v0  ;;  %9508 = vmatpush3.msra.mxu1 %v9952_v5 }
0x1c4c   :  { %9475 = vmatpush3.msra.mxu0 %v9970_v10  ;;  %9509 = vmatprep.subr.mxu1 %v9915_v0 }
0x1c4d   :  { %9476 = vmatprep.subr.mxu0 %v9915_v0  ;;  %9510 = vmatpush3.msra.mxu1 %v9954_v6 }
0x1c4e   :  { %9477 = vmatpush3.msra.mxu0 %v9973_v11  ;;  %9511 = vmatprep.subr.mxu1 %v9915_v0 }
0x1c4f   :  { %9478 = vmatprep.subr.mxu0 %v9915_v0  ;;  %9480 = vmatprep.mubr.msk.f32.mxu0 %vm9916_vm1, %v9915_v0 }
0x1c50   :  { %9479 = vmatpush3.msra.mxu0 %v9977_v12  ;;  %9512 = vmatpush3.msra.mxu1 %v9963_v8 }
0x1c51   :  { %9513 = vmatprep.mubr.msk.f32.mxu1 %vm9916_vm1, %v9915_v0  ;;  %9481 = vmatmul.mubr.f32.vlgmr.msra.gmra.mxu0 %v5264_v48 }
0x1c52   :  { %9494 = vmatprep.subr.mxu0 %v9915_v0  ;;  %9514 = vmatmul.mubr.f32.vlgmr.msra.gmra.mxu1 %v5263_v47 }
0x1c53   :  { %9495 = vmatpush3.msra.mxu0 %v9980_v13  ;;  %9502 = vmatprep.mubr.msk.f32.mxu0 %vm9916_vm1, %v9915_v0 }
0x1c54   :  { %9496 = vmatprep.subr.mxu0 %v9915_v0  ;;  %9527 = vmatprep.subr.mxu1 %v9915_v0 }
0x1c55   :  { %9497 = vmatpush3.msra.mxu0 %v9984_v14  ;;  %9528 = vmatpush3.msra.mxu1 %v10002_v22 }
0x1c56   :  { %9498 = vmatprep.subr.mxu0 %v9915_v0  ;;  %9529 = vmatprep.subr.mxu1 %v9915_v0 }
0x1c57   :  { %9499 = vmatpush3.msra.mxu0 %v9987_v15  ;;  %9530 = vmatpush3.msra.mxu1 %v10004_v23 }
0x1c58   :  { %9500 = vmatprep.subr.mxu0 %v9915_v0  ;;  %9531 = vmatprep.subr.mxu1 %v9915_v0 }
0x1c59   :  { %9501 = vmatpush3.msra.mxu0 %v9991_v16  ;;  %9532 = vmatpush3.msra.mxu1 %v10011_v26 }
0x1c5a   :  { %9503 = vmatmul.mubr.f32.vlgmr.msra.gmra.mxu0 %v5263_v47  ;;  %9533 = vmatprep.subr.mxu1 %v9915_v0 }
0x1c5b   :  { %9534 = vmatpush3.msra.mxu1 %v10015_v28  ;;  %9516 = vmatprep.subr.mxu0 %v9915_v0 }
0x1c5c   :  { %9535 = vmatprep.mubr.msk.f32.mxu1 %vm9916_vm1, %v9915_v0  ;;  %9549 = vmatprep.subr.mxu1 %v9915_v0 }
0x1c5d   :  { %9517 = vmatpush3.msra.mxu0 %v9950_v4  ;;  %9524 = vmatprep.mubr.msk.f32.mxu0 %vm9916_vm1, %v9915_v0 }
0x1c5e   :  { %9518 = vmatprep.subr.mxu0 %v9915_v0 }
0x1c5f   :  { %9519 = vmatpush3.msra.mxu0 %v9952_v5 }
0x1c60   :  { %9520 = vmatprep.subr.mxu0 %v9915_v0 }
0x1c61   :  { %9521 = vmatpush3.msra.mxu0 %v9954_v6 }
0x1c62   :  { %9522 = vmatprep.subr.mxu0 %v9915_v0 }
0x1c63   :  { %9523 = vmatpush3.msra.mxu0 %v9963_v8 }
0x1c64   :  { %9538 = vmatprep.subr.mxu0 %v9915_v0 }
0x1d00   :  { %v5360_v51 = vpop.f32.mrf.mxu1 }
0x1d02   :  { %v9471_v54 = vpop.f32.mrf.mxu1 }
0x1d08   :  { %v5517_v55 = vpop.f32.mrf.mxu1 }
0x1d09   :  { %v5269_v57 = vpop.f32.mrf.mxu0 }
0x1d0a   :  { %v9493_v58 = vpop.f32.mrf.mxu1  ;;  %v5361_v62 = vadd.f32 %v5360_v51, %v5269_v57 }
0x1d0b   :  { %v9460_v56 = vpop.f32.mrf.mxu0 }
0x1d11   :  { %v5440_v60 = vpop.f32.mrf.mxu0 }
0x1d12   :  { %v5675_v61 = vpop.f32.mrf.mxu1  ;;  %v5441_v2 = vadd.f32 %v5440_v60, %v5361_v62 }
0x1d13   :  { %v9482_v1 = vpop.f32.mrf.mxu0 }
0x1d14   :  { %v9515_v63 = vpop.f32.mrf.mxu1  ;;  %v5518_v7 = vadd.f32 %v5517_v55, %v5441_v2 }
0x1d1a   :  { %v5600_v17 = vpop.f32.mrf.mxu0 }
0x1d1b   :  { %v5601_v18 = vadd.f32 %v5600_v17, %v5518_v7  ;;  %v8305_v7 = vld [vmem:[%s11268_s0 + $0x58] sm:$0xff] }
0x1d1c   :  { %v9504_v19 = vpop.f32.mrf.mxu0 }
0x1d1d   :  { %v5676_v21 = vadd.f32 %v5675_v61, %v5601_v18 }
0x1d1f   :  { %v5679_v24 = vadd.f32 %v8304_v20, %v5676_v21 }
0x1d21   :  { %9891 = vtanh.f32 %v5679_v24 }
0x1d2e   :  { %v9892_v25 = vpop.eup %9891 }
0x1d2f   :  { %5685 = vrot.lane.b32.xlu1 %v9892_v25, %s9917_s18  ;;  %v5681_v27 = vmul.f32 0.5, %v9892_v25 }
0x1d31   :  { %v5682_v29 = vadd.f32 0.5, %v5681_v27 }
0x1d33   :  { %v5683_v32 = vmul.f32 %v5682_v29, %v10766_v39 }
0x1da1   :  { %v5686_v30 = vpop.permute.xlu1 %5685 }
0x1da2   :  { %v5688_v31 = vmul.f32 %v5686_v30, %v5682_v29 }
0x1da4   :  { %5690 = vrot.lane.b32.xlu0 %v5688_v31, %s9917_s18 }
0x1e16   :  { %v5691_v33 = vpop.permute.xlu0 %5690 }
0x1e17   :  { %v10841_v35 = vadd.f32 %v5691_v33, %v5683_v32 }
0x1e19   :  { %9893 = vtanh.f32 %v10841_v35 }
0x1e26   :  { %v9894_v36 = vpop.eup %9893 }
0x1e27   :  { %5696 = vrot.lane.b32.xlu1 %v9894_v36, %s9917_s18 }
0x1e99   :  { %v5697_v37 = vpop.permute.xlu1 %5696 }
0x1e9a   :  { %v10845_v38 = vmul.f32 %v5697_v37, %v5682_v29 }
0x1e9c   :  { %5704 = vrot.lane.b32.xlu0 %v10845_v38, %s9918_s19 }
0x1f0e   :  { %v5705_v40 = vpop.permute.xlu0 %5704 }
0x1f0f   :  { %v5706_v41 = vsel %vm15_vm0, %v5705_v40, 0 }
0x1f10   :  { %v5777_v45 = vand.u32 4294901760, %v5706_v41 }
0x1f12   :  { %v5778_v46 = vsub.f32 %v5706_v41, %v5777_v45  ;;  %9536 = vmatmul.mubr.f32.vlgmr.msra.gmra.mxu1 %v5777_v45 }
0x1f13   :  { %9550 = vmatpush3.msra.mxu1 %v9950_v4  ;;  %9557 = vmatprep.mubr.msk.f32.mxu1 %vm9916_vm1, %v9915_v0 }
0x1f14   :  { %v5779_v39 = vand.u32 4294901760, %v5778_v46  ;;  %9551 = vmatprep.subr.mxu1 %v9915_v0 }
0x1f15   :  { %9552 = vmatpush3.msra.mxu1 %v9952_v5 }
0x1f16   :  { %v5780_v47 = vsub.f32 %v5778_v46, %v5779_v39  ;;  %9553 = vmatprep.subr.mxu1 %v9915_v0 }
0x1f17   :  { %9554 = vmatpush3.msra.mxu1 %v9954_v6 }
0x1f18   :  { %v5781_v48 = vand.u32 4294901760, %v5780_v47  ;;  %9555 = vmatprep.subr.mxu1 %v9915_v0 }
0x1f19   :  { %9556 = vmatpush3.msra.mxu1 %v9963_v8 }
0x1f1a   :  { %9558 = vmatmul.mubr.f32.vlgmr.msra.gmra.mxu1 %v5779_v39  ;;  %9571 = vmatprep.subr.mxu1 %v9915_v0 }
0x1f1b   :  { %9525 = vmatmul.mubr.f32.vlgmr.msra.gmra.mxu0 %v5781_v48  ;;  %9572 = vmatpush3.msra.mxu1 %v9950_v4 }
0x1f1c   :  { %9539 = vmatpush3.msra.mxu0 %v9967_v9  ;;  %9573 = vmatprep.subr.mxu1 %v9915_v0 }
0x1f1d   :  { %9540 = vmatprep.subr.mxu0 %v9915_v0  ;;  %9574 = vmatpush3.msra.mxu1 %v9952_v5 }
0x1f1e   :  { %9541 = vmatpush3.msra.mxu0 %v9970_v10  ;;  %9575 = vmatprep.subr.mxu1 %v9915_v0 }
0x1f1f   :  { %9542 = vmatprep.subr.mxu0 %v9915_v0  ;;  %9576 = vmatpush3.msra.mxu1 %v9954_v6 }
0x1f20   :  { %9543 = vmatpush3.msra.mxu0 %v9973_v11  ;;  %9577 = vmatprep.subr.mxu1 %v9915_v0 }
0x1f21   :  { %9544 = vmatprep.subr.mxu0 %v9915_v0  ;;  %9546 = vmatprep.mubr.msk.f32.mxu0 %vm9916_vm1, %v9915_v0 }
0x1f22   :  { %9545 = vmatpush3.msra.mxu0 %v9977_v12  ;;  %9578 = vmatpush3.msra.mxu1 %v9963_v8 }
0x1f23   :  { %9579 = vmatprep.mubr.msk.f32.mxu1 %vm9916_vm1, %v9915_v0  ;;  %9547 = vmatmul.mubr.f32.vlgmr.msra.gmra.mxu0 %v5778_v46 }
0x1f24   :  { %9560 = vmatprep.subr.mxu0 %v9915_v0  ;;  %9580 = vmatmul.mubr.f32.vlgmr.msra.gmra.mxu1 %v5777_v45 }
0x1f25   :  { %9561 = vmatpush3.msra.mxu0 %v9980_v13  ;;  %9568 = vmatprep.mubr.msk.f32.mxu0 %vm9916_vm1, %v9915_v0 }
0x1f26   :  { %9562 = vmatprep.subr.mxu0 %v9915_v0  ;;  %9593 = vmatprep.subr.mxu1 %v9915_v0 }
0x1f27   :  { %9563 = vmatpush3.msra.mxu0 %v9984_v14  ;;  %9594 = vmatpush3.msra.mxu1 %v10002_v22 }
0x1f28   :  { %9564 = vmatprep.subr.mxu0 %v9915_v0  ;;  %9595 = vmatprep.subr.mxu1 %v9915_v0 }
0x1f29   :  { %9565 = vmatpush3.msra.mxu0 %v9987_v15  ;;  %9596 = vmatpush3.msra.mxu1 %v10004_v23 }
0x1f2a   :  { %9566 = vmatprep.subr.mxu0 %v9915_v0  ;;  %9597 = vmatprep.subr.mxu1 %v9915_v0 }
0x1f2b   :  { %9567 = vmatpush3.msra.mxu0 %v9991_v16  ;;  %9598 = vmatpush3.msra.mxu1 %v10011_v26 }
0x1f2c   :  { %9569 = vmatmul.mubr.f32.vlgmr.msra.gmra.mxu0 %v5777_v45  ;;  %9599 = vmatprep.subr.mxu1 %v9915_v0 }
0x1f2d   :  { %9600 = vmatpush3.msra.mxu1 %v10015_v28  ;;  %9582 = vmatprep.subr.mxu0 %v9915_v0 }
0x1f2e   :  { %9601 = vmatprep.mubr.msk.f32.mxu1 %vm9916_vm1, %v9915_v0  ;;  %9615 = vmatprep.subr.mxu1 %v9915_v0 }
0x1f2f   :  { %9583 = vmatpush3.msra.mxu0 %v9950_v4  ;;  %9590 = vmatprep.mubr.msk.f32.mxu0 %vm9916_vm1, %v9915_v0 }
0x1f30   :  { %9584 = vmatprep.subr.mxu0 %v9915_v0 }
0x1f31   :  { %9585 = vmatpush3.msra.mxu0 %v9952_v5 }
0x1f32   :  { %9586 = vmatprep.subr.mxu0 %v9915_v0 }
0x1f33   :  { %9587 = vmatpush3.msra.mxu0 %v9954_v6 }
0x1f34   :  { %9588 = vmatprep.subr.mxu0 %v9915_v0 }
0x1f35   :  { %9589 = vmatpush3.msra.mxu0 %v9963_v8 }
0x1f36   :  { %9604 = vmatprep.subr.mxu0 %v9915_v0 }
0x1fd2   :  { %v5874_v44 = vpop.f32.mrf.mxu1 }
0x1fd4   :  { %v9537_v49 = vpop.f32.mrf.mxu1 }
0x1fda   :  { %v6031_v50 = vpop.f32.mrf.mxu1 }
0x1fdb   :  { %v5783_v51 = vpop.f32.mrf.mxu0 }
0x1fdc   :  { %v9559_v54 = vpop.f32.mrf.mxu1  ;;  %v5875_v56 = vadd.f32 %v5874_v44, %v5783_v51 }
0x1fdd   :  { %v9526_v55 = vpop.f32.mrf.mxu0 }
0x1fe3   :  { %v5954_v57 = vpop.f32.mrf.mxu0 }
0x1fe4   :  { %v6189_v58 = vpop.f32.mrf.mxu1  ;;  %v5955_v62 = vadd.f32 %v5954_v57, %v5875_v56 }
0x1fe5   :  { %v9548_v60 = vpop.f32.mrf.mxu0 }
0x1fe6   :  { %v9581_v61 = vpop.f32.mrf.mxu1  ;;  %v6032_v1 = vadd.f32 %v6031_v50, %v5955_v62 }
0x1fec   :  { %v6114_v63 = vpop.f32.mrf.mxu0 }
0x1fed   :  { %v6115_v2 = vadd.f32 %v6114_v63, %v6032_v1  ;;  %v8306_v63 = vld [vmem:[%s11268_s0 + $0x60] sm:$0xff] }
0x1fee   :  { %v9570_v17 = vpop.f32.mrf.mxu0 }
0x1fef   :  { %v6190_v18 = vadd.f32 %v6189_v58, %v6115_v2 }
0x1ff1   :  { %v6193_v20 = vadd.f32 %v8305_v7, %v6190_v18 }
0x1ff3   :  { %9895 = vtanh.f32 %v6193_v20 }
0x2000   :  { %v9896_v19 = vpop.eup %9895 }
0x2001   :  { %6199 = vrot.lane.b32.xlu1 %v9896_v19, %s9917_s18  ;;  %v6195_v21 = vmul.f32 0.5, %v9896_v19 }
0x2003   :  { %v6196_v24 = vadd.f32 0.5, %v6195_v21 }
0x2005   :  { %v6197_v29 = vmul.f32 %v6196_v24, %v10841_v35 }
0x2073   :  { %v6200_v25 = vpop.permute.xlu1 %6199 }
0x2074   :  { %v6202_v27 = vmul.f32 %v6200_v25, %v6196_v24 }
0x2076   :  { %6204 = vrot.lane.b32.xlu0 %v6202_v27, %s9917_s18 }
0x20e8   :  { %v6205_v30 = vpop.permute.xlu0 %6204 }
0x20e9   :  { %v10916_v31 = vadd.f32 %v6205_v30, %v6197_v29 }
0x20eb   :  { %9897 = vtanh.f32 %v10916_v31 }
0x20f8   :  { %v9898_v32 = vpop.eup %9897 }
0x20f9   :  { %6210 = vrot.lane.b32.xlu1 %v9898_v32, %s9917_s18 }
0x216b   :  { %v6211_v33 = vpop.permute.xlu1 %6210 }
0x216c   :  { %v10920_v36 = vmul.f32 %v6211_v33, %v6196_v24 }
0x216e   :  { %6221 = vrot.lane.b32.xlu0 %v10920_v36, %s9918_s19 }
0x21e0   :  { %v6222_v37 = vpop.permute.xlu0 %6221 }
0x21e1   :  { %v6223_v40 = vsel %vm15_vm0, %v6222_v37, 0 }
0x21e2   :  { %v6294_v41 = vand.u32 4294901760, %v6223_v40 }
0x21e4   :  { %v6295_v45 = vsub.f32 %v6223_v40, %v6294_v41  ;;  %9602 = vmatmul.mubr.f32.vlgmr.msra.gmra.mxu1 %v6294_v41 }
0x21e5   :  { %9616 = vmatpush3.msra.mxu1 %v9950_v4  ;;  %9623 = vmatprep.mubr.msk.f32.mxu1 %vm9916_vm1, %v9915_v0 }
0x21e6   :  { %v6296_v35 = vand.u32 4294901760, %v6295_v45  ;;  %9617 = vmatprep.subr.mxu1 %v9915_v0 }
0x21e7   :  { %9618 = vmatpush3.msra.mxu1 %v9952_v5 }
0x21e8   :  { %v6297_v46 = vsub.f32 %v6295_v45, %v6296_v35  ;;  %9619 = vmatprep.subr.mxu1 %v9915_v0 }
0x21e9   :  { %9620 = vmatpush3.msra.mxu1 %v9954_v6 }
0x21ea   :  { %v6298_v39 = vand.u32 4294901760, %v6297_v46  ;;  %9621 = vmatprep.subr.mxu1 %v9915_v0 }
0x21eb   :  { %9622 = vmatpush3.msra.mxu1 %v9963_v8 }
0x21ec   :  { %9624 = vmatmul.mubr.f32.vlgmr.msra.gmra.mxu1 %v6296_v35  ;;  %9637 = vmatprep.subr.mxu1 %v9915_v0 }
0x21ed   :  { %9591 = vmatmul.mubr.f32.vlgmr.msra.gmra.mxu0 %v6298_v39  ;;  %9638 = vmatpush3.msra.mxu1 %v9950_v4 }
0x21ee   :  { %9605 = vmatpush3.msra.mxu0 %v9967_v9  ;;  %9639 = vmatprep.subr.mxu1 %v9915_v0 }
0x21ef   :  { %9606 = vmatprep.subr.mxu0 %v9915_v0  ;;  %9640 = vmatpush3.msra.mxu1 %v9952_v5 }
0x21f0   :  { %9607 = vmatpush3.msra.mxu0 %v9970_v10  ;;  %9641 = vmatprep.subr.mxu1 %v9915_v0 }
0x21f1   :  { %9608 = vmatprep.subr.mxu0 %v9915_v0  ;;  %9642 = vmatpush3.msra.mxu1 %v9954_v6 }
0x21f2   :  { %9609 = vmatpush3.msra.mxu0 %v9973_v11  ;;  %9643 = vmatprep.subr.mxu1 %v9915_v0 }
0x21f3   :  { %9610 = vmatprep.subr.mxu0 %v9915_v0  ;;  %9612 = vmatprep.mubr.msk.f32.mxu0 %vm9916_vm1, %v9915_v0 }
0x21f4   :  { %9611 = vmatpush3.msra.mxu0 %v9977_v12  ;;  %9644 = vmatpush3.msra.mxu1 %v9963_v8 }
0x21f5   :  { %9645 = vmatprep.mubr.msk.f32.mxu1 %vm9916_vm1, %v9915_v0  ;;  %9613 = vmatmul.mubr.f32.vlgmr.msra.gmra.mxu0 %v6295_v45 }
0x21f6   :  { %9626 = vmatprep.subr.mxu0 %v9915_v0  ;;  %9646 = vmatmul.mubr.f32.vlgmr.msra.gmra.mxu1 %v6294_v41 }
0x21f7   :  { %9627 = vmatpush3.msra.mxu0 %v9980_v13  ;;  %9634 = vmatprep.mubr.msk.f32.mxu0 %vm9916_vm1, %v9915_v0 }
0x21f8   :  { %9628 = vmatprep.subr.mxu0 %v9915_v0  ;;  %9659 = vmatprep.subr.mxu1 %v9915_v0 }
0x21f9   :  { %9629 = vmatpush3.msra.mxu0 %v9984_v14  ;;  %9660 = vmatpush3.msra.mxu1 %v10002_v22 }
0x21fa   :  { %9630 = vmatprep.subr.mxu0 %v9915_v0  ;;  %9661 = vmatprep.subr.mxu1 %v9915_v0 }
0x21fb   :  { %9631 = vmatpush3.msra.mxu0 %v9987_v15  ;;  %9662 = vmatpush3.msra.mxu1 %v10004_v23 }
0x21fc   :  { %9632 = vmatprep.subr.mxu0 %v9915_v0  ;;  %9663 = vmatprep.subr.mxu1 %v9915_v0 }
0x21fd   :  { %9633 = vmatpush3.msra.mxu0 %v9991_v16  ;;  %9664 = vmatpush3.msra.mxu1 %v10011_v26 }
0x21fe   :  { %9635 = vmatmul.mubr.f32.vlgmr.msra.gmra.mxu0 %v6294_v41  ;;  %9665 = vmatprep.subr.mxu1 %v9915_v0 }
0x21ff   :  { %9666 = vmatpush3.msra.mxu1 %v10015_v28  ;;  %9648 = vmatprep.subr.mxu0 %v9915_v0 }
0x2200   :  { %9667 = vmatprep.mubr.msk.f32.mxu1 %vm9916_vm1, %v9915_v0  ;;  %9681 = vmatprep.subr.mxu1 %v9915_v0 }
0x2201   :  { %9649 = vmatpush3.msra.mxu0 %v9950_v4  ;;  %9656 = vmatprep.mubr.msk.f32.mxu0 %vm9916_vm1, %v9915_v0 }
0x2202   :  { %9650 = vmatprep.subr.mxu0 %v9915_v0 }
0x2203   :  { %9651 = vmatpush3.msra.mxu0 %v9952_v5 }
0x2204   :  { %9652 = vmatprep.subr.mxu0 %v9915_v0 }
0x2205   :  { %9653 = vmatpush3.msra.mxu0 %v9954_v6 }
0x2206   :  { %9654 = vmatprep.subr.mxu0 %v9915_v0 }
0x2207   :  { %9655 = vmatpush3.msra.mxu0 %v9963_v8 }
0x2208   :  { %9670 = vmatprep.subr.mxu0 %v9915_v0 }
0x22a4   :  { %v6391_v47 = vpop.f32.mrf.mxu1 }
0x22a6   :  { %v9603_v48 = vpop.f32.mrf.mxu1 }
0x22ac   :  { %v6548_v44 = vpop.f32.mrf.mxu1 }
0x22ad   :  { %v6300_v49 = vpop.f32.mrf.mxu0 }
0x22ae   :  { %v9625_v50 = vpop.f32.mrf.mxu1  ;;  %v6392_v57 = vadd.f32 %v6391_v47, %v6300_v49 }
0x22af   :  { %v9592_v51 = vpop.f32.mrf.mxu0 }
0x22b5   :  { %v6471_v54 = vpop.f32.mrf.mxu0 }
0x22b6   :  { %v6706_v55 = vpop.f32.mrf.mxu1  ;;  %v6472_v60 = vadd.f32 %v6471_v54, %v6392_v57 }
0x22b7   :  { %v9614_v58 = vpop.f32.mrf.mxu0 }
0x22b8   :  { %v9647_v56 = vpop.f32.mrf.mxu1  ;;  %v6549_v61 = vadd.f32 %v6548_v44, %v6472_v60 }
0x22be   :  { %v6631_v62 = vpop.f32.mrf.mxu0 }
0x22bf   :  { %v6632_v1 = vadd.f32 %v6631_v62, %v6549_v61 }
0x22c0   :  { %v9636_v2 = vpop.f32.mrf.mxu0 }
0x22c1   :  { %v6707_v7 = vadd.f32 %v6706_v55, %v6632_v1  ;;  %v8307_v1 = vld [vmem:[%s11268_s0 + $0x68] sm:$0xff] }
0x22c3   :  { %v6710_v17 = vadd.f32 %v8306_v63, %v6707_v7 }
0x22c5   :  { %9899 = vtanh.f32 %v6710_v17 }
0x22d2   :  { %v9900_v18 = vpop.eup %9899 }
0x22d3   :  { %6716 = vrot.lane.b32.xlu1 %v9900_v18, %s9917_s18  ;;  %v6712_v20 = vmul.f32 0.5, %v9900_v18 }
0x22d5   :  { %v6713_v19 = vadd.f32 0.5, %v6712_v20 }
0x22d7   :  { %v6714_v25 = vmul.f32 %v6713_v19, %v10916_v31 }
0x2345   :  { %v6717_v21 = vpop.permute.xlu1 %6716 }
0x2346   :  { %v6719_v24 = vmul.f32 %v6717_v21, %v6713_v19 }
0x2348   :  { %6721 = vrot.lane.b32.xlu0 %v6719_v24, %s9917_s18 }
0x23ba   :  { %v6722_v27 = vpop.permute.xlu0 %6721 }
0x23bb   :  { %v10991_v29 = vadd.f32 %v6722_v27, %v6714_v25 }
0x23bd   :  { %9901 = vtanh.f32 %v10991_v29 }
0x23ca   :  { %v9902_v30 = vpop.eup %9901 }
0x23cb   :  { %6727 = vrot.lane.b32.xlu1 %v9902_v30, %s9917_s18 }
0x243d   :  { %v6728_v32 = vpop.permute.xlu1 %6727 }
0x243e   :  { %v6730_v33 = vmul.f32 %v6728_v32, %v6713_v19 }
0x2440   :  { %6732 = vrot.lane.b32.xlu0 %v6730_v33, %s9918_s19 }
0x24b2   :  { %v6733_v37 = vpop.permute.xlu0 %6732 }
0x24b3   :  { %6735 = vst.msk [vmem:[%s11269_s2 + $0x18] sm:$0xff] %vm15_vm0, %v6733_v37  ;;  %v6738_v31 = vsel %vm15_vm0, %v6733_v37, 0 }
0x24b4   :  { %v6809_v40 = vand.u32 4294901760, %v6738_v31 }
0x24b6   :  { %v6810_v41 = vsub.f32 %v6738_v31, %v6809_v40  ;;  %9668 = vmatmul.mubr.f32.vlgmr.msra.gmra.mxu1 %v6809_v40 }
0x24b7   :  { %9682 = vmatpush3.msra.mxu1 %v9950_v4  ;;  %9689 = vmatprep.mubr.msk.f32.mxu1 %vm9916_vm1, %v9915_v0 }
0x24b8   :  { %v6811_v45 = vand.u32 4294901760, %v6810_v41  ;;  %9683 = vmatprep.subr.mxu1 %v9915_v0 }
0x24b9   :  { %9684 = vmatpush3.msra.mxu1 %v9952_v5 }
0x24ba   :  { %v6812_v35 = vsub.f32 %v6810_v41, %v6811_v45  ;;  %9685 = vmatprep.subr.mxu1 %v9915_v0 }
0x24bb   :  { %9686 = vmatpush3.msra.mxu1 %v9954_v6 }
0x24bc   :  { %9687 = vmatprep.subr.mxu1 %v9915_v0  ;;  %v6813_v46 = vand.u32 4294901760, %v6812_v35 }
0x24bd   :  { %9688 = vmatpush3.msra.mxu1 %v9963_v8 }
0x24be   :  { %9690 = vmatmul.mubr.f32.vlgmr.msra.gmra.mxu1 %v6811_v45  ;;  %9703 = vmatprep.subr.mxu1 %v9915_v0 }
0x24bf   :  { %9657 = vmatmul.mubr.f32.vlgmr.msra.gmra.mxu0 %v6813_v46  ;;  %9704 = vmatpush3.msra.mxu1 %v9950_v4 }
0x24c0   :  { %9671 = vmatpush3.msra.mxu0 %v9967_v9  ;;  %9705 = vmatprep.subr.mxu1 %v9915_v0 }
0x24c1   :  { %9672 = vmatprep.subr.mxu0 %v9915_v0  ;;  %9706 = vmatpush3.msra.mxu1 %v9952_v5 }
0x24c2   :  { %9673 = vmatpush3.msra.mxu0 %v9970_v10  ;;  %9707 = vmatprep.subr.mxu1 %v9915_v0 }
0x24c3   :  { %9674 = vmatprep.subr.mxu0 %v9915_v0  ;;  %9708 = vmatpush3.msra.mxu1 %v9954_v6 }
0x24c4   :  { %9675 = vmatpush3.msra.mxu0 %v9973_v11  ;;  %9709 = vmatprep.subr.mxu1 %v9915_v0 }
0x24c5   :  { %9676 = vmatprep.subr.mxu0 %v9915_v0  ;;  %9678 = vmatprep.mubr.msk.f32.mxu0 %vm9916_vm1, %v9915_v0 }
0x24c6   :  { %9677 = vmatpush3.msra.mxu0 %v9977_v12  ;;  %9710 = vmatpush3.msra.mxu1 %v9963_v8 }
0x24c7   :  { %9711 = vmatprep.mubr.msk.f32.mxu1 %vm9916_vm1, %v9915_v0  ;;  %9679 = vmatmul.mubr.f32.vlgmr.msra.gmra.mxu0 %v6810_v41 }
0x24c8   :  { %9692 = vmatprep.subr.mxu0 %v9915_v0  ;;  %9712 = vmatmul.mubr.f32.vlgmr.msra.gmra.mxu1 %v6809_v40 }
0x24c9   :  { %9693 = vmatpush3.msra.mxu0 %v9980_v13  ;;  %9700 = vmatprep.mubr.msk.f32.mxu0 %vm9916_vm1, %v9915_v0 }
0x24ca   :  { %9694 = vmatprep.subr.mxu0 %v9915_v0  ;;  %9725 = vmatprep.subr.mxu1 %v9915_v0 }
0x24cb   :  { %9695 = vmatpush3.msra.mxu0 %v9984_v14  ;;  %9726 = vmatpush3.msra.mxu1 %v10002_v22 }
0x24cc   :  { %9696 = vmatprep.subr.mxu0 %v9915_v0  ;;  %9727 = vmatprep.subr.mxu1 %v9915_v0 }
0x24cd   :  { %9697 = vmatpush3.msra.mxu0 %v9987_v15  ;;  %9728 = vmatpush3.msra.mxu1 %v10004_v23 }
0x24ce   :  { %9698 = vmatprep.subr.mxu0 %v9915_v0  ;;  %9729 = vmatprep.subr.mxu1 %v9915_v0 }
0x24cf   :  { %9699 = vmatpush3.msra.mxu0 %v9991_v16  ;;  %9730 = vmatpush3.msra.mxu1 %v10011_v26 }
0x24d0   :  { %9701 = vmatmul.mubr.f32.vlgmr.msra.gmra.mxu0 %v6809_v40  ;;  %9731 = vmatprep.subr.mxu1 %v9915_v0 }
0x24d1   :  { %9732 = vmatpush3.msra.mxu1 %v10015_v28  ;;  %9714 = vmatprep.subr.mxu0 %v9915_v0 }
0x24d2   :  { %9733 = vmatprep.mubr.msk.f32.mxu1 %vm9916_vm1, %v9915_v0  ;;  %9747 = vmatprep.subr.mxu1 %v9915_v0 }
0x24d3   :  { %9715 = vmatpush3.msra.mxu0 %v9950_v4  ;;  %9722 = vmatprep.mubr.msk.f32.mxu0 %vm9916_vm1, %v9915_v0 }
0x24d4   :  { %9716 = vmatprep.subr.mxu0 %v9915_v0 }
0x24d5   :  { %9717 = vmatpush3.msra.mxu0 %v9952_v5 }
0x24d6   :  { %9718 = vmatprep.subr.mxu0 %v9915_v0 }
0x24d7   :  { %9719 = vmatpush3.msra.mxu0 %v9954_v6 }
0x24d8   :  { %9720 = vmatprep.subr.mxu0 %v9915_v0 }
0x24d9   :  { %9721 = vmatpush3.msra.mxu0 %v9963_v8 }
0x24da   :  { %9736 = vmatprep.subr.mxu0 %v9915_v0 }
0x2576   :  { %v6906_v39 = vpop.f32.mrf.mxu1 }
0x2578   :  { %v9669_v47 = vpop.f32.mrf.mxu1 }
0x257e   :  { %v7063_v48 = vpop.f32.mrf.mxu1 }
0x257f   :  { %v6815_v44 = vpop.f32.mrf.mxu0 }
0x2580   :  { %v9691_v49 = vpop.f32.mrf.mxu1  ;;  %v6907_v55 = vadd.f32 %v6906_v39, %v6815_v44 }
0x2581   :  { %v9658_v50 = vpop.f32.mrf.mxu0 }
0x2587   :  { %v6986_v51 = vpop.f32.mrf.mxu0 }
0x2588   :  { %v7221_v54 = vpop.f32.mrf.mxu1  ;;  %v6987_v56 = vadd.f32 %v6986_v51, %v6907_v55 }
0x2589   :  { %v9680_v57 = vpop.f32.mrf.mxu0 }
0x258a   :  { %v9713_v58 = vpop.f32.mrf.mxu1  ;;  %v7064_v60 = vadd.f32 %v7063_v48, %v6987_v56 }
0x258b   :  { %v8308_v58 = vld [vmem:[%s11268_s0 + $0x70] sm:$0xff] }
0x2590   :  { %v7146_v61 = vpop.f32.mrf.mxu0 }
0x2591   :  { %v7147_v62 = vadd.f32 %v7146_v61, %v7064_v60 }
0x2592   :  { %v9702_v63 = vpop.f32.mrf.mxu0 }
0x2593   :  { %v7222_v2 = vadd.f32 %v7221_v54, %v7147_v62 }
0x2595   :  { %v7225_v7 = vadd.f32 %v8307_v1, %v7222_v2 }
0x2597   :  { %9903 = vtanh.f32 %v7225_v7 }
0x25a4   :  { %v9904_v17 = vpop.eup %9903 }
0x25a5   :  { %7231 = vrot.lane.b32.xlu1 %v9904_v17, %s9917_s18  ;;  %v7227_v18 = vmul.f32 0.5, %v9904_v17 }
0x25a7   :  { %v7228_v20 = vadd.f32 0.5, %v7227_v18 }
0x25a9   :  { %v7229_v24 = vmul.f32 %v7228_v20, %v10991_v29 }
0x2617   :  { %v7232_v19 = vpop.permute.xlu1 %7231 }
0x2618   :  { %v7234_v21 = vmul.f32 %v7232_v19, %v7228_v20 }
0x261a   :  { %7236 = vrot.lane.b32.xlu0 %v7234_v21, %s9917_s18 }
0x268c   :  { %v7237_v25 = vpop.permute.xlu0 %7236 }
0x268d   :  { %v11067_v27 = vadd.f32 %v7237_v25, %v7229_v24 }
0x268f   :  { %9905 = vtanh.f32 %v11067_v27 }
0x269c   :  { %v9906_v30 = vpop.eup %9905 }
0x269d   :  { %7242 = vrot.lane.b32.xlu1 %v9906_v30, %s9917_s18 }
0x270f   :  { %v7243_v32 = vpop.permute.xlu1 %7242 }
0x2710   :  { %v11071_v33 = vmul.f32 %v7243_v32, %v7228_v20 }
0x2712   :  { %7253 = vrot.lane.b32.xlu0 %v11071_v33, %s9918_s19 }
0x2784   :  { %v7254_v37 = vpop.permute.xlu0 %7253 }
0x2785   :  { %v7255_v31 = vsel %vm15_vm0, %v7254_v37, 0 }
0x2786   :  { %v7326_v40 = vand.u32 4294901760, %v7255_v31 }
0x2788   :  { %v7327_v41 = vsub.f32 %v7255_v31, %v7326_v40  ;;  %9734 = vmatmul.mubr.f32.vlgmr.msra.gmra.mxu1 %v7326_v40 }
0x2789   :  { %9748 = vmatpush3.msra.mxu1 %v9950_v4  ;;  %9755 = vmatprep.mubr.msk.f32.mxu1 %vm9916_vm1, %v9915_v0 }
0x278a   :  { %v7328_v29 = vand.u32 4294901760, %v7327_v41  ;;  %9749 = vmatprep.subr.mxu1 %v9915_v0 }
0x278b   :  { %9750 = vmatpush3.msra.mxu1 %v9952_v5 }
0x278c   :  { %v7329_v45 = vsub.f32 %v7327_v41, %v7328_v29  ;;  %9751 = vmatprep.subr.mxu1 %v9915_v0 }
0x278d   :  { %9752 = vmatpush3.msra.mxu1 %v9954_v6 }
0x278e   :  { %v7330_v35 = vand.u32 4294901760, %v7329_v45  ;;  %9753 = vmatprep.subr.mxu1 %v9915_v0 }
0x278f   :  { %9754 = vmatpush3.msra.mxu1 %v9963_v8 }
0x2790   :  { %9756 = vmatmul.mubr.f32.vlgmr.msra.gmra.mxu1 %v7328_v29  ;;  %9769 = vmatprep.subr.mxu1 %v9915_v0 }
0x2791   :  { %9723 = vmatmul.mubr.f32.vlgmr.msra.gmra.mxu0 %v7330_v35  ;;  %9770 = vmatpush3.msra.mxu1 %v9950_v4 }
0x2792   :  { %9737 = vmatpush3.msra.mxu0 %v9967_v9  ;;  %9771 = vmatprep.subr.mxu1 %v9915_v0 }
0x2793   :  { %9738 = vmatprep.subr.mxu0 %v9915_v0  ;;  %9772 = vmatpush3.msra.mxu1 %v9952_v5 }
0x2794   :  { %9739 = vmatpush3.msra.mxu0 %v9970_v10  ;;  %9773 = vmatprep.subr.mxu1 %v9915_v0 }
0x2795   :  { %9740 = vmatprep.subr.mxu0 %v9915_v0  ;;  %9774 = vmatpush3.msra.mxu1 %v9954_v6 }
0x2796   :  { %9741 = vmatpush3.msra.mxu0 %v9973_v11  ;;  %9775 = vmatprep.subr.mxu1 %v9915_v0 }
0x2797   :  { %9742 = vmatprep.subr.mxu0 %v9915_v0  ;;  %9744 = vmatprep.mubr.msk.f32.mxu0 %vm9916_vm1, %v9915_v0 }
0x2798   :  { %9743 = vmatpush3.msra.mxu0 %v9977_v12  ;;  %9776 = vmatpush3.msra.mxu1 %v9963_v8 }
0x2799   :  { %9777 = vmatprep.mubr.msk.f32.mxu1 %vm9916_vm1, %v9915_v0  ;;  %9745 = vmatmul.mubr.f32.vlgmr.msra.gmra.mxu0 %v7327_v41 }
0x279a   :  { %9758 = vmatprep.subr.mxu0 %v9915_v0  ;;  %9778 = vmatmul.mubr.f32.vlgmr.msra.gmra.mxu1 %v7326_v40 }
0x279b   :  { %9759 = vmatpush3.msra.mxu0 %v9980_v13  ;;  %9766 = vmatprep.mubr.msk.f32.mxu0 %vm9916_vm1, %v9915_v0 }
0x279c   :  { %9760 = vmatprep.subr.mxu0 %v9915_v0  ;;  %9791 = vmatprep.subr.mxu1 %v9915_v0 }
0x279d   :  { %9761 = vmatpush3.msra.mxu0 %v9984_v14  ;;  %9792 = vmatpush3.msra.mxu1 %v10002_v22 }
0x279e   :  { %9762 = vmatprep.subr.mxu0 %v9915_v0  ;;  %9793 = vmatprep.subr.mxu1 %v9915_v0 }
0x279f   :  { %9763 = vmatpush3.msra.mxu0 %v9987_v15  ;;  %9794 = vmatpush3.msra.mxu1 %v10004_v23 }
0x27a0   :  { %9764 = vmatprep.subr.mxu0 %v9915_v0  ;;  %9795 = vmatprep.subr.mxu1 %v9915_v0 }
0x27a1   :  { %9765 = vmatpush3.msra.mxu0 %v9991_v16  ;;  %9796 = vmatpush3.msra.mxu1 %v10011_v26 }
0x27a2   :  { %9767 = vmatmul.mubr.f32.vlgmr.msra.gmra.mxu0 %v7326_v40  ;;  %9797 = vmatprep.subr.mxu1 %v9915_v0 }
0x27a3   :  { %9798 = vmatpush3.msra.mxu1 %v10015_v28  ;;  %9780 = vmatprep.subr.mxu0 %v9915_v0 }
0x27a4   :  { %9799 = vmatprep.mubr.msk.f32.mxu1 %vm9916_vm1, %v9915_v0  ;;  %9813 = vmatprep.subr.mxu1 %v9915_v0 }
0x27a5   :  { %9781 = vmatpush3.msra.mxu0 %v9950_v4  ;;  %9788 = vmatprep.mubr.msk.f32.mxu0 %vm9916_vm1, %v9915_v0 }
0x27a6   :  { %9782 = vmatprep.subr.mxu0 %v9915_v0 }
0x27a7   :  { %9783 = vmatpush3.msra.mxu0 %v9952_v5 }
0x27a8   :  { %9784 = vmatprep.subr.mxu0 %v9915_v0 }
0x27a9   :  { %9785 = vmatpush3.msra.mxu0 %v9954_v6 }
0x27aa   :  { %9786 = vmatprep.subr.mxu0 %v9915_v0 }
0x27ab   :  { %9787 = vmatpush3.msra.mxu0 %v9963_v8 }
0x27ac   :  { %9802 = vmatprep.subr.mxu0 %v9915_v0 }
0x2848   :  { %v7423_v22 = vpop.f32.mrf.mxu1 }
0x284a   :  { %v9735_v23 = vpop.f32.mrf.mxu1 }
0x2850   :  { %v7580_v26 = vpop.f32.mrf.mxu1 }
0x2851   :  { %v7332_v28 = vpop.f32.mrf.mxu0 }
0x2852   :  { %v9757_v46 = vpop.f32.mrf.mxu1  ;;  %v7424_v44 = vadd.f32 %v7423_v22, %v7332_v28 }
0x2853   :  { %v9724_v39 = vpop.f32.mrf.mxu0 }
0x2859   :  { %v7503_v47 = vpop.f32.mrf.mxu0 }
0x285a   :  { %v7738_v48 = vpop.f32.mrf.mxu1  ;;  %v7504_v51 = vadd.f32 %v7503_v47, %v7424_v44 }
0x285b   :  { %v9746_v49 = vpop.f32.mrf.mxu0 }
0x285c   :  { %v9779_v50 = vpop.f32.mrf.mxu1  ;;  %v7581_v54 = vadd.f32 %v7580_v26, %v7504_v51 }
0x2862   :  { %v7663_v55 = vpop.f32.mrf.mxu0 }
0x2863   :  { %v7664_v57 = vadd.f32 %v7663_v55, %v7581_v54 }
0x2864   :  { %v9768_v56 = vpop.f32.mrf.mxu0 }
0x2865   :  { %v7739_v60 = vadd.f32 %v7738_v48, %v7664_v57 }
0x2867   :  { %v7742_v61 = vadd.f32 %v8308_v58, %v7739_v60 }
0x2869   :  { %9907 = vtanh.f32 %v7742_v61 }
0x2876   :  { %v9908_v62 = vpop.eup %9907 }
0x2877   :  { %7748 = vrot.lane.b32.xlu1 %v9908_v62, %s9917_s18  ;;  %v7744_v1 = vmul.f32 0.5, %v9908_v62 }
0x2879   :  { %v7745_v63 = vadd.f32 0.5, %v7744_v1 }
0x287b   :  { %v7746_v17 = vmul.f32 %v7745_v63, %v11067_v27 }
0x28e9   :  { %v7749_v2 = vpop.permute.xlu1 %7748 }
0x28ea   :  { %v7751_v7 = vmul.f32 %v7749_v2, %v7745_v63 }
0x28ec   :  { %7753 = vrot.lane.b32.xlu0 %v7751_v7, %s9917_s18 }
0x295e   :  { %v7754_v18 = vpop.permute.xlu0 %7753 }
0x295f   :  { %v11142_v20 = vadd.f32 %v7754_v18, %v7746_v17 }
0x2961   :  { %9909 = vtanh.f32 %v11142_v20 }
0x296e   :  { %v9910_v19 = vpop.eup %9909 }
0x296f   :  { %7759 = vrot.lane.b32.xlu1 %v9910_v19, %s9917_s18 }
0x29e1   :  { %v7760_v21 = vpop.permute.xlu1 %7759 }
0x29e2   :  { %v11146_v24 = vmul.f32 %v7760_v21, %v7745_v63 }
0x29e4   :  { %7767 = vrot.lane.b32.xlu0 %v11146_v24, %s9918_s19 }
0x2a56   :  { %v7768_v25 = vpop.permute.xlu0 %7767 }
0x2a57   :  { %v7769_v30 = vsel %vm15_vm0, %v7768_v25, 0 }
0x2a58   :  { %v7840_v32 = vand.u32 4294901760, %v7769_v30 }
0x2a5a   :  { %v7841_v37 = vsub.f32 %v7769_v30, %v7840_v32  ;;  %9800 = vmatmul.mubr.f32.vlgmr.msra.gmra.mxu1 %v7840_v32 }
0x2a5b   :  { %9814 = vmatpush3.msra.mxu1 %v9950_v4  ;;  %9821 = vmatprep.mubr.msk.f32.mxu1 %vm9916_vm1, %v9915_v0 }
0x2a5c   :  { %v7842_v27 = vand.u32 4294901760, %v7841_v37  ;;  %9815 = vmatprep.subr.mxu1 %v9915_v0 }
0x2a5d   :  { %9816 = vmatpush3.msra.mxu1 %v9952_v5 }
0x2a5e   :  { %v7843_v31 = vsub.f32 %v7841_v37, %v7842_v27  ;;  %9817 = vmatprep.subr.mxu1 %v9915_v0 }
0x2a5f   :  { %9818 = vmatpush3.msra.mxu1 %v9954_v6 }
0x2a60   :  { %v7844_v40 = vand.u32 4294901760, %v7843_v31  ;;  %9819 = vmatprep.subr.mxu1 %v9915_v0 }
0x2a61   :  { %9820 = vmatpush3.msra.mxu1 %v9963_v8 }
0x2a62   :  { %9822 = vmatmul.mubr.f32.vlgmr.msra.gmra.mxu1 %v7842_v27  ;;  %9835 = vmatprep.subr.mxu1 %v9915_v0 }
0x2a63   :  { %9789 = vmatmul.mubr.f32.vlgmr.msra.gmra.mxu0 %v7844_v40  ;;  %9836 = vmatpush3.msra.mxu1 %v9950_v4 }
0x2a64   :  { %9803 = vmatpush3.msra.mxu0 %v9967_v9  ;;  %9837 = vmatprep.subr.mxu1 %v9915_v0 }
0x2a65   :  { %9804 = vmatprep.subr.mxu0 %v9915_v0  ;;  %9838 = vmatpush3.msra.mxu1 %v9952_v5 }
0x2a66   :  { %9805 = vmatpush3.msra.mxu0 %v9970_v10  ;;  %9839 = vmatprep.subr.mxu1 %v9915_v0 }
0x2a67   :  { %9806 = vmatprep.subr.mxu0 %v9915_v0  ;;  %9840 = vmatpush3.msra.mxu1 %v9954_v6 }
0x2a68   :  { %9807 = vmatpush3.msra.mxu0 %v9973_v11  ;;  %9841 = vmatprep.subr.mxu1 %v9915_v0 }
0x2a69   :  { %9808 = vmatprep.subr.mxu0 %v9915_v0  ;;  %9810 = vmatprep.mubr.msk.f32.mxu0 %vm9916_vm1, %v9915_v0 }
0x2a6a   :  { %9809 = vmatpush3.msra.mxu0 %v9977_v12  ;;  %9842 = vmatpush3.msra.mxu1 %v9963_v8 }
0x2a6b   :  { %9843 = vmatprep.mubr.msk.f32.mxu1 %vm9916_vm1, %v9915_v0  ;;  %9811 = vmatmul.mubr.f32.vlgmr.msra.gmra.mxu0 %v7841_v37 }
0x2a6c   :  { %9824 = vmatprep.subr.mxu0 %v9915_v0  ;;  %9844 = vmatmul.mubr.f32.vlgmr.msra.gmra.mxu1 %v7840_v32 }
0x2a6d   :  { %9825 = vmatpush3.msra.mxu0 %v9980_v13  ;;  %9832 = vmatprep.mubr.msk.f32.mxu0 %vm9916_vm1, %v9915_v0 }
0x2a6e   :  { %9826 = vmatprep.subr.mxu0 %v9915_v0 }
0x2a6f   :  { %9827 = vmatpush3.msra.mxu0 %v9984_v14 }
0x2a70   :  { %9828 = vmatprep.subr.mxu0 %v9915_v0 }
0x2a71   :  { %9829 = vmatpush3.msra.mxu0 %v9987_v15 }
0x2a72   :  { %9830 = vmatprep.subr.mxu0 %v9915_v0  ;;  %v8309_v0 = vld [vmem:[%s11268_s0 + $0x78] sm:$0xff] }
0x2a73   :  { %9831 = vmatpush3.msra.mxu0 %v9991_v16 }
0x2a74   :  { %9833 = vmatmul.mubr.f32.vlgmr.msra.gmra.mxu0 %v7840_v32 }
0x2b1a   :  { %v7937_v4 = vpop.f32.mrf.mxu1 }
0x2b1c   :  { %v9801_v5 = vpop.f32.mrf.mxu1 }
0x2b22   :  { %v8094_v6 = vpop.f32.mrf.mxu1 }
0x2b23   :  { %v7846_v8 = vpop.f32.mrf.mxu0 }
0x2b24   :  { %v9823_v9 = vpop.f32.mrf.mxu1  ;;  %v7938_v13 = vadd.f32 %v7937_v4, %v7846_v8 }
0x2b25   :  { %v9790_v10 = vpop.f32.mrf.mxu0 }
0x2b2b   :  { %v8017_v11 = vpop.f32.mrf.mxu0 }
0x2b2c   :  { %v8252_v12 = vpop.f32.mrf.mxu1  ;;  %v8018_v29 = vadd.f32 %v8017_v11, %v7938_v13 }
0x2b2d   :  { %v9812_v41 = vpop.f32.mrf.mxu0 }
0x2b2e   :  { %v9845_v14 = vpop.f32.mrf.mxu1  ;;  %v8095_v45 = vadd.f32 %v8094_v6, %v8018_v29 }
0x2b34   :  { %v8177_v35 = vpop.f32.mrf.mxu0 }
0x2b35   :  { %v8178_v15 = vadd.f32 %v8177_v35, %v8095_v45 }
0x2b36   :  { %v9834_v16 = vpop.f32.mrf.mxu0 }
0x2b37   :  { %v8253_v22 = vadd.f32 %v8252_v12, %v8178_v15 }
0x2b39   :  { %v8256_v23 = vadd.f32 %v8309_v0, %v8253_v22 }
0x2b3b   :  { %9911 = vtanh.f32 %v8256_v23 }
0x2b48   :  { %v9912_v26 = vpop.eup %9911 }
0x2b49   :  { %8262 = vrot.lane.b32.xlu1 %v9912_v26, %s9917_s18  ;;  %v8258_v28 = vmul.f32 0.5, %v9912_v26 }
0x2b4b   :  { %v8259_v46 = vadd.f32 0.5, %v8258_v28 }
0x2b4d   :  { %v8260_v48 = vmul.f32 %v8259_v46, %v11142_v20 }
0x2bbb   :  { %v8263_v39 = vpop.permute.xlu1 %8262 }
0x2bbc   :  { %v8265_v47 = vmul.f32 %v8263_v39, %v8259_v46 }
0x2bbe   :  { %8267 = vrot.lane.b32.xlu0 %v8265_v47, %s9917_s18 }
0x2bc2   :  { %1055 = vrot.lane.b32.xlu0 %v10168_v53, %s9919_s3 }
0x2bc6   :  { %5184 = vrot.lane.b32.xlu0 %v10770_v42, %s9919_s3 }
0x2bca   :  { %2088 = vrot.lane.b32.xlu0 %v10318_v34, %s9917_s18 }
0x2bce   :  { %6215 = vrot.lane.b32.xlu0 %v10920_v36, %s9917_s18 }
0x2c30   :  { %v8268_v44 = vpop.permute.xlu0 %8267 }
0x2c31   :  { %v8270_v49 = vadd.f32 %v8268_v44, %v8260_v48 }
0x2c33   :  { %9913 = vtanh.f32 %v8270_v49 }
0x2c34   :  { %v1056_v50 = vpop.permute.xlu0 %1055 }
0x2c35   :  { %1059 = vst.msk [vmem:[%s11269_s2] sm:$0xff] %vm1058_vm2, %v1056_v50 }
0x2c36   :  { %1573 = vst.msk [vmem:[%s11269_s2] sm:$0xff] %vm1572_vm3, %v10243_v43 }
0x2c38   :  { %v5185_v53 = vpop.permute.xlu0 %5184 }
0x2c39   :  { %5187 = vst.msk [vmem:[%s11269_s2 + $0x10] sm:$0xff] %vm1058_vm2, %v5185_v53 }
0x2c3a   :  { %5700 = vst.msk [vmem:[%s11269_s2 + $0x10] sm:$0xff] %vm1572_vm3, %v10845_v38 }
0x2c3c   :  { %v2089_v34 = vpop.permute.xlu0 %2088 }
0x2c3d   :  { %2092 = vst.msk [vmem:[%s11269_s2] sm:$0xff] %vm2091_vm4, %v2089_v34 }
0x2c40   :  { %v9914_v43 = vpop.eup %9913  ;;  %v6216_v42 = vpop.permute.xlu0 %6215 }
0x2c41   :  { %6218 = vst.msk [vmem:[%s11269_s2 + $0x10] sm:$0xff] %vm2091_vm4, %v6216_v42  ;;  %8273 = vrot.lane.b32.xlu1 %v9914_v43, %s9917_s18 }
0x2c45   :  { %3121 = vrot.lane.b32.xlu1 %v10469_v3, %s9919_s3 }
0x2c49   :  { %7247 = vrot.lane.b32.xlu1 %v11071_v33, %s9919_s3 }
0x2c4d   :  { %4152 = vrot.lane.b32.xlu1 %v10619_v52, %s9917_s18 }
0x2cb3   :  { %v8274_v38 = vpop.permute.xlu1 %8273 }
0x2cb4   :  { %v8276_v36 = vmul.f32 %v8274_v38, %v8259_v46 }
0x2cb6   :  { %8282 = vrot.lane.b32.xlu0 %v8276_v36, %s9918_s19  ;;  %8278 = vrot.lane.b32.xlu1 %v8276_v36, %s9917_s18 }
0x2cb7   :  { %v3122_v51 = vpop.permute.xlu1 %3121 }
0x2cb8   :  { %3124 = vst.msk [vmem:[%s11269_s2 + $0x8] sm:$0xff] %vm1058_vm2, %v3122_v51 }
0x2cb9   :  { %3637 = vst.msk [vmem:[%s11269_s2 + $0x8] sm:$0xff] %vm1572_vm3, %v10544_v59 }
0x2cba   :  { %8287 = vrot.lane.b32.xlu1 %v8270_v49, %s9919_s3 }
0x2cbb   :  { %v7248_v3 = vpop.permute.xlu1 %7247 }
0x2cbc   :  { %7250 = vst.msk [vmem:[%s11269_s2 + $0x18] sm:$0xff] %vm1058_vm2, %v7248_v3 }
0x2cbd   :  { %7763 = vst.msk [vmem:[%s11269_s2 + $0x18] sm:$0xff] %vm1572_vm3, %v11146_v24 }
0x2cbf   :  { %v4153_v52 = vpop.permute.xlu1 %4152 }
0x2cc0   :  { %4155 = vst.msk [vmem:[%s11269_s2 + $0x8] sm:$0xff] %vm2091_vm4, %v4153_v52 }
0x2d28   :  { %v8283_v59 = vpop.permute.xlu0 %8282  ;;  %v8279_v33 = vpop.permute.xlu1 %8278 }
0x2d29   :  { %8285 = vst.msk [vmem:[#allocation2] sm:$0xff] %vm15_vm0, %v8283_v59 }
0x2d2a   :  { %8281 = vst.msk [vmem:[%s11269_s2 + $0x18] sm:$0xff] %vm2091_vm4, %v8279_v33 }
0x2d2c   :  { %v8288_v54 = vpop.permute.xlu1 %8287 }
0x2d2d   :  { %8290 = vst.msk [vmem:[#allocation3] sm:$0xff] %vm15_vm0, %v8288_v54 }

</bundles_post_ra>
